<compile_context>
chip_gen: v7x
topology: tpu7x:2x2x1
jax: 0.10.0
libtpu: 0.0.40
codegen_flags: <defaults>
</compile_context>

<pallas_src>
import math
from functools import partial

import jax
import jax.numpy as jnp
from jax import lax
from jax.experimental import pallas as pl
from jax.experimental.pallas import tpu as pltpu


def _transsolver_kernel(x_ref, wx_ref, bx_ref, wfx_ref, bfx_ref,
                        wsl_ref, bsl_ref, wqkv_ref, wproj_ref, bproj_ref,
                        out_ref,
                        pool_ref, norm_ref, pj_ref,
                        *, num_heads, dim_head, num_slices, num_tiles):
    H, dh, G = num_heads, dim_head, num_slices
    p = pl.program_id(1)   # 0 = pooling pass, 1 = output pass
    i = pl.program_id(2)   # N-tile index

    bf16 = jnp.bfloat16
    f32 = jnp.float32

    x = x_ref[0].astype(bf16)                                               # (TN, dim)

    # ---- slice-assignment softmax (needed by both passes; recomputed in pass 1) ----
    xm = (jnp.dot(x, wx_ref[...], preferred_element_type=f32)
          + bx_ref[...]).astype(bf16)                                       # (TN, dim)
    # head-batched slice logits via block-diagonal weight (temperature folded in)
    logits = (jnp.dot(xm, wsl_ref[...], preferred_element_type=f32)
              + bsl_ref[...])                                               # (TN, H*G) f32
    segs = []
    for h in range(H):                                                      # per-head segment softmax
        lg = logits[:, h * G:(h + 1) * G]
        lg = lg - jnp.max(lg, axis=-1, keepdims=True)
        e = jnp.exp(lg)
        segs.append(e * pl.reciprocal(jnp.sum(e, axis=-1, keepdims=True), approx=True))
    sw_b = jnp.concatenate(segs, axis=-1).astype(bf16)                      # (TN, H*G)

    # --------------------- pass 0: pool tokens into slice tokens ---------------------
    @pl.when(p == 0)
    def _pool_pass():
        @pl.when(i == 0)
        def _init():
            pool_ref[...] = jnp.zeros_like(pool_ref)
            norm_ref[...] = jnp.zeros_like(norm_ref)

        fxm = (jnp.dot(x, wfx_ref[...], preferred_element_type=f32)
               + bfx_ref[...]).astype(bf16)                                 # (TN, dim)
        # head-batched pooling: contract over tokens -> (H*G, dim)
        pool_ref[...] += lax.dot_general(sw_b, fxm, (((0,), (0,)), ((), ())),
                                         preferred_element_type=f32)
        norm_ref[...] += jnp.sum(sw_b.astype(f32), axis=0, keepdims=True)   # (1, H*G)

        # at the last N tile: slice self-attention (once per batch) + fold in w_proj
        @pl.when(i == num_tiles - 1)
        def _slice_attention():
            # per-head (G, dh) pooled numerators sit on the block diagonal of pool_ref
            st_parts = [pool_ref[h * G:(h + 1) * G, h * dh:(h + 1) * dh] for h in range(H)]
            st = jnp.concatenate(st_parts, axis=0)                          # (H*G, dh) f32
            nrm = jnp.reshape(norm_ref[...], (H * G, 1))                    # (H*G, 1)
            st = (st / (nrm + 1e-5)).astype(bf16)                           # exact divide (tiny)
            # q/k/v for all heads in a single matmul (1/sqrt(dh) pre-folded into q cols)
            qkv = jnp.dot(st, wqkv_ref[...], preferred_element_type=f32)    # (H*G, 3*dh)
            for h in range(H):
                q = qkv[h * G:(h + 1) * G, 0:dh].astype(bf16)
                k = qkv[h * G:(h + 1) * G, dh:2 * dh].astype(bf16)
                v = qkv[h * G:(h + 1) * G, 2 * dh:3 * dh].astype(bf16)
                s = lax.dot_general(q, k, (((1,), (1,)), ((), ())),
                                    preferred_element_type=f32)             # (G, G)
                s = s - jnp.max(s, axis=-1, keepdims=True)
                e = jnp.exp(s)
                attn = (e * pl.reciprocal(jnp.sum(e, axis=-1, keepdims=True),
                                          approx=True)).astype(bf16)
                out_slice = jnp.dot(attn, v, preferred_element_type=f32)    # (G, dh)
                # fuse de-slicing into the output projection:
                #   pj_h = out_slice_h @ w_proj[h*dh:(h+1)*dh, :]  -> (G, dim), lane-dense
                pj = jnp.dot(out_slice.astype(bf16),
                             wproj_ref[h * dh:(h + 1) * dh, :],
                             preferred_element_type=f32)
                pj_ref[h * G:(h + 1) * G, :] = pj.astype(bf16)

    # ----------- pass 1: de-slice + (already folded) output projection, lane-dense -----------
    @pl.when(p == 1)
    def _output_pass():
        out = jnp.dot(sw_b, pj_ref[...], preferred_element_type=f32)        # (TN, dim)
        out_ref[0] = (out + bproj_ref[...]).astype(out_ref.dtype)


def _pick_tile_n(N, max_tile):
    if N <= max_tile:
        return N
    for t in range(max_tile - (max_tile % 8), 7, -8):
        if N % t == 0:
            return t
    return N   # fallback: whole-N residency (see TODO above)


def transsolver_attention(x, params, *, num_heads, num_slices,
                          max_tile=1024, out_dtype=jnp.bfloat16):
    B, N, dim = x.shape
    H, G = num_heads, num_slices
    assert dim % H == 0
    dh = dim // H
    bf16 = jnp.bfloat16
    f32 = jnp.float32

    TN = _pick_tile_n(N, max_tile)
    NT = N // TN

    # ----- wrapper-side weight prep (trace-time constants) -----
    w_x = params["w_x"].astype(bf16)                                        # (dim, dim)
    b_x = params["b_x"].reshape(1, dim).astype(f32)
    w_fx = params["w_fx"].astype(bf16)                                      # (dim, dim)
    b_fx = params["b_fx"].reshape(1, dim).astype(f32)

    temp = params["temperature"].reshape(H).astype(f32)                     # (H,)
    w_sl = params["w_slice"].astype(f32)[None] / temp[:, None, None]        # (H, dh, G)
    w_sl_bd = jnp.einsum("hdg,hk->hdkg", w_sl, jnp.eye(H, dtype=f32))
    w_sl_bd = w_sl_bd.reshape(dim, H * G).astype(bf16)                      # block-diagonal
    b_sl = (params["b_slice"].astype(f32)[None, :] / temp[:, None]).reshape(1, H * G)

    w_qkv = params["w_qkv"].astype(f32)                                     # (dh, 3*dh)
    w_qkv = jnp.concatenate([w_qkv[:, :dh] / math.sqrt(dh), w_qkv[:, dh:]], axis=1)
    w_qkv = w_qkv.astype(bf16)                                              # scale folded into q

    w_proj = params["w_proj"].astype(bf16)                                  # (dim, dim)
    b_proj = params["b_proj"].reshape(1, dim).astype(f32)

    kernel = partial(_transsolver_kernel, num_heads=H, dim_head=dh,
                     num_slices=G, num_tiles=NT)

    const = lambda b, p, i: (0, 0)

    grid_spec = pltpu.PrefetchScalarGridSpec(
        num_scalar_prefetch=0,
        grid=(B, 2, NT),
        in_specs=[
            pl.BlockSpec((1, TN, dim), lambda b, p, i: (b, i, 0)),  # x (native dtype)
            pl.BlockSpec((dim, dim), const),                        # w_x
            pl.BlockSpec((1, dim), const),                          # b_x
            pl.BlockSpec((dim, dim), const),                        # w_fx
            pl.BlockSpec((1, dim), const),                          # b_fx
            pl.BlockSpec((dim, H * G), const),                      # w_slice block-diag / temp
            pl.BlockSpec((1, H * G), const),                        # b_slice / temp
            pl.BlockSpec((dh, 3 * dh), const),                      # w_qkv (q cols pre-scaled)
            pl.BlockSpec((dim, dim), const),                        # w_proj
            pl.BlockSpec((1, dim), const),                          # b_proj
        ],
        # park on block 0 during pass 0 (no writes) -> single HBM writeback per tile in pass 1
        out_specs=pl.BlockSpec((1, TN, dim), lambda b, p, i: (b, i * p, 0)),
        scratch_shapes=[
            pltpu.VMEM((H * G, dim), jnp.float32),   # pooled slice-token numerators (all heads)
            pltpu.VMEM((1, H * G), jnp.float32),     # slice-weight norms
            pltpu.VMEM((H * G, dim), jnp.bfloat16),  # out_slice @ w_proj (de-slice fused w/ proj)
        ],
    )

    return pl.pallas_call(
        kernel,
        out_shape=jax.ShapeDtypeStruct((B, N, dim), out_dtype),
        grid_spec=grid_spec,
        compiler_params=pltpu.CompilerParams(
            dimension_semantics=("parallel", "arbitrary", "arbitrary"),
            vmem_limit_bytes=40 * 1024 * 1024),
    )(x, w_x, b_x, w_fx, b_fx, w_sl_bd, b_sl, w_qkv, w_proj, b_proj)


def transsolver_reference(x, params, *, num_heads, num_slices):
    """Pure-JAX f32 reference mirroring the PyTorch forward (attn_mask=None, eval mode)."""
    B, N, dim = x.shape
    dh = dim // num_heads
    fx = x @ params["w_fx"] + params["b_fx"]
    xm = x @ params["w_x"] + params["b_x"]
    fx_mid = fx.reshape(B, N, num_heads, dh).transpose(0, 2, 1, 3)
    x_mid = xm.reshape(B, N, num_heads, dh).transpose(0, 2, 1, 3)
    logits = (x_mid @ params["w_slice"] + params["b_slice"]) / params["temperature"]
    sw = jax.nn.softmax(logits, axis=-1)
    slice_norm = sw.sum(2)[..., None]
    slice_token = jnp.einsum('bhnc,bhng->bhgc', fx_mid, sw) / (slice_norm + 1e-5)
    qkv = slice_token @ params["w_qkv"]
    q, k, v = jnp.split(qkv, 3, axis=-1)
    attn = jax.nn.softmax(q @ jnp.swapaxes(k, -1, -2) / math.sqrt(dh), axis=-1)
    out_slice = attn @ v
    out_x = jnp.einsum('bhgc,bhng->bhnc', out_slice, sw)
    out_x = out_x.transpose(0, 2, 1, 3).reshape(B, N, dim)
    return out_x @ params["w_proj"] + params["b_proj"]


def init_params(key, dim, num_heads, num_slices):
    dh = dim // num_heads
    ks = jax.random.split(key, 8)
    scale = 0.15
    return {
        "w_x": jax.random.normal(ks[0], (dim, dim), jnp.float32) * scale,
        "b_x": jax.random.normal(ks[1], (dim,), jnp.float32) * scale,
        "w_fx": jax.random.normal(ks[2], (dim, dim), jnp.float32) * scale,
        "b_fx": jax.random.normal(ks[3], (dim,), jnp.float32) * scale,
        "w_slice": jax.random.normal(ks[4], (dh, num_slices), jnp.float32) * scale,
        "b_slice": jax.random.normal(ks[5], (num_slices,), jnp.float32) * scale,
        "w_qkv": jax.random.normal(ks[6], (dh, 3 * dh), jnp.float32) * scale,   # qkv_bias=False
        "w_proj": jax.random.normal(ks[7], (dim, dim), jnp.float32) * scale,
        "b_proj": jnp.zeros((dim,), jnp.float32),
        "temperature": jnp.full((1, num_heads, 1, 1), 0.5, jnp.float32),
    }


if __name__ == "__main__":
    B, N, dim = 2, 256, 64
    num_heads, num_slices = 4, 16

    key = jax.random.PRNGKey(0)
    k_x, k_p = jax.random.split(key)
    x = jax.random.normal(k_x, (B, N, dim), jnp.float32)
    params = init_params(k_p, dim, num_heads, num_slices)

    # max_tile=128 -> TN=128, 2 N-tiles per batch: exercises the two-pass accumulate structure
    out = transsolver_attention(x, params, num_heads=num_heads, num_slices=num_slices,
                                max_tile=128)
    out = jax.block_until_ready(out)

    ref = transsolver_reference(x, params, num_heads=num_heads, num_slices=num_slices)
    assert out.shape == (B, N, dim)
    # bf16 MXU operands + bf16 output -> loose, magnitude-relative tolerance vs f32 reference
    err = float(jnp.max(jnp.abs(out.astype(jnp.float32) - ref)))
    tol = 5e-2 * float(jnp.max(jnp.abs(ref))) + 1e-3
    assert err <= tol, (err, tol)

    print("KERNEL_OK")
</pallas_src>

<mosaic_0001>
module attributes {stable_mosaic.version = 11 : i64} {
  func.func @_transsolver_kernel(%arg0: i32, %arg1: i32, %arg2: i32, %arg3: memref<1x128x64xf32, #tpu.memory_space<vmem>>, %arg4: memref<64x64xbf16, #tpu.memory_space<vmem>>, %arg5: memref<1x64xf32, #tpu.memory_space<vmem>>, %arg6: memref<64x64xbf16, #tpu.memory_space<vmem>>, %arg7: memref<1x64xf32, #tpu.memory_space<vmem>>, %arg8: memref<64x64xbf16, #tpu.memory_space<vmem>>, %arg9: memref<1x64xf32, #tpu.memory_space<vmem>>, %arg10: memref<16x48xbf16, #tpu.memory_space<vmem>>, %arg11: memref<64x64xbf16, #tpu.memory_space<vmem>>, %arg12: memref<1x64xf32, #tpu.memory_space<vmem>>, %arg13: memref<1x128x64xbf16, #tpu.memory_space<vmem>>, %arg14: memref<64x64xf32, #tpu.memory_space<vmem>>, %arg15: memref<1x64xf32, #tpu.memory_space<vmem>>, %arg16: memref<64x64xbf16, #tpu.memory_space<vmem>>) attributes {dimension_semantics = [#tpu.dimension_semantics<parallel>, #tpu.dimension_semantics<arbitrary>, #tpu.dimension_semantics<arbitrary>], iteration_bounds = array<i64: 2, 2, 2>, scalar_prefetch = 0 : i64, scratch_operands = 3 : i64, tpu.core_type = #tpu.core_type<tc>, window_params = [{transform_indices = @transform_0, window_bounds = array<i64: 1, 128, 64>}, {pipeline_mode = #tpu.pipeline_mode<synchronous>, transform_indices = @transform_1, window_bounds = array<i64: 64, 64>}, {pipeline_mode = #tpu.pipeline_mode<synchronous>, transform_indices = @transform_2, window_bounds = array<i64: 1, 64>}, {pipeline_mode = #tpu.pipeline_mode<synchronous>, transform_indices = @transform_3, window_bounds = array<i64: 64, 64>}, {pipeline_mode = #tpu.pipeline_mode<synchronous>, transform_indices = @transform_4, window_bounds = array<i64: 1, 64>}, {pipeline_mode = #tpu.pipeline_mode<synchronous>, transform_indices = @transform_5, window_bounds = array<i64: 64, 64>}, {pipeline_mode = #tpu.pipeline_mode<synchronous>, transform_indices = @transform_6, window_bounds = array<i64: 1, 64>}, {pipeline_mode = #tpu.pipeline_mode<synchronous>, transform_indices = @transform_7, window_bounds = array<i64: 16, 48>}, {pipeline_mode = #tpu.pipeline_mode<synchronous>, transform_indices = @transform_8, window_bounds = array<i64: 64, 64>}, {pipeline_mode = #tpu.pipeline_mode<synchronous>, transform_indices = @transform_9, window_bounds = array<i64: 1, 64>}, {transform_indices = @transform_10, window_bounds = array<i64: 1, 128, 64>}]} {
    %c0 = arith.constant 0 : index
    %c0_0 = arith.constant 0 : index
    %c0_1 = arith.constant 0 : index
    %0 = vector.load %arg3[%c0, %c0_0, %c0_1] : memref<1x128x64xf32, #tpu.memory_space<vmem>>, vector<1x128x64xf32>
    %1 = vector.shape_cast %0 : vector<1x128x64xf32> to vector<128x64xf32>
    %2 = arith.truncf %1 : vector<128x64xf32> to vector<128x64xbf16>
    %c0_2 = arith.constant 0 : index
    %c0_3 = arith.constant 0 : index
    %3 = vector.load %arg4[%c0_2, %c0_3] : memref<64x64xbf16, #tpu.memory_space<vmem>>, vector<64x64xbf16>
    %cst = arith.constant dense<0.000000e+00> : vector<128x64xf32>
    %4 = tpu.matmul %2, %3, %cst {dimension_numbers = #tpu.dot_dimension_numbers<[1], [0], [0], [1], [0, 0, 1, 1], [], []>} : vector<128x64xbf16>, vector<64x64xbf16>, vector<128x64xf32> -> vector<128x64xf32>
    %c0_4 = arith.constant 0 : index
    %c0_5 = arith.constant 0 : index
    %5 = vector.load %arg5[%c0_4, %c0_5] : memref<1x64xf32, #tpu.memory_space<vmem>>, vector<1x64xf32>
    %6 = vector.broadcast %5 : vector<1x64xf32> to vector<128x64xf32>
    %7 = arith.addf %4, %6 : vector<128x64xf32>
    %8 = arith.truncf %7 : vector<128x64xf32> to vector<128x64xbf16>
    %c0_6 = arith.constant 0 : index
    %c0_7 = arith.constant 0 : index
    %9 = vector.load %arg8[%c0_6, %c0_7] : memref<64x64xbf16, #tpu.memory_space<vmem>>, vector<64x64xbf16>
    %cst_8 = arith.constant dense<0.000000e+00> : vector<128x64xf32>
    %10 = tpu.matmul %8, %9, %cst_8 {dimension_numbers = #tpu.dot_dimension_numbers<[1], [0], [0], [1], [0, 0, 1, 1], [], []>} : vector<128x64xbf16>, vector<64x64xbf16>, vector<128x64xf32> -> vector<128x64xf32>
    %c0_9 = arith.constant 0 : index
    %c0_10 = arith.constant 0 : index
    %11 = vector.load %arg9[%c0_9, %c0_10] : memref<1x64xf32, #tpu.memory_space<vmem>>, vector<1x64xf32>
    %12 = vector.broadcast %11 : vector<1x64xf32> to vector<128x64xf32>
    %13 = arith.addf %10, %12 : vector<128x64xf32>
    %14 = vector.extract_strided_slice %13 {offsets = [0, 0], sizes = [128, 16], strides = [1, 1]} : vector<128x64xf32> to vector<128x16xf32>
    %cst_11 = arith.constant dense<0xFF800000> : vector<128xf32>
    %15 = vector.multi_reduction <maximumf>, %14, %cst_11 [1] : vector<128x16xf32> to vector<128xf32>
    %16 = vector.shape_cast %15 : vector<128xf32> to vector<128x1xf32>
    %17 = vector.broadcast %16 : vector<128x1xf32> to vector<128x16xf32>
    %18 = arith.subf %14, %17 : vector<128x16xf32>
    %19 = math.exp %18 : vector<128x16xf32>
    %cst_12 = arith.constant dense<0.000000e+00> : vector<128xf32>
    %20 = vector.multi_reduction <add>, %19, %cst_12 [1] : vector<128x16xf32> to vector<128xf32>
    %21 = vector.shape_cast %20 : vector<128xf32> to vector<128x1xf32>
    %22 = tpu.reciprocal %21 {approx = true} : vector<128x1xf32> -> vector<128x1xf32>
    %23 = vector.broadcast %22 : vector<128x1xf32> to vector<128x16xf32>
    %24 = arith.mulf %19, %23 : vector<128x16xf32>
    %25 = vector.extract_strided_slice %13 {offsets = [0, 16], sizes = [128, 16], strides = [1, 1]} : vector<128x64xf32> to vector<128x16xf32>
    %cst_13 = arith.constant dense<0xFF800000> : vector<128xf32>
    %26 = vector.multi_reduction <maximumf>, %25, %cst_13 [1] : vector<128x16xf32> to vector<128xf32>
    %27 = vector.shape_cast %26 : vector<128xf32> to vector<128x1xf32>
    %28 = vector.broadcast %27 : vector<128x1xf32> to vector<128x16xf32>
    %29 = arith.subf %25, %28 : vector<128x16xf32>
    %30 = math.exp %29 : vector<128x16xf32>
    %cst_14 = arith.constant dense<0.000000e+00> : vector<128xf32>
    %31 = vector.multi_reduction <add>, %30, %cst_14 [1] : vector<128x16xf32> to vector<128xf32>
    %32 = vector.shape_cast %31 : vector<128xf32> to vector<128x1xf32>
    %33 = tpu.reciprocal %32 {approx = true} : vector<128x1xf32> -> vector<128x1xf32>
    %34 = vector.broadcast %33 : vector<128x1xf32> to vector<128x16xf32>
    %35 = arith.mulf %30, %34 : vector<128x16xf32>
    %36 = vector.extract_strided_slice %13 {offsets = [0, 32], sizes = [128, 16], strides = [1, 1]} : vector<128x64xf32> to vector<128x16xf32>
    %cst_15 = arith.constant dense<0xFF800000> : vector<128xf32>
    %37 = vector.multi_reduction <maximumf>, %36, %cst_15 [1] : vector<128x16xf32> to vector<128xf32>
    %38 = vector.shape_cast %37 : vector<128xf32> to vector<128x1xf32>
    %39 = vector.broadcast %38 : vector<128x1xf32> to vector<128x16xf32>
    %40 = arith.subf %36, %39 : vector<128x16xf32>
    %41 = math.exp %40 : vector<128x16xf32>
    %cst_16 = arith.constant dense<0.000000e+00> : vector<128xf32>
    %42 = vector.multi_reduction <add>, %41, %cst_16 [1] : vector<128x16xf32> to vector<128xf32>
    %43 = vector.shape_cast %42 : vector<128xf32> to vector<128x1xf32>
    %44 = tpu.reciprocal %43 {approx = true} : vector<128x1xf32> -> vector<128x1xf32>
    %45 = vector.broadcast %44 : vector<128x1xf32> to vector<128x16xf32>
    %46 = arith.mulf %41, %45 : vector<128x16xf32>
    %47 = vector.extract_strided_slice %13 {offsets = [0, 48], sizes = [128, 16], strides = [1, 1]} : vector<128x64xf32> to vector<128x16xf32>
    %cst_17 = arith.constant dense<0xFF800000> : vector<128xf32>
    %48 = vector.multi_reduction <maximumf>, %47, %cst_17 [1] : vector<128x16xf32> to vector<128xf32>
    %49 = vector.shape_cast %48 : vector<128xf32> to vector<128x1xf32>
    %50 = vector.broadcast %49 : vector<128x1xf32> to vector<128x16xf32>
    %51 = arith.subf %47, %50 : vector<128x16xf32>
    %52 = math.exp %51 : vector<128x16xf32>
    %cst_18 = arith.constant dense<0.000000e+00> : vector<128xf32>
    %53 = vector.multi_reduction <add>, %52, %cst_18 [1] : vector<128x16xf32> to vector<128xf32>
    %54 = vector.shape_cast %53 : vector<128xf32> to vector<128x1xf32>
    %55 = tpu.reciprocal %54 {approx = true} : vector<128x1xf32> -> vector<128x1xf32>
    %56 = vector.broadcast %55 : vector<128x1xf32> to vector<128x16xf32>
    %57 = arith.mulf %52, %56 : vector<128x16xf32>
    %58 = tpu.concatenate %24, %35, %46, %57 in 1 : vector<128x16xf32>, vector<128x16xf32>, vector<128x16xf32>, vector<128x16xf32> -> vector<128x64xf32>
    %59 = arith.truncf %58 : vector<128x64xf32> to vector<128x64xbf16>
    %c0_i32 = arith.constant 0 : i32
    %60 = arith.cmpi eq, %arg1, %c0_i32 : i32
    %61 = arith.extui %60 : i1 to i32
    %c0_i32_19 = arith.constant 0 : i32
    %62 = arith.cmpi ne, %61, %c0_i32_19 : i32
    scf.if %62 {
      %c0_i32_21 = arith.constant 0 : i32
      %66 = arith.cmpi eq, %arg2, %c0_i32_21 : i32
      %67 = arith.extui %66 : i1 to i32
      %c0_i32_22 = arith.constant 0 : i32
      %68 = arith.cmpi ne, %67, %c0_i32_22 : i32
      scf.if %68 {
        %cst_40 = arith.constant 0.000000e+00 : f32
        %88 = vector.broadcast %cst_40 : f32 to vector<64x64xf32>
        %c0_41 = arith.constant 0 : index
        %c0_42 = arith.constant 0 : index
        %89 = vector.load %arg14[%c0_41, %c0_42] : memref<64x64xf32, #tpu.memory_space<vmem>>, vector<64x64xf32>
        tpu.vector_store %arg14[%c0_41, %c0_42], %88 {strides = array<i32>} : memref<64x64xf32, #tpu.memory_space<vmem>>, vector<64x64xf32>,
        %cst_43 = arith.constant 0.000000e+00 : f32
        %90 = vector.broadcast %cst_43 : f32 to vector<1x64xf32>
        %c0_44 = arith.constant 0 : index
        %c0_45 = arith.constant 0 : index
        %91 = vector.load %arg15[%c0_44, %c0_45] : memref<1x64xf32, #tpu.memory_space<vmem>>, vector<1x64xf32>
        tpu.vector_store %arg15[%c0_44, %c0_45], %90 {strides = array<i32>} : memref<1x64xf32, #tpu.memory_space<vmem>>, vector<1x64xf32>,
      } else {
      }
      %c0_23 = arith.constant 0 : index
      %c0_24 = arith.constant 0 : index
      %69 = vector.load %arg6[%c0_23, %c0_24] : memref<64x64xbf16, #tpu.memory_space<vmem>>, vector<64x64xbf16>
      %cst_25 = arith.constant dense<0.000000e+00> : vector<128x64xf32>
      %70 = tpu.matmul %2, %69, %cst_25 {dimension_numbers = #tpu.dot_dimension_numbers<[1], [0], [0], [1], [0, 0, 1, 1], [], []>} : vector<128x64xbf16>, vector<64x64xbf16>, vector<128x64xf32> -> vector<128x64xf32>
      %c0_26 = arith.constant 0 : index
      %c0_27 = arith.constant 0 : index
      %71 = vector.load %arg7[%c0_26, %c0_27] : memref<1x64xf32, #tpu.memory_space<vmem>>, vector<1x64xf32>
      %72 = vector.broadcast %71 : vector<1x64xf32> to vector<128x64xf32>
      %73 = arith.addf %70, %72 : vector<128x64xf32>
      %74 = arith.truncf %73 : vector<128x64xf32> to vector<128x64xbf16>
      %c0_28 = arith.constant 0 : index
      %c0_29 = arith.constant 0 : index
      %75 = vector.load %arg14[%c0_28, %c0_29] : memref<64x64xf32, #tpu.memory_space<vmem>>, vector<64x64xf32>
      %cst_30 = arith.constant dense<0.000000e+00> : vector<64x64xf32>
      %76 = tpu.matmul %59, %74, %cst_30 {dimension_numbers = #tpu.dot_dimension_numbers<[0], [0], [1], [1], [0, 1, 1, 1], [], []>} : vector<128x64xbf16>, vector<128x64xbf16>, vector<64x64xf32> -> vector<64x64xf32>
      %77 = arith.addf %75, %76 : vector<64x64xf32>
      %c0_31 = arith.constant 0 : index
      %c0_32 = arith.constant 0 : index
      %78 = vector.load %arg14[%c0_31, %c0_32] : memref<64x64xf32, #tpu.memory_space<vmem>>, vector<64x64xf32>
      tpu.vector_store %arg14[%c0_31, %c0_32], %77 {strides = array<i32>} : memref<64x64xf32, #tpu.memory_space<vmem>>, vector<64x64xf32>,
      %c0_33 = arith.constant 0 : index
      %c0_34 = arith.constant 0 : index
      %79 = vector.load %arg15[%c0_33, %c0_34] : memref<1x64xf32, #tpu.memory_space<vmem>>, vector<1x64xf32>
      %80 = arith.extf %59 : vector<128x64xbf16> to vector<128x64xf32>
      %cst_35 = arith.constant dense<0.000000e+00> : vector<64xf32>
      %81 = vector.multi_reduction <add>, %80, %cst_35 [0] : vector<128x64xf32> to vector<64xf32>
      %82 = vector.shape_cast %81 : vector<64xf32> to vector<1x64xf32>
      %83 = arith.addf %79, %82 : vector<1x64xf32>
      %c0_36 = arith.constant 0 : index
      %c0_37 = arith.constant 0 : index
      %84 = vector.load %arg15[%c0_36, %c0_37] : memref<1x64xf32, #tpu.memory_space<vmem>>, vector<1x64xf32>
      tpu.vector_store %arg15[%c0_36, %c0_37], %83 {strides = array<i32>} : memref<1x64xf32, #tpu.memory_space<vmem>>, vector<1x64xf32>,
      %c1_i32_38 = arith.constant 1 : i32
      %85 = arith.cmpi eq, %arg2, %c1_i32_38 : i32
      %86 = arith.extui %85 : i1 to i32
      %c0_i32_39 = arith.constant 0 : i32
      %87 = arith.cmpi ne, %86, %c0_i32_39 : i32
      scf.if %87 {
        %c0_40 = arith.constant 0 : index
        %c0_41 = arith.constant 0 : index
        %88 = vector.load %arg14[%c0_40, %c0_41] : memref<64x64xf32, #tpu.memory_space<vmem>>, vector<16x16xf32>
        %c16 = arith.constant 16 : index
        %c16_42 = arith.constant 16 : index
        %89 = vector.load %arg14[%c16, %c16_42] : memref<64x64xf32, #tpu.memory_space<vmem>>, vector<16x16xf32>
        %c32 = arith.constant 32 : index
        %c32_43 = arith.constant 32 : index
        %90 = vector.load %arg14[%c32, %c32_43] : memref<64x64xf32, #tpu.memory_space<vmem>>, vector<16x16xf32>
        %c48 = arith.constant 48 : index
        %c48_44 = arith.constant 48 : index
        %91 = vector.load %arg14[%c48, %c48_44] : memref<64x64xf32, #tpu.memory_space<vmem>>, vector<16x16xf32>
        %92 = tpu.concatenate %88, %89, %90, %91 in 0 : vector<16x16xf32>, vector<16x16xf32>, vector<16x16xf32>, vector<16x16xf32> -> vector<64x16xf32>
        %c0_45 = arith.constant 0 : index
        %c0_46 = arith.constant 0 : index
        %93 = vector.load %arg15[%c0_45, %c0_46] : memref<1x64xf32, #tpu.memory_space<vmem>>, vector<1x64xf32>
        %94 = vector.shape_cast %93 : vector<1x64xf32> to vector<64x1xf32>
        %cst_47 = arith.constant 9.99999974E-6 : f32
        %95 = vector.broadcast %cst_47 : f32 to vector<64x1xf32>
        %96 = arith.addf %94, %95 : vector<64x1xf32>
        %97 = vector.broadcast %96 : vector<64x1xf32> to vector<64x16xf32>
        %98 = arith.divf %92, %97 : vector<64x16xf32>
        %99 = arith.truncf %98 : vector<64x16xf32> to vector<64x16xbf16>
        %c0_48 = arith.constant 0 : index
        %c0_49 = arith.constant 0 : index
        %100 = vector.load %arg10[%c0_48, %c0_49] : memref<16x48xbf16, #tpu.memory_space<vmem>>, vector<16x48xbf16>
        %cst_50 = arith.constant dense<0.000000e+00> : vector<64x48xf32>
        %101 = tpu.matmul %99, %100, %cst_50 {dimension_numbers = #tpu.dot_dimension_numbers<[1], [0], [0], [1], [0, 0, 1, 1], [], []>} : vector<64x16xbf16>, vector<16x48xbf16>, vector<64x48xf32> -> vector<64x48xf32>
        %102 = vector.extract_strided_slice %101 {offsets = [0, 0], sizes = [16, 16], strides = [1, 1]} : vector<64x48xf32> to vector<16x16xf32>
        %103 = arith.truncf %102 : vector<16x16xf32> to vector<16x16xbf16>
        %104 = vector.extract_strided_slice %101 {offsets = [0, 16], sizes = [16, 16], strides = [1, 1]} : vector<64x48xf32> to vector<16x16xf32>
        %105 = arith.truncf %104 : vector<16x16xf32> to vector<16x16xbf16>
        %106 = vector.extract_strided_slice %101 {offsets = [0, 32], sizes = [16, 16], strides = [1, 1]} : vector<64x48xf32> to vector<16x16xf32>
        %107 = arith.truncf %106 : vector<16x16xf32> to vector<16x16xbf16>
        %cst_51 = arith.constant dense<0.000000e+00> : vector<16x16xf32>
        %108 = tpu.matmul %103, %105, %cst_51 {dimension_numbers = #tpu.dot_dimension_numbers<[1], [1], [0], [0], [0, 0, 1, 0], [], []>} : vector<16x16xbf16>, vector<16x16xbf16>, vector<16x16xf32> -> vector<16x16xf32>
        %cst_52 = arith.constant dense<0xFF800000> : vector<16xf32>
        %109 = vector.multi_reduction <maximumf>, %108, %cst_52 [1] : vector<16x16xf32> to vector<16xf32>
        %110 = vector.shape_cast %109 : vector<16xf32> to vector<16x1xf32>
        %111 = vector.broadcast %110 : vector<16x1xf32> to vector<16x16xf32>
        %112 = arith.subf %108, %111 : vector<16x16xf32>
        %113 = math.exp %112 : vector<16x16xf32>
        %cst_53 = arith.constant dense<0.000000e+00> : vector<16xf32>
        %114 = vector.multi_reduction <add>, %113, %cst_53 [1] : vector<16x16xf32> to vector<16xf32>
        %115 = vector.shape_cast %114 : vector<16xf32> to vector<16x1xf32>
        %116 = tpu.reciprocal %115 {approx = true} : vector<16x1xf32> -> vector<16x1xf32>
        %117 = vector.broadcast %116 : vector<16x1xf32> to vector<16x16xf32>
        %118 = arith.mulf %113, %117 : vector<16x16xf32>
        %119 = arith.truncf %118 : vector<16x16xf32> to vector<16x16xbf16>
        %cst_54 = arith.constant dense<0.000000e+00> : vector<16x16xf32>
        %120 = tpu.matmul %119, %107, %cst_54 {dimension_numbers = #tpu.dot_dimension_numbers<[1], [0], [0], [1], [0, 0, 1, 1], [], []>} : vector<16x16xbf16>, vector<16x16xbf16>, vector<16x16xf32> -> vector<16x16xf32>
        %121 = arith.truncf %120 : vector<16x16xf32> to vector<16x16xbf16>
        %c0_55 = arith.constant 0 : index
        %c0_56 = arith.constant 0 : index
        %122 = vector.load %arg11[%c0_55, %c0_56] : memref<64x64xbf16, #tpu.memory_space<vmem>>, vector<16x64xbf16>
        %cst_57 = arith.constant dense<0.000000e+00> : vector<16x64xf32>
        %123 = tpu.matmul %121, %122, %cst_57 {dimension_numbers = #tpu.dot_dimension_numbers<[1], [0], [0], [1], [0, 0, 1, 1], [], []>} : vector<16x16xbf16>, vector<16x64xbf16>, vector<16x64xf32> -> vector<16x64xf32>
        %124 = arith.truncf %123 : vector<16x64xf32> to vector<16x64xbf16>
        %c0_58 = arith.constant 0 : index
        %c0_59 = arith.constant 0 : index
        %125 = vector.load %arg16[%c0_58, %c0_59] : memref<64x64xbf16, #tpu.memory_space<vmem>>, vector<16x64xbf16>
        tpu.vector_store %arg16[%c0_58, %c0_59], %124 {strides = array<i32>} : memref<64x64xbf16, #tpu.memory_space<vmem>>, vector<16x64xbf16>,
        %126 = vector.extract_strided_slice %101 {offsets = [16, 0], sizes = [16, 16], strides = [1, 1]} : vector<64x48xf32> to vector<16x16xf32>
        %127 = arith.truncf %126 : vector<16x16xf32> to vector<16x16xbf16>
        %128 = vector.extract_strided_slice %101 {offsets = [16, 16], sizes = [16, 16], strides = [1, 1]} : vector<64x48xf32> to vector<16x16xf32>
        %129 = arith.truncf %128 : vector<16x16xf32> to vector<16x16xbf16>
        %130 = vector.extract_strided_slice %101 {offsets = [16, 32], sizes = [16, 16], strides = [1, 1]} : vector<64x48xf32> to vector<16x16xf32>
        %131 = arith.truncf %130 : vector<16x16xf32> to vector<16x16xbf16>
        %cst_60 = arith.constant dense<0.000000e+00> : vector<16x16xf32>
        %132 = tpu.matmul %127, %129, %cst_60 {dimension_numbers = #tpu.dot_dimension_numbers<[1], [1], [0], [0], [0, 0, 1, 0], [], []>} : vector<16x16xbf16>, vector<16x16xbf16>, vector<16x16xf32> -> vector<16x16xf32>
        %cst_61 = arith.constant dense<0xFF800000> : vector<16xf32>
        %133 = vector.multi_reduction <maximumf>, %132, %cst_61 [1] : vector<16x16xf32> to vector<16xf32>
        %134 = vector.shape_cast %133 : vector<16xf32> to vector<16x1xf32>
        %135 = vector.broadcast %134 : vector<16x1xf32> to vector<16x16xf32>
        %136 = arith.subf %132, %135 : vector<16x16xf32>
        %137 = math.exp %136 : vector<16x16xf32>
        %cst_62 = arith.constant dense<0.000000e+00> : vector<16xf32>
        %138 = vector.multi_reduction <add>, %137, %cst_62 [1] : vector<16x16xf32> to vector<16xf32>
        %139 = vector.shape_cast %138 : vector<16xf32> to vector<16x1xf32>
        %140 = tpu.reciprocal %139 {approx = true} : vector<16x1xf32> -> vector<16x1xf32>
        %141 = vector.broadcast %140 : vector<16x1xf32> to vector<16x16xf32>
        %142 = arith.mulf %137, %141 : vector<16x16xf32>
        %143 = arith.truncf %142 : vector<16x16xf32> to vector<16x16xbf16>
        %cst_63 = arith.constant dense<0.000000e+00> : vector<16x16xf32>
        %144 = tpu.matmul %143, %131, %cst_63 {dimension_numbers = #tpu.dot_dimension_numbers<[1], [0], [0], [1], [0, 0, 1, 1], [], []>} : vector<16x16xbf16>, vector<16x16xbf16>, vector<16x16xf32> -> vector<16x16xf32>
        %145 = arith.truncf %144 : vector<16x16xf32> to vector<16x16xbf16>
        %c16_64 = arith.constant 16 : index
        %c0_65 = arith.constant 0 : index
        %146 = vector.load %arg11[%c16_64, %c0_65] : memref<64x64xbf16, #tpu.memory_space<vmem>>, vector<16x64xbf16>
        %cst_66 = arith.constant dense<0.000000e+00> : vector<16x64xf32>
        %147 = tpu.matmul %145, %146, %cst_66 {dimension_numbers = #tpu.dot_dimension_numbers<[1], [0], [0], [1], [0, 0, 1, 1], [], []>} : vector<16x16xbf16>, vector<16x64xbf16>, vector<16x64xf32> -> vector<16x64xf32>
        %148 = arith.truncf %147 : vector<16x64xf32> to vector<16x64xbf16>
        %c16_67 = arith.constant 16 : index
        %c0_68 = arith.constant 0 : index
        %149 = vector.load %arg16[%c16_67, %c0_68] : memref<64x64xbf16, #tpu.memory_space<vmem>>, vector<16x64xbf16>
        tpu.vector_store %arg16[%c16_67, %c0_68], %148 {strides = array<i32>} : memref<64x64xbf16, #tpu.memory_space<vmem>>, vector<16x64xbf16>,
        %150 = vector.extract_strided_slice %101 {offsets = [32, 0], sizes = [16, 16], strides = [1, 1]} : vector<64x48xf32> to vector<16x16xf32>
        %151 = arith.truncf %150 : vector<16x16xf32> to vector<16x16xbf16>
        %152 = vector.extract_strided_slice %101 {offsets = [32, 16], sizes = [16, 16], strides = [1, 1]} : vector<64x48xf32> to vector<16x16xf32>
        %153 = arith.truncf %152 : vector<16x16xf32> to vector<16x16xbf16>
        %154 = vector.extract_strided_slice %101 {offsets = [32, 32], sizes = [16, 16], strides = [1, 1]} : vector<64x48xf32> to vector<16x16xf32>
        %155 = arith.truncf %154 : vector<16x16xf32> to vector<16x16xbf16>
        %cst_69 = arith.constant dense<0.000000e+00> : vector<16x16xf32>
        %156 = tpu.matmul %151, %153, %cst_69 {dimension_numbers = #tpu.dot_dimension_numbers<[1], [1], [0], [0], [0, 0, 1, 0], [], []>} : vector<16x16xbf16>, vector<16x16xbf16>, vector<16x16xf32> -> vector<16x16xf32>
        %cst_70 = arith.constant dense<0xFF800000> : vector<16xf32>
        %157 = vector.multi_reduction <maximumf>, %156, %cst_70 [1] : vector<16x16xf32> to vector<16xf32>
        %158 = vector.shape_cast %157 : vector<16xf32> to vector<16x1xf32>
        %159 = vector.broadcast %158 : vector<16x1xf32> to vector<16x16xf32>
        %160 = arith.subf %156, %159 : vector<16x16xf32>
        %161 = math.exp %160 : vector<16x16xf32>
        %cst_71 = arith.constant dense<0.000000e+00> : vector<16xf32>
        %162 = vector.multi_reduction <add>, %161, %cst_71 [1] : vector<16x16xf32> to vector<16xf32>
        %163 = vector.shape_cast %162 : vector<16xf32> to vector<16x1xf32>
        %164 = tpu.reciprocal %163 {approx = true} : vector<16x1xf32> -> vector<16x1xf32>
        %165 = vector.broadcast %164 : vector<16x1xf32> to vector<16x16xf32>
        %166 = arith.mulf %161, %165 : vector<16x16xf32>
        %167 = arith.truncf %166 : vector<16x16xf32> to vector<16x16xbf16>
        %cst_72 = arith.constant dense<0.000000e+00> : vector<16x16xf32>
        %168 = tpu.matmul %167, %155, %cst_72 {dimension_numbers = #tpu.dot_dimension_numbers<[1], [0], [0], [1], [0, 0, 1, 1], [], []>} : vector<16x16xbf16>, vector<16x16xbf16>, vector<16x16xf32> -> vector<16x16xf32>
        %169 = arith.truncf %168 : vector<16x16xf32> to vector<16x16xbf16>
        %c32_73 = arith.constant 32 : index
        %c0_74 = arith.constant 0 : index
        %170 = vector.load %arg11[%c32_73, %c0_74] : memref<64x64xbf16, #tpu.memory_space<vmem>>, vector<16x64xbf16>
        %cst_75 = arith.constant dense<0.000000e+00> : vector<16x64xf32>
        %171 = tpu.matmul %169, %170, %cst_75 {dimension_numbers = #tpu.dot_dimension_numbers<[1], [0], [0], [1], [0, 0, 1, 1], [], []>} : vector<16x16xbf16>, vector<16x64xbf16>, vector<16x64xf32> -> vector<16x64xf32>
        %172 = arith.truncf %171 : vector<16x64xf32> to vector<16x64xbf16>
        %c32_76 = arith.constant 32 : index
        %c0_77 = arith.constant 0 : index
        %173 = vector.load %arg16[%c32_76, %c0_77] : memref<64x64xbf16, #tpu.memory_space<vmem>>, vector<16x64xbf16>
        tpu.vector_store %arg16[%c32_76, %c0_77], %172 {strides = array<i32>} : memref<64x64xbf16, #tpu.memory_space<vmem>>, vector<16x64xbf16>,
        %174 = vector.extract_strided_slice %101 {offsets = [48, 0], sizes = [16, 16], strides = [1, 1]} : vector<64x48xf32> to vector<16x16xf32>
        %175 = arith.truncf %174 : vector<16x16xf32> to vector<16x16xbf16>
        %176 = vector.extract_strided_slice %101 {offsets = [48, 16], sizes = [16, 16], strides = [1, 1]} : vector<64x48xf32> to vector<16x16xf32>
        %177 = arith.truncf %176 : vector<16x16xf32> to vector<16x16xbf16>
        %178 = vector.extract_strided_slice %101 {offsets = [48, 32], sizes = [16, 16], strides = [1, 1]} : vector<64x48xf32> to vector<16x16xf32>
        %179 = arith.truncf %178 : vector<16x16xf32> to vector<16x16xbf16>
        %cst_78 = arith.constant dense<0.000000e+00> : vector<16x16xf32>
        %180 = tpu.matmul %175, %177, %cst_78 {dimension_numbers = #tpu.dot_dimension_numbers<[1], [1], [0], [0], [0, 0, 1, 0], [], []>} : vector<16x16xbf16>, vector<16x16xbf16>, vector<16x16xf32> -> vector<16x16xf32>
        %cst_79 = arith.constant dense<0xFF800000> : vector<16xf32>
        %181 = vector.multi_reduction <maximumf>, %180, %cst_79 [1] : vector<16x16xf32> to vector<16xf32>
        %182 = vector.shape_cast %181 : vector<16xf32> to vector<16x1xf32>
        %183 = vector.broadcast %182 : vector<16x1xf32> to vector<16x16xf32>
        %184 = arith.subf %180, %183 : vector<16x16xf32>
        %185 = math.exp %184 : vector<16x16xf32>
        %cst_80 = arith.constant dense<0.000000e+00> : vector<16xf32>
        %186 = vector.multi_reduction <add>, %185, %cst_80 [1] : vector<16x16xf32> to vector<16xf32>
        %187 = vector.shape_cast %186 : vector<16xf32> to vector<16x1xf32>
        %188 = tpu.reciprocal %187 {approx = true} : vector<16x1xf32> -> vector<16x1xf32>
        %189 = vector.broadcast %188 : vector<16x1xf32> to vector<16x16xf32>
        %190 = arith.mulf %185, %189 : vector<16x16xf32>
        %191 = arith.truncf %190 : vector<16x16xf32> to vector<16x16xbf16>
        %cst_81 = arith.constant dense<0.000000e+00> : vector<16x16xf32>
        %192 = tpu.matmul %191, %179, %cst_81 {dimension_numbers = #tpu.dot_dimension_numbers<[1], [0], [0], [1], [0, 0, 1, 1], [], []>} : vector<16x16xbf16>, vector<16x16xbf16>, vector<16x16xf32> -> vector<16x16xf32>
        %193 = arith.truncf %192 : vector<16x16xf32> to vector<16x16xbf16>
        %c48_82 = arith.constant 48 : index
        %c0_83 = arith.constant 0 : index
        %194 = vector.load %arg11[%c48_82, %c0_83] : memref<64x64xbf16, #tpu.memory_space<vmem>>, vector<16x64xbf16>
        %cst_84 = arith.constant dense<0.000000e+00> : vector<16x64xf32>
        %195 = tpu.matmul %193, %194, %cst_84 {dimension_numbers = #tpu.dot_dimension_numbers<[1], [0], [0], [1], [0, 0, 1, 1], [], []>} : vector<16x16xbf16>, vector<16x64xbf16>, vector<16x64xf32> -> vector<16x64xf32>
        %196 = arith.truncf %195 : vector<16x64xf32> to vector<16x64xbf16>
        %c48_85 = arith.constant 48 : index
        %c0_86 = arith.constant 0 : index
        %197 = vector.load %arg16[%c48_85, %c0_86] : memref<64x64xbf16, #tpu.memory_space<vmem>>, vector<16x64xbf16>
        tpu.vector_store %arg16[%c48_85, %c0_86], %196 {strides = array<i32>} : memref<64x64xbf16, #tpu.memory_space<vmem>>, vector<16x64xbf16>,
      } else {
      }
    } else {
    }
    %c1_i32 = arith.constant 1 : i32
    %63 = arith.cmpi eq, %arg1, %c1_i32 : i32
    %64 = arith.extui %63 : i1 to i32
    %c0_i32_20 = arith.constant 0 : i32
    %65 = arith.cmpi ne, %64, %c0_i32_20 : i32
    scf.if %65 {
      %c0_21 = arith.constant 0 : index
      %c0_22 = arith.constant 0 : index
      %66 = vector.load %arg16[%c0_21, %c0_22] : memref<64x64xbf16, #tpu.memory_space<vmem>>, vector<64x64xbf16>
      %cst_23 = arith.constant dense<0.000000e+00> : vector<128x64xf32>
      %67 = tpu.matmul %59, %66, %cst_23 {dimension_numbers = #tpu.dot_dimension_numbers<[1], [0], [0], [1], [0, 0, 1, 1], [], []>} : vector<128x64xbf16>, vector<64x64xbf16>, vector<128x64xf32> -> vector<128x64xf32>
      %c0_24 = arith.constant 0 : index
      %c0_25 = arith.constant 0 : index
      %68 = vector.load %arg12[%c0_24, %c0_25] : memref<1x64xf32, #tpu.memory_space<vmem>>, vector<1x64xf32>
      %69 = vector.broadcast %68 : vector<1x64xf32> to vector<128x64xf32>
      %70 = arith.addf %67, %69 : vector<128x64xf32>
      %71 = arith.truncf %70 : vector<128x64xf32> to vector<128x64xbf16>
      %c0_26 = arith.constant 0 : index
      %c0_27 = arith.constant 0 : index
      %c0_28 = arith.constant 0 : index
      %72 = vector.load %arg13[%c0_26, %c0_27, %c0_28] : memref<1x128x64xbf16, #tpu.memory_space<vmem>>, vector<1x128x64xbf16>
      %73 = vector.shape_cast %72 : vector<1x128x64xbf16> to vector<128x64xbf16>
      %74 = vector.shape_cast %71 : vector<128x64xbf16> to vector<1x128x64xbf16>
      tpu.vector_store %arg13[%c0_26, %c0_27, %c0_28], %74 {strides = array<i32>} : memref<1x128x64xbf16, #tpu.memory_space<vmem>>, vector<1x128x64xbf16>,
    } else {
    }
    return
  }
  func.func @transform_0(%arg0: i32, %arg1: i32, %arg2: i32) -> (i32, i32, i32) {
    %c0_i32 = arith.constant 0 : i32
    %c0_i32_0 = arith.constant 0 : i32
    return %arg0, %arg2, %c0_i32 : i32, i32, i32
  }
  func.func @transform_1(%arg0: i32, %arg1: i32, %arg2: i32) -> (i32, i32) {
    %c0_i32 = arith.constant 0 : i32
    %c0_i32_0 = arith.constant 0 : i32
    %c0_i32_1 = arith.constant 0 : i32
    return %c0_i32, %c0_i32_0 : i32, i32
  }
  func.func @transform_2(%arg0: i32, %arg1: i32, %arg2: i32) -> (i32, i32) {
    %c0_i32 = arith.constant 0 : i32
    %c0_i32_0 = arith.constant 0 : i32
    %c0_i32_1 = arith.constant 0 : i32
    return %c0_i32, %c0_i32_0 : i32, i32
  }
  func.func @transform_3(%arg0: i32, %arg1: i32, %arg2: i32) -> (i32, i32) {
    %c0_i32 = arith.constant 0 : i32
    %c0_i32_0 = arith.constant 0 : i32
    %c0_i32_1 = arith.constant 0 : i32
    return %c0_i32, %c0_i32_0 : i32, i32
  }
  func.func @transform_4(%arg0: i32, %arg1: i32, %arg2: i32) -> (i32, i32) {
    %c0_i32 = arith.constant 0 : i32
    %c0_i32_0 = arith.constant 0 : i32
    %c0_i32_1 = arith.constant 0 : i32
    return %c0_i32, %c0_i32_0 : i32, i32
  }
  func.func @transform_5(%arg0: i32, %arg1: i32, %arg2: i32) -> (i32, i32) {
    %c0_i32 = arith.constant 0 : i32
    %c0_i32_0 = arith.constant 0 : i32
    %c0_i32_1 = arith.constant 0 : i32
    return %c0_i32, %c0_i32_0 : i32, i32
  }
  func.func @transform_6(%arg0: i32, %arg1: i32, %arg2: i32) -> (i32, i32) {
    %c0_i32 = arith.constant 0 : i32
    %c0_i32_0 = arith.constant 0 : i32
    %c0_i32_1 = arith.constant 0 : i32
    return %c0_i32, %c0_i32_0 : i32, i32
  }
  func.func @transform_7(%arg0: i32, %arg1: i32, %arg2: i32) -> (i32, i32) {
    %c0_i32 = arith.constant 0 : i32
    %c0_i32_0 = arith.constant 0 : i32
    %c0_i32_1 = arith.constant 0 : i32
    return %c0_i32, %c0_i32_0 : i32, i32
  }
  func.func @transform_8(%arg0: i32, %arg1: i32, %arg2: i32) -> (i32, i32) {
    %c0_i32 = arith.constant 0 : i32
    %c0_i32_0 = arith.constant 0 : i32
    %c0_i32_1 = arith.constant 0 : i32
    return %c0_i32, %c0_i32_0 : i32, i32
  }
  func.func @transform_9(%arg0: i32, %arg1: i32, %arg2: i32) -> (i32, i32) {
    %c0_i32 = arith.constant 0 : i32
    %c0_i32_0 = arith.constant 0 : i32
    %c0_i32_1 = arith.constant 0 : i32
    return %c0_i32, %c0_i32_0 : i32, i32
  }
  func.func @transform_10(%arg0: i32, %arg1: i32, %arg2: i32) -> (i32, i32, i32) {
    %0 = arith.muli %arg2, %arg1 : i32
    %c0_i32 = arith.constant 0 : i32
    %c0_i32_0 = arith.constant 0 : i32
    return %arg0, %0, %c0_i32 : i32, i32, i32
  }
}

</mosaic_0001>

<bundles_post_ra>
// kernel: tpu_custom_call.1
= control target key start
LH: loop header
LB: loop body
LE: loop exit
PB: predicated region body
PF: predicated region fallthrough
CT: control target
= control target key end

     0   :  { %s4176_s13 = smov 0   ;;  %s4178_s14 = smov 0   ;;  %s5361_s0 = inlined_call_operand.vmem [shape: f32[2,256,64], index: 0, kind: input, shape index: {}]   ;;  %s5362_s1 = inlined_call_operand.vmem [shape: bf16[64,64], index: 1, kind: input, shape index: {}]   ;;  %s5363_s2 = inlined_call_operand.vmem [shape: f32[1,64], index: 2, kind: input, shape index: {}]   ;;  %s5364_s3 = inlined_call_operand.vmem [shape: bf16[64,64], index: 3, kind: input, shape index: {}]   ;;  %s5365_s4 = inlined_call_operand.vmem [shape: f32[1,64], index: 4, kind: input, shape index: {}]   ;;  %s5366_s5 = inlined_call_operand.vmem [shape: bf16[64,64], index: 5, kind: input, shape index: {}]   ;;  %s5367_s6 = inlined_call_operand.vmem [shape: f32[1,64], index: 6, kind: input, shape index: {}]   ;;  %s5368_s7 = inlined_call_operand.vmem [shape: bf16[16,48], index: 7, kind: input, shape index: {}]   ;;  %s5369_s8 = inlined_call_operand.vmem [shape: bf16[64,64], index: 8, kind: input, shape index: {}]   ;;  %s5370_s9 = inlined_call_operand.vmem [shape: f32[1,64], index: 9, kind: input, shape index: {}]   ;;  %s5371_s10 = inlined_call_operand.vmem [shape: bf16[2,256,64], index: 10, kind: output, shape index: {}]  }
   0x1   :  { %s4180_s15 = smov 0   ;;  %s4182_s16 = smov 0  }
   0x2   :  { %s4184_s17 = smov 0   ;;  %s4186_s18 = smov 0  }
   0x3   :  { %s4188_s19 = smov 0  }
   0x4 LB: > { %s32_s20 = sadd.s32 1, %s4098_s16  ;;  %s35_s21 = sadd.s32 1, %s4102_s17  ;;  %s4110_s19 = sphi %s4188_s19, %s20_s19   ;;  %s4106_s18 = sphi %s4186_s18, %s5515_s18   ;;  %s4102_s17 = sphi %s4184_s17, %s5514_s17   ;;  %s4098_s16 = sphi %s4182_s16, %s5513_s16   ;;  %s4094_s15 = sphi %s4180_s15, %s5512_s15   ;;  %s4090_s14 = sphi %s4178_s14, %s5511_s14   ;;  %s4086_s13 = sphi %s4176_s13, %s5510_s13  }
   0x5   : > { %p33_p0 = scmp.ge.s32.totalorder %s32_s20, 2  ;;  %p3256_p1 = scmp.ge.s32.totalorder %s4110_s19, 1 }
   0x6   : > { %p342_p2 = scmp.lt.s32.totalorder %s4110_s19, 9  ;;  %s39_s22 = sadd.s32 1, %s4106_s18 }
   0x7   : > { %s5517_s20 = smov (%p33_p0, %s32_s20), 0  ;;  %s5519_s21 = smov (!%p33_p0, %s35_s21), %s4102_s17 }
   0x8   : > { %5416 = sst [smem:[#allocation5_spill]] %s5517_s20  ;;  %p343_p3 = pnand %p3256_p1, %p342_p2 }
   0x9   : > { %p37_p4 = scmp.ge.s32.totalorder %s5519_s21, 2 }
   0xa   : > { %346 = sbr.rel (%p343_p3) target bundleno = 5142 (0x1416), region = 60 }
   0xb   : > { %s5521_s21 = smov (%p37_p4, %s5519_s21), 0  ;;  %s5523_s22 = smov (!%p37_p4, %s39_s22), %s4106_s18 }
   0xc   : > { %5417 = sst [smem:[#allocation6_spill]] %s5521_s21  ;;  %p41_p5 = scmp.ge.s32.totalorder %s5523_s22, 2 }
   0xe   : > { %s5525_s22 = smov (%p41_p5, %s5523_s22), 0 }
   0xf   : > { %5418 = sst [smem:[#allocation7_spill]] %s5525_s22 }
  0x11   : > { %v3735_v0 = vld [vmem:[%s5362_s1] sm:$0xff]   ;;  %s3257_s25 = sshll.u32 %s4086_s13, 4  ;;  %v3736_v1 = vld [vmem:[%s5362_s1 + $0x8] sm:$0xff]   ;;  %p390_p6 = scmp.lt.s32.totalorder %s4094_s15, 1  ;;  %v3737_v2 = vld [vmem:[%s5362_s1 + $0x10] sm:$0xff]   ;;  %vm475_vm0 = vcmask 523264  }
  0x12   : > { %s399_s28 = smul.u32 %s4086_s13, %s4090_s14  ;;  %3460 = vmatprep.subr.bf16.mxu0 %v3735_v0  ;;  %p392_p7 = scmp.lt.s32.totalorder %s3257_s25, 31  ;;  %v3739_v3 = vld [vmem:[%s5366_s5] sm:$0xff]   ;;  %v3740_v4 = vld [vmem:[%s5366_s5 + $0x8] sm:$0xff]   ;;  %v3738_v5 = vld [vmem:[%s5362_s1 + $0x18] sm:$0xff]   ;;  %vm942_vm1 = vcmask 261248   ;;  %vm765_vm2 = vcmask 130048  }
  0x13   : > { %3461 = vmatpush3.bf16.msra.mxu0 %v3735_v0  ;;  %s5527_s15 = smov (!%p390_p6, %s4094_s15), 1  ;;  %3484 = vmatprep.subr.bf16.mxu1 %v3739_v3  ;;  %v3741_v30 = vld [vmem:[%s5366_s5 + $0x10] sm:$0xff]   ;;  %v3742_v31 = vld [vmem:[%s5366_s5 + $0x18] sm:$0xff]   ;;  %v3263_v33 = vld [vmem:[%s5363_s2] ss:$0 sm:$0xff]  ;;  %vm1183_vm3 = vcmask 392448  }
  0x14   : > { %3462 = vmatprep.subr.bf16.mxu0 %v3736_v1  ;;  %s5529_s25 = smov (!%p392_p7, %s3257_s25), 31  ;;  %s3258_s11 = sshll.u32 %s5527_s15, 5  ;;  %3485 = vmatpush3.bf16.msra.mxu1 %v3739_v3  ;;  %vm1424_vm4 = vcmask 523648   ;;  %vm1681_vm5 = vcmask 261120   ;;  %vm1698_vm6 = vcmask 392192  }
  0x15   : > { %s3260_s12 = sshll.u32 %s399_s28, 4  ;;  %s395_s22 = sadd.s32 %s3258_s11, %s5529_s25  ;;  %3486 = vmatprep.subr.bf16.mxu1 %v3740_v4 }
  0x16   : > { %p403_p8 = scmp.lt.s32.totalorder %s3260_s12, 31  ;;  %s3259_s21 = sshll.u32 %s395_s22, 3 }
  0x17   : > { %3463 = vmatpush3.bf16.msra.mxu0 %v3736_v1  ;;  %s4246_s30 = scalar_lea.vmem %s5361_s0, %s3259_s21  ;;  %p3289_p9 = scmp.ne.s32.totalorder %s4090_s14, 0 }
  0x18   : > { %3464 = vmatprep.subr.bf16.mxu0 %v3737_v2  ;;  %s5531_s12 = smov (!%p403_p8, %s3260_s12), 31  ;;  %v412_v6 = vld [vmem:[%s4246_s30] sm:$0xff]  ;;  %v413_v7 = vld [vmem:[%s4246_s30 + $0x8] sm:$0xff]  ;;  %v414_v9 = vld [vmem:[%s4246_s30 + $0x10] sm:$0xff]  ;;  %3487 = vmatpush3.bf16.msra.mxu1 %v3740_v4  ;;  %p3290_p10 = scmp.ne.s32.totalorder (!%p3289_p9), %s4086_s13, 0 }
  0x19   : > { %v4250_v8 = vpack.c.bf16 %v413_v7, %v412_v6  ;;  %s406_s20 = sadd.s32 %s3258_s11, %s5531_s12  ;;  %v415_v10 = vld [vmem:[%s4246_s30 + $0x18] sm:$0xff]  ;;  %v416_v11 = vld [vmem:[%s4246_s30 + $0x20] sm:$0xff]  ;;  %v417_v12 = vld [vmem:[%s4246_s30 + $0x28] sm:$0xff]  ;;  %3488 = vmatprep.subr.bf16.mxu1 %v3741_v30 }
  0x1a   : > { %s3262_s21 = sshll.u32 %s406_s20, 2  ;;  %v4263_v13 = vpack.c.bf16 %v415_v10, %v414_v9  ;;  %v4265_v14 = vpack.c.bf16 %v417_v12, %v416_v11  ;;  %v418_v15 = vld [vmem:[%s4246_s30 + $0x30] sm:$0xff]  ;;  %v419_v16 = vld [vmem:[%s4246_s30 + $0x38] sm:$0xff]  ;;  %v420_v17 = vld [vmem:[%s4246_s30 + $0x40] sm:$0xff]  ;;  %s4113_s20 = smov 96  }
  0x1b   : > { %5419 = vst [vmem:[#allocation8_spill] sm:$0xff] %v4250_v8  ;;  %3465 = vmatpush3.bf16.msra.mxu0 %v3737_v2  ;;  %3468 = vmatprep.mubr.msk.bf16.mxu0 %vm475_vm0, %v4250_v8  ;;  %s4261_s23 = scalar_lea.vmem %s5371_s10, %s3262_s21  ;;  %v421_v18 = vld [vmem:[%s4246_s30 + $0x48] sm:$0xff]  ;;  %v4275_v19 = vpack.c.bf16 %v419_v16, %v418_v15  ;;  %v422_v21 = vld [vmem:[%s4246_s30 + $0x50] sm:$0xff]  ;;  %v423_v22 = vld [vmem:[%s4246_s30 + $0x58] sm:$0xff]  ;;  %s4114_s21 = smov 80  }
  0x1c   : > { %3466 = vmatprep.subr.bf16.mxu0 %v3738_v5  ;;  %5420 = vst [vmem:[#allocation9_spill] sm:$0xff] %v4263_v13  ;;  %5421 = vst [vmem:[#allocation10_spill] sm:$0xff] %v4265_v14  ;;  %v4277_v20 = vpack.c.bf16 %v421_v18, %v420_v17  ;;  %v424_v23 = vld [vmem:[%s4246_s30 + $0x60] sm:$0xff]  ;;  %v425_v24 = vld [vmem:[%s4246_s30 + $0x68] sm:$0xff]  ;;  %v4287_v25 = vpack.c.bf16 %v423_v22, %v422_v21  ;;  %3489 = vmatpush3.bf16.msra.mxu1 %v3741_v30 }
  0x1d   : > { %5422 = vst [vmem:[#allocation11_spill] sm:$0xff] %v4275_v19  ;;  %v4289_v26 = vpack.c.bf16 %v425_v24, %v424_v23  ;;  %v426_v27 = vld [vmem:[%s4246_s30 + $0x70] sm:$0xff]  ;;  %v427_v28 = vld [vmem:[%s4246_s30 + $0x78] sm:$0xff]  ;;  %3490 = vmatprep.subr.bf16.mxu1 %v3742_v31  ;;  %v4321_v10 = vld [vmem:[%s5367_s6] ss:$0 sm:$0xff]  ;;  %s4112_s30 = smov 112  }
  0x1e   : > { %5423 = vst [vmem:[#allocation12_spill] sm:$0xff] %v4277_v20  ;;  %5424 = vst [vmem:[#allocation13_spill] sm:$0xff] %v4287_v25  ;;  %v4297_v29 = vpack.c.bf16 %v427_v28, %v426_v27 }
  0x1f   : > { %3467 = vmatpush3.bf16.msra.mxu0 %v3738_v5  ;;  %5425 = vst [vmem:[#allocation14_spill] sm:$0xff] %v4289_v26 }
  0x20   : > { %5426 = vst [vmem:[#allocation15_spill] sm:$0xff] %v4297_v29  ;;  %3491 = vmatpush3.bf16.msra.mxu1 %v3742_v31 }
  0x22   : > { %3469 = vmatmul.mubr.msk.bf16.vlgmr.msra.gmra.mrb[0].mxu0 %vm475_vm0, %v4263_v13 }
  0x23   : > { %3472 = vmatprep.mubr.msk.bf16.mxu0 %vm475_vm0, %v4265_v14 }
  0x2a   : > { %3473 = vmatmul.mubr.msk.bf16.gmra.mrb[4].mxu0 %vm475_vm0, %v4275_v19 }
  0x2b   : > { %3476 = vmatprep.mubr.msk.bf16.mxu0 %vm475_vm0, %v4277_v20 }
  0x32   : > { %3477 = vmatmul.mubr.msk.bf16.gmra.mrb[8].mxu0 %vm475_vm0, %v4287_v25 }
  0x33   : > { %3480 = vmatprep.mubr.msk.bf16.mxu0 %vm475_vm0, %v4289_v26 }
  0x3a   : > { %3481 = vmatmul.mubr.msk.bf16.gmra.mrb[12].mxu0 %vm475_vm0, %v4297_v29 }
  0xf5   : > { %v3470_v32 = vpop.f32.mrb[0].mxu0 }
  0xf6   : > { %v534_v34 = vpop.f32.mrb[1].mxu0  ;;  %v543_v36 = vadd.f32 %v3470_v32, %v3263_v33 }
  0xf7   : > { %v3471_v35 = vpop.f32.mrb[2].mxu0  ;;  %v535_v39 = vadd.f32 %v3263_v33, %v534_v34 }
  0xf8   : > { %v546_v37 = vadd.f32 %v3471_v35, %v3263_v33  ;;  %v537_v38 = vpop.f32.mrb[3].mxu0 }
  0xf9   : > { %v538_v40 = vadd.f32 %v3263_v33, %v537_v38 }
  0xfa   : > { %v598_v41 = vpack.c.bf16 %v546_v37, %v543_v36 }
  0xfb   : > { %v597_v42 = vpack.c.bf16 %v538_v40, %v535_v39 }
  0xfd   : > { %3492 = vmatprep.mubr.msk.bf16.mxu1 %vm475_vm0, %v597_v42  ;;  %v3474_v43 = vpop.f32.mrb[4].mxu0 }
  0xfe   : > { %3493 = vmatmul.mubr.msk.bf16.vlgmr.msra.gmra.mrb[0].mxu1 %vm475_vm0, %v598_v41  ;;  %v559_v44 = vadd.f32 %v3474_v43, %v3263_v33  ;;  %v550_v45 = vpop.f32.mrb[5].mxu0 }
  0xff   : > { %v551_v46 = vadd.f32 %v3263_v33, %v550_v45  ;;  %v3475_v47 = vpop.f32.mrb[6].mxu0 }
 0x100   : > { %v562_v48 = vadd.f32 %v3475_v47, %v3263_v33  ;;  %v553_v49 = vpop.f32.mrb[7].mxu0 }
 0x101   : > { %v554_v50 = vadd.f32 %v3263_v33, %v553_v49 }
 0x102   : > { %v600_v51 = vpack.c.bf16 %v562_v48, %v559_v44 }
 0x103   : > { %v599_v52 = vpack.c.bf16 %v554_v50, %v551_v46 }
 0x105   : > { %3496 = vmatprep.mubr.msk.bf16.mxu1 %vm475_vm0, %v599_v52  ;;  %v3478_v53 = vpop.f32.mrb[8].mxu0 }
 0x106   : > { %3497 = vmatmul.mubr.msk.bf16.gmra.mrb[4].mxu1 %vm475_vm0, %v600_v51  ;;  %v575_v54 = vadd.f32 %v3478_v53, %v3263_v33  ;;  %v566_v55 = vpop.f32.mrb[9].mxu0 }
 0x107   : > { %v567_v56 = vadd.f32 %v3263_v33, %v566_v55  ;;  %v3479_v57 = vpop.f32.mrb[10].mxu0 }
 0x108   : > { %v578_v58 = vadd.f32 %v3479_v57, %v3263_v33  ;;  %v569_v59 = vpop.f32.mrb[11].mxu0 }
 0x109   : > { %v570_v60 = vadd.f32 %v3263_v33, %v569_v59 }
 0x10a   : > { %v602_v61 = vpack.c.bf16 %v578_v58, %v575_v54 }
 0x10b   : > { %v601_v62 = vpack.c.bf16 %v570_v60, %v567_v56 }
 0x10d   : > { %3500 = vmatprep.mubr.msk.bf16.mxu1 %vm475_vm0, %v601_v62  ;;  %v3482_v63 = vpop.f32.mrb[12].mxu0 }
 0x10e   : > { %3501 = vmatmul.mubr.msk.bf16.gmra.mrb[8].mxu1 %vm475_vm0, %v602_v61  ;;  %v591_v0 = vadd.f32 %v3482_v63, %v3263_v33  ;;  %v582_v1 = vpop.f32.mrb[13].mxu0 }
 0x10f   : > { %v583_v2 = vadd.f32 %v3263_v33, %v582_v1  ;;  %v3483_v3 = vpop.f32.mrb[14].mxu0 }
 0x110   : > { %v594_v4 = vadd.f32 %v3483_v3, %v3263_v33  ;;  %v585_v5 = vpop.f32.mrb[15].mxu0 }
 0x111   : > { %v586_v6 = vadd.f32 %v3263_v33, %v585_v5 }
 0x112   : > { %v604_v7 = vpack.c.bf16 %v594_v4, %v591_v0 }
 0x113   : > { %v603_v9 = vpack.c.bf16 %v586_v6, %v583_v2 }
 0x115   : > { %3504 = vmatprep.mubr.msk.bf16.mxu1 %vm475_vm0, %v603_v9 }
 0x116   : > { %3505 = vmatmul.mubr.msk.bf16.gmra.mrb[12].mxu1 %vm475_vm0, %v604_v7 }
 0x1d1   : > { %v3494_v11 = vpop.f32.mrb[0].mxu1 }
 0x1d2   : > { %v4324_v12 = vadd.f32 %v3494_v11, %v4321_v10  ;;  %v702_v15 = vpop.f32.mrb[1].mxu1 }
 0x1d3   : > { %v3495_v16 = vpop.f32.mrb[2].mxu1  ;;  %v4338_v31 = vadd.f32 %v4321_v10, %v702_v15 }
 0x1d4   : > { %v4327_v17 = vadd.f32 %v3495_v16, %v4321_v10  ;;  %v705_v18 = vpop.f32.mrb[3].mxu1  ;;  %v949_v21 = vsel %vm942_vm1, %v4324_v12, -inf  ;;  %v772_v22 = vsel %vm765_vm2, %v4324_v12, -inf  ;;  %v1190_v23 = vsel %vm1183_vm3, %v4324_v12, -inf }
 0x1d5   : > { %950 = vmax.xlane.f32.xlu0 %v949_v21  ;;  %773 = vmax.xlane.f32.xlu1 %v772_v22  ;;  %v1431_v32 = vsel %vm1424_vm4, %v4324_v12, -inf  ;;  %v766_v36 = vsel %vm765_vm2, %v4338_v31, -inf  ;;  %v4355_v42 = vadd.f32 %v4321_v10, %v705_v18  ;;  %v943_v44 = vsel %vm942_vm1, %v4338_v31, -inf }
 0x1d6   : > { %v775_v24 = vsel %vm765_vm2, %v4327_v17, -inf  ;;  %v952_v33 = vsel %vm942_vm1, %v4327_v17, -inf  ;;  %v1193_v35 = vsel %vm1183_vm3, %v4327_v17, -inf  ;;  %v1434_v43 = vsel %vm1424_vm4, %v4327_v17, -inf }
 0x1d7   : > { %v946_v48 = vsel %vm942_vm1, %v4355_v42, -inf  ;;  %v1184_v49 = vsel %vm1183_vm3, %v4338_v31, -inf  ;;  %v1187_v55 = vsel %vm1183_vm3, %v4355_v42, -inf  ;;  %v1425_v56 = vsel %vm1424_vm4, %v4338_v31, -inf }
 0x1d8   : > { %v1428_v62 = vsel %vm1424_vm4, %v4355_v42, -inf  ;;  %v769_v63 = vsel %vm765_vm2, %v4355_v42, -inf }
 0x1d9   : > { %1191 = vmax.xlane.f32.xlu0 %v1190_v23  ;;  %776 = vmax.xlane.f32.xlu1 %v775_v24  ;;  %v3498_v27 = vpop.f32.mrb[4].mxu1 }
 0x1da   : > { %v718_v28 = vpop.f32.mrb[5].mxu1  ;;  %v4388_v60 = vadd.f32 %v3498_v27, %v4321_v10 }
 0x1db   : > { %v3499_v30 = vpop.f32.mrb[6].mxu1  ;;  %v4410_v6 = vadd.f32 %v4321_v10, %v718_v28 }
 0x1dc   : > { %v721_v34 = vpop.f32.mrb[7].mxu1  ;;  %v4391_v61 = vadd.f32 %v3499_v30, %v4321_v10  ;;  %v784_v1 = vsel %vm765_vm2, %v4388_v60, -inf  ;;  %v961_v3 = vsel %vm942_vm1, %v4388_v60, -inf  ;;  %v1202_v5 = vsel %vm1183_vm3, %v4388_v60, -inf }
 0x1dd   : > { %1432 = vmax.xlane.f32.xlu0 %v1431_v32  ;;  %953 = vmax.xlane.f32.xlu1 %v952_v33  ;;  %v4413_v7 = vadd.f32 %v4321_v10, %v721_v34  ;;  %v1443_v11 = vsel %vm1424_vm4, %v4388_v60, -inf  ;;  %v778_v16 = vsel %vm765_vm2, %v4410_v6, -inf  ;;  %v955_v18 = vsel %vm942_vm1, %v4410_v6, -inf }
 0x1de   : > { %v787_v0 = vsel %vm765_vm2, %v4391_v61, -inf  ;;  %v964_v2 = vsel %vm942_vm1, %v4391_v61, -inf  ;;  %v1205_v4 = vsel %vm1183_vm3, %v4391_v61, -inf  ;;  %v1446_v9 = vsel %vm1424_vm4, %v4391_v61, -inf }
 0x1df   : > { %v781_v15 = vsel %vm765_vm2, %v4413_v7, -inf  ;;  %v1199_v21 = vsel %vm1183_vm3, %v4413_v7, -inf  ;;  %v1196_v22 = vsel %vm1183_vm3, %v4410_v6, -inf  ;;  %v1440_v23 = vsel %vm1424_vm4, %v4413_v7, -inf }
 0x1e0   : > { %v1437_v24 = vsel %vm1424_vm4, %v4410_v6, -inf }
 0x1e1   : > { %1194 = vmax.xlane.f32.xlu1 %v1193_v35  ;;  %767 = vmax.xlane.f32.xlu0 %v766_v36  ;;  %v3502_v37 = vpop.f32.mrb[8].mxu1 }
 0x1e2   : > { %v4349_v38 = vadd.f32 %v3502_v37, %v4321_v10  ;;  %v734_v39 = vpop.f32.mrb[9].mxu1 }
 0x1e3   : > { %v4352_v40 = vadd.f32 %v4321_v10, %v734_v39  ;;  %v3503_v41 = vpop.f32.mrb[10].mxu1 }
 0x1e4   : > { %v4362_v45 = vadd.f32 %v3503_v41, %v4321_v10  ;;  %v737_v46 = vpop.f32.mrb[11].mxu1  ;;  %v796_v28 = vsel %vm765_vm2, %v4349_v38, -inf  ;;  %v973_v32 = vsel %vm942_vm1, %v4349_v38, -inf  ;;  %v1214_v34 = vsel %vm1183_vm3, %v4349_v38, -inf }
 0x1e5   : > { %1435 = vmax.xlane.f32.xlu1 %v1434_v43  ;;  %944 = vmax.xlane.f32.xlu0 %v943_v44  ;;  %v4365_v47 = vadd.f32 %v4321_v10, %v737_v46  ;;  %v1455_v36 = vsel %vm1424_vm4, %v4349_v38, -inf  ;;  %v790_v39 = vsel %vm765_vm2, %v4352_v40, -inf  ;;  %v967_v43 = vsel %vm942_vm1, %v4352_v40, -inf }
 0x1e6   : > { %v799_v27 = vsel %vm765_vm2, %v4362_v45, -inf  ;;  %v976_v30 = vsel %vm942_vm1, %v4362_v45, -inf  ;;  %v1217_v33 = vsel %vm1183_vm3, %v4362_v45, -inf  ;;  %v1458_v35 = vsel %vm1424_vm4, %v4362_v45, -inf }
 0x1e7   : > { %v793_v37 = vsel %vm765_vm2, %v4365_v47, -inf  ;;  %v970_v41 = vsel %vm942_vm1, %v4365_v47, -inf  ;;  %v1211_v44 = vsel %vm1183_vm3, %v4365_v47, -inf  ;;  %v1208_v46 = vsel %vm1183_vm3, %v4352_v40, -inf }
 0x1e9   : > { %947 = vmax.xlane.f32.xlu1 %v946_v48  ;;  %1185 = vmax.xlane.f32.xlu0 %v1184_v49  ;;  %v3506_v50 = vpop.f32.mrb[12].mxu1  ;;  %v1452_v48 = vsel %vm1424_vm4, %v4365_v47, -inf  ;;  %v1449_v49 = vsel %vm1424_vm4, %v4352_v40, -inf }
 0x1ea   : > { %v4372_v51 = vadd.f32 %v3506_v50, %v4321_v10  ;;  %v750_v52 = vpop.f32.mrb[13].mxu1 }
 0x1eb   : > { %v4375_v53 = vadd.f32 %v4321_v10, %v750_v52  ;;  %v3507_v54 = vpop.f32.mrb[14].mxu1 }
 0x1ec   : > { %v4382_v57 = vadd.f32 %v3507_v54, %v4321_v10  ;;  %v753_v58 = vpop.f32.mrb[15].mxu1  ;;  %v808_v52 = vsel %vm765_vm2, %v4372_v51, -inf }
 0x1ed   : > { %1188 = vmax.xlane.f32.xlu1 %v1187_v55  ;;  %1426 = vmax.xlane.f32.xlu0 %v1425_v56  ;;  %v4385_v59 = vadd.f32 %v4321_v10, %v753_v58  ;;  %v958_v10 = vsel %vm942_vm1, %v4413_v7, -inf  ;;  %v985_v55 = vsel %vm942_vm1, %v4372_v51, -inf  ;;  %v1226_v58 = vsel %vm1183_vm3, %v4372_v51, -inf }
 0x1ee   : > { %v811_v50 = vsel %vm765_vm2, %v4382_v57, -inf  ;;  %v988_v54 = vsel %vm942_vm1, %v4382_v57, -inf  ;;  %v1229_v56 = vsel %vm1183_vm3, %v4382_v57, -inf }
 0x1f1   : > { %1429 = vmax.xlane.f32.xlu1 %v1428_v62  ;;  %770 = vmax.xlane.f32.xlu0 %v769_v63  ;;  %v1470_v62 = vsel %vm1424_vm4, %v4382_v57, -inf  ;;  %v1467_v63 = vsel %vm1424_vm4, %v4372_v51, -inf }
 0x1f5   : > { %788 = vmax.xlane.f32.xlu1 %v787_v0  ;;  %785 = vmax.xlane.f32.xlu0 %v784_v1  ;;  %v805_v0 = vsel %vm765_vm2, %v4385_v59, -inf  ;;  %v802_v1 = vsel %vm765_vm2, %v4375_v53, -inf }
 0x1f9   : > { %965 = vmax.xlane.f32.xlu1 %v964_v2  ;;  %962 = vmax.xlane.f32.xlu0 %v961_v3  ;;  %v982_v2 = vsel %vm942_vm1, %v4385_v59, -inf  ;;  %v979_v3 = vsel %vm942_vm1, %v4375_v53, -inf }
 0x1fd   : > { %1206 = vmax.xlane.f32.xlu1 %v1205_v4  ;;  %1203 = vmax.xlane.f32.xlu0 %v1202_v5  ;;  %v1223_v4 = vsel %vm1183_vm3, %v4385_v59, -inf  ;;  %v1220_v5 = vsel %vm1183_vm3, %v4375_v53, -inf }
 0x201   : > { %1447 = vmax.xlane.f32.xlu1 %v1446_v9  ;;  %1444 = vmax.xlane.f32.xlu0 %v1443_v11  ;;  %v1464_v9 = vsel %vm1424_vm4, %v4385_v59, -inf  ;;  %v1461_v11 = vsel %vm1424_vm4, %v4375_v53, -inf }
 0x205   : > { %782 = vmax.xlane.f32.xlu1 %v781_v15  ;;  %779 = vmax.xlane.f32.xlu0 %v778_v16 }
 0x209   : > { %959 = vmax.xlane.f32.xlu1 %v958_v10  ;;  %956 = vmax.xlane.f32.xlu0 %v955_v18 }
 0x20d   : > { %1200 = vmax.xlane.f32.xlu1 %v1199_v21  ;;  %1197 = vmax.xlane.f32.xlu0 %v1196_v22 }
 0x211   : > { %1441 = vmax.xlane.f32.xlu1 %v1440_v23  ;;  %1438 = vmax.xlane.f32.xlu0 %v1437_v24 }
 0x215   : > { %800 = vmax.xlane.f32.xlu1 %v799_v27  ;;  %797 = vmax.xlane.f32.xlu0 %v796_v28 }
 0x219   : > { %977 = vmax.xlane.f32.xlu1 %v976_v30  ;;  %974 = vmax.xlane.f32.xlu0 %v973_v32 }
 0x21d   : > { %1218 = vmax.xlane.f32.xlu1 %v1217_v33  ;;  %1215 = vmax.xlane.f32.xlu0 %v1214_v34 }
 0x221   : > { %1459 = vmax.xlane.f32.xlu1 %v1458_v35  ;;  %1456 = vmax.xlane.f32.xlu0 %v1455_v36 }
 0x225   : > { %794 = vmax.xlane.f32.xlu1 %v793_v37  ;;  %791 = vmax.xlane.f32.xlu0 %v790_v39 }
 0x229   : > { %971 = vmax.xlane.f32.xlu1 %v970_v41  ;;  %968 = vmax.xlane.f32.xlu0 %v967_v43 }
 0x22d   : > { %1212 = vmax.xlane.f32.xlu1 %v1211_v44  ;;  %1209 = vmax.xlane.f32.xlu0 %v1208_v46 }
 0x231   : > { %1453 = vmax.xlane.f32.xlu1 %v1452_v48  ;;  %1450 = vmax.xlane.f32.xlu0 %v1449_v49 }
 0x235   : > { %812 = vmax.xlane.f32.xlu1 %v811_v50  ;;  %809 = vmax.xlane.f32.xlu0 %v808_v52 }
 0x239   : > { %989 = vmax.xlane.f32.xlu1 %v988_v54  ;;  %986 = vmax.xlane.f32.xlu0 %v985_v55 }
 0x23d   : > { %1230 = vmax.xlane.f32.xlu1 %v1229_v56  ;;  %1227 = vmax.xlane.f32.xlu0 %v1226_v58 }
 0x241   : > { %1471 = vmax.xlane.f32.xlu1 %v1470_v62  ;;  %1468 = vmax.xlane.f32.xlu0 %v1467_v63 }
 0x245   : > { %806 = vmax.xlane.f32.xlu1 %v805_v0  ;;  %803 = vmax.xlane.f32.xlu0 %v802_v1 }
 0x249   : > { %983 = vmax.xlane.f32.xlu1 %v982_v2  ;;  %980 = vmax.xlane.f32.xlu0 %v979_v3 }
 0x24d   : > { %1224 = vmax.xlane.f32.xlu1 %v1223_v4  ;;  %1221 = vmax.xlane.f32.xlu0 %v1220_v5 }
 0x251   : > { %1465 = vmax.xlane.f32.xlu1 %v1464_v9  ;;  %1462 = vmax.xlane.f32.xlu0 %v1461_v11 }
 0x262   : > { %v951_v15 = vpop.xlane.xlu0 %950  ;;  %v774_v16 = vpop.xlane.xlu1 %773 }
 0x263   : > { %v993_v10 = vsub.f32 %v4324_v12, %v951_v15  ;;  %v816_v54 = vsub.f32 %v4324_v12, %v774_v16 }
 0x265   : > { %v1011_v18 = vmul.f32 1.442695, %v993_v10  ;;  %v834_v55 = vmul.f32 1.442695, %v816_v54 }
 0x266   : > { %v1192_v21 = vpop.xlane.xlu0 %1191  ;;  %v777_v22 = vpop.xlane.xlu1 %776 }
 0x267   : > { %3743 = vpow2.f32 %v1011_v18  ;;  %v1234_v23 = vsub.f32 %v4324_v12, %v1192_v21  ;;  %v817_v58 = vsub.f32 %v4327_v17, %v777_v22 }
 0x269   : > { %v1252_v24 = vmul.f32 1.442695, %v1234_v23  ;;  %v836_v63 = vmul.f32 1.442695, %v817_v58 }
 0x26a   : > { %v1433_v27 = vpop.xlane.xlu0 %1432  ;;  %v954_v28 = vpop.xlane.xlu1 %953 }
 0x26b   : > { %3745 = vpow2.f32 %v1252_v24  ;;  %v1475_v30 = vsub.f32 %v4324_v12, %v1433_v27  ;;  %v994_v32 = vsub.f32 %v4327_v17, %v954_v28 }
 0x26d   : > { %v1493_v33 = vmul.f32 1.442695, %v1475_v30  ;;  %v1013_v34 = vmul.f32 1.442695, %v994_v32 }
 0x26e   : > { %v1195_v35 = vpop.xlane.xlu1 %1194  ;;  %v768_v56 = vpop.xlane.xlu0 %767 }
 0x26f   : > { %3747 = vpow2.f32 %v1493_v33  ;;  %v1235_v36 = vsub.f32 %v4327_v17, %v1195_v35 }
 0x270   : > { %3749 = vpow2.f32 %v1013_v34 }
 0x271   : > { %v4504_v37 = vpop.eup %3743  ;;  %v1254_v39 = vmul.f32 1.442695, %v1235_v36 }
 0x272   : > { %v1436_v41 = vpop.xlane.xlu1 %1435  ;;  %1059 = vrot.lane.b32.xlu1 %v4504_v37, %s4112_s30  ;;  %v945_v0 = vpop.xlane.xlu0 %944 }
 0x273   : > { %3751 = vpow2.f32 %v1254_v39  ;;  %v1476_v43 = vsub.f32 %v4327_v17, %v1436_v41  ;;  %v991_v12 = vsub.f32 %v4338_v31, %v945_v0  ;;  %v814_v41 = vsub.f32 %v4338_v31, %v768_v56 }
 0x275   : > { %v4509_v44 = vpop.eup %3745  ;;  %v1495_v46 = vmul.f32 1.442695, %v1476_v43  ;;  %v1007_v4 = vmul.f32 1.442695, %v991_v12  ;;  %v830_v43 = vmul.f32 1.442695, %v814_v41 }
 0x276   : > { %1300 = vrot.lane.b32.xlu1 %v4509_v44, %s4113_s20  ;;  %v1186_v2 = vpop.xlane.xlu0 %1185  ;;  %v948_v3 = vpop.xlane.xlu1 %947 }
 0x277   : > { %3753 = vpow2.f32 %v1495_v46  ;;  %v1232_v5 = vsub.f32 %v4338_v31, %v1186_v2  ;;  %v992_v10 = vsub.f32 %v4355_v42, %v948_v3 }
 0x278   : > { %3755 = vpow2.f32 %v834_v55 }
 0x279   : > { %v4513_v48 = vpop.eup %3747  ;;  %3757 = vpow2.f32 %v836_v63  ;;  %v1248_v17 = vmul.f32 1.442695, %v1232_v5  ;;  %v1009_v22 = vmul.f32 1.442695, %v992_v10 }
 0x27a   : > { %v4515_v49 = vpop.eup %3749  ;;  %1541 = vrot.lane.b32.xlu0 %v4513_v48, %s4114_s21  ;;  %v1427_v9 = vpop.xlane.xlu0 %1426  ;;  %3759 = vpow2.f32 %v1007_v4 }
 0x27b   : > { %1061 = vrot.lane.b32.xlu1 %v4515_v49, %s4112_s30  ;;  %v1189_v15 = vpop.xlane.xlu1 %1188  ;;  %v1473_v16 = vsub.f32 %v4338_v31, %v1427_v9  ;;  %3761 = vpow2.f32 %v1248_v17 }
 0x27c   : > { %v1233_v23 = vsub.f32 %v4355_v42, %v1189_v15 }
 0x27d   : > { %v4521_v50 = vpop.eup %3751  ;;  %v1489_v21 = vmul.f32 1.442695, %v1473_v16 }
 0x27e   : > { %v1250_v27 = vmul.f32 1.442695, %v1233_v23  ;;  %v771_v46 = vpop.xlane.xlu0 %770 }
 0x27f   : > { %1302 = vrot.lane.b32.xlu1 %v4521_v50, %s4113_s20  ;;  %v1430_v24 = vpop.xlane.xlu1 %1429  ;;  %3763 = vpow2.f32 %v1489_v21  ;;  %v815_v55 = vsub.f32 %v4355_v42, %v771_v46 }
 0x280   : > { %3765 = vpow2.f32 %v1009_v22  ;;  %v1474_v28 = vsub.f32 %v4355_v42, %v1430_v24 }
 0x281   : > { %v4525_v52 = vpop.eup %3753  ;;  %3767 = vpow2.f32 %v1250_v27  ;;  %v832_v63 = vmul.f32 1.442695, %v815_v55 }
 0x282   : > { %v4531_v62 = vpop.eup %3755  ;;  %v1491_v32 = vmul.f32 1.442695, %v1474_v28  ;;  %v786_v54 = vpop.xlane.xlu0 %785 }
 0x283   : > { %1543 = vrot.lane.b32.xlu1 %v4525_v52, %s4114_s21  ;;  %v868_v1 = vsel %vm765_vm2, %v4531_v62, 0.0  ;;  %v4537_v11 = vpop.eup %3757 }
 0x284   : > { %v871_v18 = vsel %vm765_vm2, %v4537_v11, 0.0  ;;  %v4545_v30 = vpop.eup %3759  ;;  %3769 = vpow2.f32 %v1491_v32 }
 0x285   : > { %v4549_v33 = vpop.eup %3761  ;;  %3771 = vpow2.f32 %v830_v43 }
 0x286   : > { %v963_v0 = vpop.xlane.xlu0 %962  ;;  %3773 = vpow2.f32 %v832_v63 }
 0x287   : > { %v997_v56 = vsub.f32 %v4388_v60, %v963_v0  ;;  %v820_v0 = vsub.f32 %v4388_v60, %v786_v54 }
 0x289   : > { %v4553_v34 = vpop.eup %3763  ;;  %v1019_v3 = vmul.f32 1.442695, %v997_v56 }
 0x28a   : > { %v4555_v35 = vpop.eup %3765  ;;  %v1204_v31 = vpop.xlane.xlu0 %1203 }
 0x28b   : > { %v4561_v36 = vpop.eup %3767  ;;  %v1238_v4 = vsub.f32 %v4388_v60, %v1204_v31  ;;  %3775 = vpow2.f32 %v1019_v3 }
 0x28d   : > { %v1260_v17 = vmul.f32 1.442695, %v1238_v4 }
 0x28e   : > { %v4565_v39 = vpop.eup %3769  ;;  %v1445_v5 = vpop.xlane.xlu0 %1444 }
 0x28f   : > { %v4571_v58 = vpop.eup %3771  ;;  %v1479_v15 = vsub.f32 %v4388_v60, %v1445_v5  ;;  %3777 = vpow2.f32 %v1260_v17 }
 0x290   : > { %v862_v2 = vsel %vm765_vm2, %v4571_v58, 0.0  ;;  %v4577_v9 = vpop.eup %3773 }
 0x291   : > { %v865_v10 = vsel %vm765_vm2, %v4577_v9, 0.0 }
 0x292   : > { %v780_v31 = vpop.xlane.xlu0 %779 }
 0x295   : > { %v4585_v28 = vpop.eup %3775 }
 0x296   : > { %v957_v4 = vpop.xlane.xlu0 %956 }
 0x297   : > { %v995_v60 = vsub.f32 %v4410_v6, %v957_v4 }
 0x299   : > { %869 = vadd.xlane.f32.xlu0 %v868_v1  ;;  %v789_v1 = vpop.xlane.xlu1 %788  ;;  %v4589_v41 = vpop.eup %3777 }
 0x29a   : > { %v821_v56 = vsub.f32 %v4391_v61, %v789_v1  ;;  %v1198_v17 = vpop.xlane.xlu0 %1197 }
 0x29c   : > { %v844_v3 = vmul.f32 1.442695, %v821_v56 }
 0x29d   : > { %v966_v12 = vpop.xlane.xlu1 %965 }
 0x29e   : > { %v998_v16 = vsub.f32 %v4391_v61, %v966_v12 }
 0x2a0   : > { %v1021_v21 = vmul.f32 1.442695, %v998_v16  ;;  %v1236_v16 = vsub.f32 %v4410_v6, %v1198_v17 }
 0x2a1   : > { %v1207_v42 = vpop.xlane.xlu1 %1206 }
 0x2a2   : > { %v1239_v22 = vsub.f32 %v4391_v61, %v1207_v42  ;;  %v1256_v1 = vmul.f32 1.442695, %v1236_v16  ;;  %v818_v16 = vsub.f32 %v4410_v6, %v780_v31 }
 0x2a4   : > { %v1262_v24 = vmul.f32 1.442695, %v1239_v22 }
 0x2a5   : > { %v1448_v23 = vpop.xlane.xlu1 %1447 }
 0x2a6   : > { %v1480_v27 = vsub.f32 %v4391_v61, %v1448_v23 }
 0x2a7   : > { %872 = vadd.xlane.f32.xlu1 %v871_v18  ;;  %v1501_v18 = vmul.f32 1.442695, %v1479_v15  ;;  %v1015_v15 = vmul.f32 1.442695, %v995_v60 }
 0x2a8   : > { %v1503_v32 = vmul.f32 1.442695, %v1480_v27 }
 0x2a9   : > { %3779 = vpow2.f32 %v1501_v18  ;;  %v783_v5 = vpop.xlane.xlu1 %782 }
 0x2aa   : > { %3781 = vpow2.f32 %v1021_v21 }
 0x2ab   : > { %3783 = vpow2.f32 %v1262_v24 }
 0x2ac   : > { %3785 = vpow2.f32 %v1503_v32 }
 0x2ad   : > { %v960_v54 = vpop.xlane.xlu1 %959 }
 0x2ae   : > { %v996_v22 = vsub.f32 %v4413_v7, %v960_v54 }
 0x2af   : > { %1055 = vrot.lane.b32.xlu0 %v4545_v30, %s4112_s30 }
 0x2b0   : > { %v1017_v27 = vmul.f32 1.442695, %v996_v22 }
 0x2b1   : > { %v1201_v61 = vpop.xlane.xlu1 %1200 }
 0x2b2   : > { %v1237_v32 = vsub.f32 %v4413_v7, %v1201_v61 }
 0x2b3   : > { %1296 = vrot.lane.b32.xlu0 %v4549_v33, %s4113_s20  ;;  %v4593_v43 = vpop.eup %3779 }
 0x2b4   : > { %v4595_v46 = vpop.eup %3781 }
 0x2b5   : > { %v4601_v55 = vpop.eup %3783 }
 0x2b6   : > { %v4605_v63 = vpop.eup %3785 }
 0x2b7   : > { %1537 = vrot.lane.b32.xlu0 %v4553_v34, %s4114_s21 }
 0x2b8   : > { %1057 = vrot.lane.b32.xlu1 %v4555_v35, %s4112_s30 }
 0x2bc   : > { %1298 = vrot.lane.b32.xlu1 %v4561_v36, %s4113_s20 }
 0x2c0   : > { %1539 = vrot.lane.b32.xlu1 %v4565_v39, %s4114_s21 }
 0x2d6   : > { %863 = vadd.xlane.f32.xlu0 %v862_v2  ;;  %v842_v2 = vmul.f32 1.442695, %v820_v0  ;;  %v1442_v0 = vpop.xlane.xlu1 %1441 }
 0x2d7   : > { %v1478_v56 = vsub.f32 %v4413_v7, %v1442_v0 }
 0x2d8   : > { %3787 = vpow2.f32 %v842_v2  ;;  %v1258_v2 = vmul.f32 1.442695, %v1237_v32 }
 0x2d9   : > { %3789 = vpow2.f32 %v844_v3  ;;  %v1499_v4 = vmul.f32 1.442695, %v1478_v56 }
 0x2da   : > { %3791 = vpow2.f32 %v1015_v15 }
 0x2db   : > { %3793 = vpow2.f32 %v1256_v1  ;;  %v819_v1 = vsub.f32 %v4413_v7, %v783_v5 }
 0x2dd   : > { %v840_v22 = vmul.f32 1.442695, %v819_v1 }
 0x2e2   : > { %v4611_v12 = vpop.eup %3787 }
 0x2e3   : > { %v880_v42 = vsel %vm765_vm2, %v4611_v12, 0.0  ;;  %v4617_v18 = vpop.eup %3789 }
 0x2e4   : > { %866 = vadd.xlane.f32.xlu1 %v865_v10  ;;  %v1439_v10 = vpop.xlane.xlu0 %1438  ;;  %v883_v23 = vsel %vm765_vm2, %v4617_v18, 0.0  ;;  %v4625_v3 = vpop.eup %3791 }
 0x2e5   : > { %v1477_v21 = vsub.f32 %v4410_v6, %v1439_v10  ;;  %v838_v10 = vmul.f32 1.442695, %v818_v16 }
 0x2e7   : > { %v1497_v24 = vmul.f32 1.442695, %v1477_v21 }
 0x2e8   : > { %v798_v61 = vpop.xlane.xlu0 %797 }
 0x2e9   : > { %3795 = vpow2.f32 %v1497_v24  ;;  %v801_v24 = vpop.xlane.xlu1 %800 }
 0x2ea   : > { %3797 = vpow2.f32 %v1017_v27 }
 0x2eb   : > { %3799 = vpow2.f32 %v1258_v2 }
 0x2ec   : > { %1067 = vrot.lane.b32.xlu0 %v4585_v28, %s4112_s30  ;;  %3801 = vpow2.f32 %v1499_v4 }
 0x2ed   : > { %3803 = vpow2.f32 %v838_v10  ;;  %v978_v31 = vpop.xlane.xlu1 %977 }
 0x2ee   : > { %3805 = vpow2.f32 %v840_v22  ;;  %v1002_v10 = vsub.f32 %v4362_v45, %v978_v31 }
 0x2f0   : > { %1308 = vrot.lane.b32.xlu0 %v4589_v41, %s4113_s20 }
 0x2f1   : > { %v1219_v7 = vpop.xlane.xlu1 %1218 }
 0x2f4   : > { %1549 = vrot.lane.b32.xlu0 %v4593_v43, %s4114_s21 }
 0x2f5   : > { %1069 = vrot.lane.b32.xlu1 %v4595_v46, %s4112_s30 }
 0x2f9   : > { %1310 = vrot.lane.b32.xlu1 %v4601_v55, %s4113_s20 }
 0x2fd   : > { %1551 = vrot.lane.b32.xlu1 %v4605_v63, %s4114_s21 }
 0x313   : > { %881 = vadd.xlane.f32.xlu0 %v880_v42  ;;  %v4629_v42 = vpop.eup %3793 }
 0x314   : > { %v4633_v17 = vpop.eup %3795 }
 0x315   : > { %5427 = vst [vmem:[#allocation16_spill] sm:$0xff] %v4633_v17  ;;  %v4635_v60 = vpop.eup %3797 }
 0x316   : > { %v4641_v54 = vpop.eup %3799 }
 0x317   : > { %v4645_v15 = vpop.eup %3801 }
 0x318   : > { %5428 = vst [vmem:[#allocation17_spill] sm:$0xff] %v4645_v15  ;;  %v4651_v21 = vpop.eup %3803 }
 0x319   : > { %5429 = vst [vmem:[#allocation18_spill] sm:$0xff] %v4651_v21  ;;  %v874_v27 = vsel %vm765_vm2, %v4651_v21, 0.0  ;;  %v4657_v4 = vpop.eup %3805 }
 0x31a   : > { %5430 = vst [vmem:[#allocation19_spill] sm:$0xff] %v4657_v4  ;;  %v877_v1 = vsel %vm765_vm2, %v4657_v4, 0.0 }
 0x321   : > { %884 = vadd.xlane.f32.xlu1 %v883_v23  ;;  %v975_v23 = vpop.xlane.xlu0 %974 }
 0x322   : > { %v1001_v6 = vsub.f32 %v4349_v38, %v975_v23  ;;  %v1029_v23 = vmul.f32 1.442695, %v1002_v10 }
 0x324   : > { %v1027_v0 = vmul.f32 1.442695, %v1001_v6 }
 0x325   : > { %v1216_v32 = vpop.xlane.xlu0 %1215 }
 0x326   : > { %v1242_v2 = vsub.f32 %v4349_v38, %v1216_v32  ;;  %3807 = vpow2.f32 %v1027_v0  ;;  %v1460_v32 = vpop.xlane.xlu1 %1459 }
 0x327   : > { %v1484_v0 = vsub.f32 %v4362_v45, %v1460_v32 }
 0x328   : > { %v1268_v5 = vmul.f32 1.442695, %v1242_v2 }
 0x329   : > { %1063 = vrot.lane.b32.xlu0 %v4625_v3, %s4112_s30  ;;  %v1457_v56 = vpop.xlane.xlu0 %1456  ;;  %v1511_v31 = vmul.f32 1.442695, %v1484_v0 }
 0x32a   : > { %v1483_v16 = vsub.f32 %v4349_v38, %v1457_v56  ;;  %3809 = vpow2.f32 %v1268_v5 }
 0x32c   : > { %v1509_v22 = vmul.f32 1.442695, %v1483_v16 }
 0x32d   : > { %1304 = vrot.lane.b32.xlu0 %v4629_v42, %s4113_s20 }
 0x32e   : > { %3811 = vpow2.f32 %v1509_v22 }
 0x32f   : > { %3813 = vpow2.f32 %v1029_v23  ;;  %v792_v23 = vpop.xlane.xlu0 %791 }
 0x330   : > { %v4665_v2 = vpop.eup %3807 }
 0x331   : > { %1545 = vrot.lane.b32.xlu0 %v4633_v17, %s4114_s21  ;;  %5431 = vst [vmem:[#allocation20_spill] sm:$0xff] %v4665_v2 }
 0x332   : > { %1065 = vrot.lane.b32.xlu1 %v4635_v60, %s4112_s30 }
 0x333   : > { %v969_v0 = vpop.xlane.xlu0 %968 }
 0x334   : > { %v4669_v56 = vpop.eup %3809 }
 0x335   : > { %5432 = vst [vmem:[#allocation21_spill] sm:$0xff] %v4669_v56 }
 0x336   : > { %1306 = vrot.lane.b32.xlu1 %v4641_v54, %s4113_s20 }
 0x337   : > { %v1210_v26 = vpop.xlane.xlu0 %1209 }
 0x33a   : > { %1547 = vrot.lane.b32.xlu1 %v4645_v15, %s4114_s21 }
 0x350   : > { %875 = vadd.xlane.f32.xlu0 %v874_v27  ;;  %v1243_v27 = vsub.f32 %v4362_v45, %v1219_v7  ;;  %v4673_v7 = vpop.eup %3811 }
 0x351   : > { %5433 = vst [vmem:[#allocation22_spill] sm:$0xff] %v4673_v7  ;;  %v4675_v5 = vpop.eup %3813 }
 0x352   : > { %v1270_v6 = vmul.f32 1.442695, %v1243_v27  ;;  %5434 = vst [vmem:[#allocation23_spill] sm:$0xff] %v4675_v5  ;;  %v825_v27 = vsub.f32 %v4362_v45, %v801_v24 }
 0x354   : > { %3815 = vpow2.f32 %v1270_v6  ;;  %v852_v6 = vmul.f32 1.442695, %v825_v27 }
 0x355   : > { %3817 = vpow2.f32 %v1511_v31  ;;  %v795_v31 = vpop.xlane.xlu1 %794 }
 0x35e   : > { %878 = vadd.xlane.f32.xlu1 %v877_v1  ;;  %v4681_v16 = vpop.eup %3815  ;;  %v824_v1 = vsub.f32 %v4349_v38, %v798_v61  ;;  %v999_v38 = vsub.f32 %v4352_v40, %v969_v0  ;;  %v972_v61 = vpop.xlane.xlu1 %971 }
 0x35f   : > { %5435 = vst [vmem:[#allocation24_spill] sm:$0xff] %v4681_v16  ;;  %v4685_v10 = vpop.eup %3817  ;;  %v1000_v19 = vsub.f32 %v4365_v47, %v972_v61 }
 0x360   : > { %5436 = vst [vmem:[#allocation25_spill] sm:$0xff] %v4685_v10  ;;  %v850_v22 = vmul.f32 1.442695, %v824_v1  ;;  %v1023_v25 = vmul.f32 1.442695, %v999_v38  ;;  %v1240_v1 = vsub.f32 %v4352_v40, %v1210_v26 }
 0x361   : > { %v1025_v0 = vmul.f32 1.442695, %v1000_v19 }
 0x362   : > { %3819 = vpow2.f32 %v850_v22  ;;  %v1451_v22 = vpop.xlane.xlu0 %1450  ;;  %v1213_v45 = vpop.xlane.xlu1 %1212  ;;  %v1264_v24 = vmul.f32 1.442695, %v1240_v1 }
 0x363   : > { %3821 = vpow2.f32 %v852_v6  ;;  %v1481_v27 = vsub.f32 %v4352_v40, %v1451_v22  ;;  %v1241_v38 = vsub.f32 %v4365_v47, %v1213_v45 }
 0x364   : > { %3823 = vpow2.f32 %v1023_v25 }
 0x365   : > { %3825 = vpow2.f32 %v1264_v24  ;;  %v1505_v6 = vmul.f32 1.442695, %v1481_v27  ;;  %v1266_v14 = vmul.f32 1.442695, %v1241_v38  ;;  %v822_v27 = vsub.f32 %v4352_v40, %v792_v23 }
 0x366   : > { %1075 = vrot.lane.b32.xlu0 %v4665_v2, %s4112_s30  ;;  %v1454_v26 = vpop.xlane.xlu1 %1453 }
 0x367   : > { %3827 = vpow2.f32 %v1505_v6  ;;  %v1482_v25 = vsub.f32 %v4365_v47, %v1454_v26  ;;  %v810_v6 = vpop.xlane.xlu0 %809 }
 0x368   : > { %3829 = vpow2.f32 %v1025_v0  ;;  %v823_v0 = vsub.f32 %v4365_v47, %v795_v31 }
 0x369   : > { %3831 = vpow2.f32 %v1266_v14  ;;  %v1507_v61 = vmul.f32 1.442695, %v1482_v25 }
 0x36a   : > { %1316 = vrot.lane.b32.xlu0 %v4669_v56, %s4113_s20  ;;  %v848_v26 = vmul.f32 1.442695, %v823_v0 }
 0x36b   : > { %3833 = vpow2.f32 %v1507_v61  ;;  %v987_v25 = vpop.xlane.xlu0 %986  ;;  %v813_v61 = vpop.xlane.xlu1 %812 }
 0x36c   : > { %v4691_v32 = vpop.eup %3819  ;;  %v1005_v40 = vsub.f32 %v4372_v51, %v987_v25 }
 0x36d   : > { %5437 = vst [vmem:[#allocation26_spill] sm:$0xff] %v4691_v32  ;;  %v892_v29 = vsel %vm765_vm2, %v4691_v32, 0.0  ;;  %v4697_v20 = vpop.eup %3821 }
 0x36e   : > { %1557 = vrot.lane.b32.xlu0 %v4673_v7, %s4114_s21  ;;  %5438 = vst [vmem:[#allocation27_spill] sm:$0xff] %v4697_v20  ;;  %v4705_v1 = vpop.eup %3823 }
 0x36f   : > { %1077 = vrot.lane.b32.xlu1 %v4675_v5, %s4112_s30  ;;  %5439 = vst [vmem:[#allocation28_spill] sm:$0xff] %v4705_v1  ;;  %v4709_v22 = vpop.eup %3825  ;;  %v1228_v8 = vpop.xlane.xlu0 %1227 }
 0x370   : > { %5440 = vst [vmem:[#allocation29_spill] sm:$0xff] %v4709_v22  ;;  %v990_v23 = vpop.xlane.xlu1 %989 }
 0x371   : > { %v4713_v19 = vpop.eup %3827 }
 0x372   : > { %5441 = vst [vmem:[#allocation30_spill] sm:$0xff] %v4713_v19  ;;  %v4715_v45 = vpop.eup %3829 }
 0x373   : > { %1318 = vrot.lane.b32.xlu1 %v4681_v16, %s4113_s20  ;;  %5442 = vst [vmem:[#allocation31_spill] sm:$0xff] %v4715_v45  ;;  %v4721_v24 = vpop.eup %3831 }
 0x374   : > { %5443 = vst [vmem:[#allocation32_spill] sm:$0xff] %v4721_v24  ;;  %v1231_v47 = vpop.xlane.xlu1 %1230 }
 0x375   : > { %v4725_v14 = vpop.eup %3833 }
 0x376   : > { %5444 = vst [vmem:[#allocation33_spill] sm:$0xff] %v4725_v14 }
 0x377   : > { %1559 = vrot.lane.b32.xlu1 %v4685_v10, %s4114_s21 }
 0x38d   : > { %893 = vadd.xlane.f32.xlu0 %v892_v29  ;;  %v895_v29 = vsel %vm765_vm2, %v4697_v20, 0.0 }
 0x39b   : > { %896 = vadd.xlane.f32.xlu1 %v895_v29  ;;  %v846_v29 = vmul.f32 1.442695, %v822_v27  ;;  %v1246_v27 = vsub.f32 %v4372_v51, %v1228_v8  ;;  %v1472_v8 = vpop.xlane.xlu1 %1471 }
 0x39d   : > { %3835 = vpow2.f32 %v846_v29  ;;  %v1469_v29 = vpop.xlane.xlu0 %1468  ;;  %v1276_v31 = vmul.f32 1.442695, %v1246_v27 }
 0x39e   : > { %3837 = vpow2.f32 %v848_v26  ;;  %v1487_v0 = vsub.f32 %v4372_v51, %v1469_v29 }
 0x3a0   : > { %v1517_v26 = vmul.f32 1.442695, %v1487_v0 }
 0x3a3   : > { %1071 = vrot.lane.b32.xlu0 %v4705_v1, %s4112_s30 }
 0x3a7   : > { %1312 = vrot.lane.b32.xlu0 %v4709_v22, %s4113_s20  ;;  %v4731_v38 = vpop.eup %3835  ;;  %v1006_v22 = vsub.f32 %v4382_v57, %v990_v23 }
 0x3a8   : > { %5445 = vst [vmem:[#allocation34_spill] sm:$0xff] %v4731_v38  ;;  %v886_v13 = vsel %vm765_vm2, %v4731_v38, 0.0 }
 0x3a9   : > { %v1037_v25 = vmul.f32 1.442695, %v1006_v22 }
 0x3ab   : > { %1553 = vrot.lane.b32.xlu0 %v4713_v19, %s4114_s21  ;;  %v1035_v19 = vmul.f32 1.442695, %v1005_v40  ;;  %v1247_v40 = vsub.f32 %v4382_v57, %v1231_v47 }
 0x3ac   : > { %1073 = vrot.lane.b32.xlu1 %v4715_v45, %s4112_s30 }
 0x3ad   : > { %3839 = vpow2.f32 %v1035_v19  ;;  %v1278_v38 = vmul.f32 1.442695, %v1247_v40  ;;  %v1488_v19 = vsub.f32 %v4382_v57, %v1472_v8  ;;  %v4772_v40 = vpop.xlane.xlu0 %803 }
 0x3ae   : > { %3841 = vpow2.f32 %v1276_v31  ;;  %v4761_v31 = vpop.xlane.xlu1 %806 }
 0x3af   : > { %3843 = vpow2.f32 %v1517_v26  ;;  %v1519_v23 = vmul.f32 1.442695, %v1488_v19  ;;  %v828_v26 = vsub.f32 %v4372_v51, %v810_v6 }
 0x3b0   : > { %1314 = vrot.lane.b32.xlu1 %v4721_v24, %s4113_s20  ;;  %3845 = vpow2.f32 %v1037_v25 }
 0x3b1   : > { %3847 = vpow2.f32 %v1278_v38  ;;  %v858_v25 = vmul.f32 1.442695, %v828_v26  ;;  %v981_v19 = vpop.xlane.xlu0 %980 }
 0x3b2   : > { %3849 = vpow2.f32 %v1519_v23  ;;  %v1003_v26 = vsub.f32 %v4375_v53, %v981_v19 }
 0x3b3   : > { %3851 = vpow2.f32 %v858_v25 }
 0x3b4   : > { %1555 = vrot.lane.b32.xlu1 %v4725_v14, %s4114_s21  ;;  %v4737_v14 = vpop.eup %3837 }
 0x3b5   : > { %5446 = vst [vmem:[#allocation35_spill] sm:$0xff] %v4737_v14 }
 0x3b7   : > { %v4745_v27 = vpop.eup %3839 }
 0x3b8   : > { %5447 = vst [vmem:[#allocation36_spill] sm:$0xff] %v4745_v27  ;;  %v4749_v29 = vpop.eup %3841 }
 0x3b9   : > { %5448 = vst [vmem:[#allocation37_spill] sm:$0xff] %v4749_v29  ;;  %v4753_v22 = vpop.eup %3843 }
 0x3ba   : > { %5449 = vst [vmem:[#allocation38_spill] sm:$0xff] %v4753_v22  ;;  %v4755_v47 = vpop.eup %3845 }
 0x3bb   : > { %5450 = vst [vmem:[#allocation39_spill] sm:$0xff] %v4755_v47  ;;  %v4763_v38 = vpop.eup %3847 }
 0x3bc   : > { %5451 = vst [vmem:[#allocation40_spill] sm:$0xff] %v4763_v38  ;;  %v4767_v0 = vpop.eup %3849 }
 0x3bd   : > { %5452 = vst [vmem:[#allocation41_spill] sm:$0xff] %v4767_v0 }
 0x3ca   : > { %887 = vadd.xlane.f32.xlu0 %v886_v13  ;;  %v889_v13 = vsel %vm765_vm2, %v4737_v14, 0.0 }
 0x3d8   : > { %890 = vadd.xlane.f32.xlu1 %v889_v13  ;;  %v984_v13 = vpop.xlane.xlu1 %983 }
 0x3dc   : > { %v1225_v8 = vpop.xlane.xlu1 %1224 }
 0x3dd   : > { %v1245_v7 = vsub.f32 %v4385_v59, %v1225_v8 }
 0x3e0   : > { %1083 = vrot.lane.b32.xlu0 %v4745_v27, %s4112_s30  ;;  %v1466_v23 = vpop.xlane.xlu1 %1465  ;;  %v4777_v27 = vpop.eup %3851 }
 0x3e1   : > { %5453 = vst [vmem:[#allocation42_spill] sm:$0xff] %v4777_v27  ;;  %v904_v51 = vsel %vm765_vm2, %v4777_v27, 0.0 }
 0x3e4   : > { %1324 = vrot.lane.b32.xlu0 %v4749_v29, %s4113_s20  ;;  %v4775_v29 = vpop.permute.xlu1 %1059 }
 0x3e8   : > { %1565 = vrot.lane.b32.xlu0 %v4753_v22, %s4114_s21  ;;  %v829_v22 = vsub.f32 %v4382_v57, %v813_v61  ;;  %v4779_v14 = vpop.permute.xlu1 %1300  ;;  %v1031_v57 = vmul.f32 1.442695, %v1003_v26 }
 0x3e9   : > { %1085 = vrot.lane.b32.xlu1 %v4755_v47, %s4112_s30 }
 0x3ea   : > { %v860_v47 = vmul.f32 1.442695, %v829_v22 }
 0x3ec   : > { %3853 = vpow2.f32 %v860_v47  ;;  %v4784_v25 = vpop.permute.xlu1 %1061 }
 0x3ed   : > { %1326 = vrot.lane.b32.xlu1 %v4763_v38, %s4113_s20  ;;  %v1222_v38 = vpop.xlane.xlu0 %1221  ;;  %3855 = vpow2.f32 %v1031_v57  ;;  %v1274_v57 = vmul.f32 1.442695, %v1245_v7 }
 0x3ee   : > { %v1244_v61 = vsub.f32 %v4375_v53, %v1222_v38 }
 0x3f0   : > { %v1272_v1 = vmul.f32 1.442695, %v1244_v61  ;;  %v4794_v47 = vpop.permute.xlu1 %1302 }
 0x3f1   : > { %1567 = vrot.lane.b32.xlu1 %v4767_v0, %s4114_s21  ;;  %v1463_v6 = vpop.xlane.xlu0 %1462 }
 0x3f2   : > { %v1485_v27 = vsub.f32 %v4375_v53, %v1463_v6  ;;  %3857 = vpow2.f32 %v1272_v1  ;;  %v1486_v6 = vsub.f32 %v4385_v59, %v1466_v23 }
 0x3f4   : > { %v1513_v26 = vmul.f32 1.442695, %v1485_v27  ;;  %v1544_v10 = vpop.permute.xlu1 %1543  ;;  %v1515_v1 = vmul.f32 1.442695, %v1486_v6 }
 0x3f5   : > { %v4786_v0 = vpop.permute.xlu0 %1541 }
 0x3f6   : > { %v4791_v22 = vpop.eup %3853  ;;  %3859 = vpow2.f32 %v1513_v26 }
 0x3f7   : > { %5454 = vst [vmem:[#allocation43_spill] sm:$0xff] %v4791_v22  ;;  %v907_v19 = vsel %vm765_vm2, %v4791_v22, 0.0  ;;  %v4801_v61 = vpop.eup %3855 }
 0x3f8   : > { %5455 = vst [vmem:[#allocation44_spill] sm:$0xff] %v4801_v61 }
 0x3f9   : > { %v4789_v24 = vpop.xlane.xlu0 %869 }
 0x3fc   : > { %v4807_v27 = vpop.eup %3857 }
 0x3fd   : > { %v1056_v45 = vpop.permute.xlu0 %1055  ;;  %5456 = vst [vmem:[#allocation45_spill] sm:$0xff] %v4807_v27 }
 0x400   : > { %v4811_v7 = vpop.eup %3859 }
 0x401   : > { %v1297_v20 = vpop.permute.xlu0 %1296  ;;  %5457 = vst [vmem:[#allocation46_spill] sm:$0xff] %v4811_v7 }
 0x405   : > { %v1538_v8 = vpop.permute.xlu0 %1537 }
 0x407   : > { %905 = vadd.xlane.f32.xlu0 %v904_v51  ;;  %v1004_v51 = vsub.f32 %v4385_v59, %v984_v13  ;;  %v4803_v13 = vpop.xlane.xlu1 %872 }
 0x409   : > { %v1033_v38 = vmul.f32 1.442695, %v1004_v51 }
 0x40b   : > { %3861 = vpow2.f32 %v1033_v38  ;;  %v1058_v51 = vpop.permute.xlu1 %1057 }
 0x40c   : > { %3863 = vpow2.f32 %v1274_v57 }
 0x40d   : > { %3865 = vpow2.f32 %v1515_v1  ;;  %v826_v1 = vsub.f32 %v4375_v53, %v4772_v40 }
 0x40f   : > { %v1299_v26 = vpop.permute.xlu1 %1298 }
 0x413   : > { %v1540_v22 = vpop.permute.xlu1 %1539 }
 0x415   : > { %908 = vadd.xlane.f32.xlu1 %v907_v19  ;;  %v4813_v23 = vpop.eup %3861  ;;  %v4817_v19 = vpop.xlane.xlu0 %863 }
 0x416   : > { %5458 = vst [vmem:[#allocation47_spill] sm:$0xff] %v4813_v23  ;;  %v4821_v38 = vpop.eup %3863 }
 0x417   : > { %5459 = vst [vmem:[#allocation48_spill] sm:$0xff] %v4821_v38  ;;  %v4825_v6 = vpop.eup %3865 }
 0x418   : > { %5460 = vst [vmem:[#allocation49_spill] sm:$0xff] %v4825_v6 }
 0x419   : > { %v1068_v57 = vpop.permute.xlu0 %1067 }
 0x41d   : > { %1079 = vrot.lane.b32.xlu0 %v4801_v61, %s4112_s30  ;;  %v4831_v61 = vpop.xlane.xlu1 %866 }
 0x421   : > { %1320 = vrot.lane.b32.xlu0 %v4807_v27, %s4113_s20  ;;  %v1309_v27 = vpop.permute.xlu0 %1308  ;;  %v1070_v32 = vpop.permute.xlu1 %1069 }
 0x425   : > { %1561 = vrot.lane.b32.xlu0 %v4811_v7, %s4114_s21  ;;  %v854_v7 = vmul.f32 1.442695, %v826_v1  ;;  %v1311_v16 = vpop.permute.xlu1 %1310 }
 0x426   : > { %1081 = vrot.lane.b32.xlu1 %v4813_v23, %s4112_s30  ;;  %v4833_v23 = vpop.permute.xlu0 %1549 }
 0x427   : > { %3867 = vpow2.f32 %v854_v7  ;;  %v1109_v7 = vsel %vm765_vm2, %v4775_v29, 0.0 }
 0x42a   : > { %1322 = vrot.lane.b32.xlu1 %v4821_v38, %s4113_s20  ;;  %v827_v38 = vsub.f32 %v4385_v59, %v4761_v31  ;;  %v4837_v56 = vpop.xlane.xlu0 %881  ;;  %v1350_v59 = vsel %vm765_vm2, %v4779_v14, 0.0  ;;  %v1594_v14 = vsel %vm765_vm2, %v1544_v10, 0.0  ;;  %v1112_v10 = vsel %vm765_vm2, %v4784_v25, 0.0 }
 0x42b   : > { %v1365_v25 = vsel %vm765_vm2, %v1311_v16, 0.0 }
 0x42c   : > { %v856_v53 = vmul.f32 1.442695, %v827_v38 }
 0x42e   : > { %1563 = vrot.lane.b32.xlu1 %v4825_v6, %s4114_s21  ;;  %v1064_v40 = vpop.permute.xlu0 %1063  ;;  %3869 = vpow2.f32 %v856_v53  ;;  %v1552_v6 = vpop.permute.xlu1 %1551  ;;  %v1591_v53 = vsel %vm765_vm2, %v4786_v0, 0.0  ;;  %v1106_v0 = vsel %vm765_vm2, %v1058_v51, 0.0  ;;  %v1353_v51 = vsel %vm765_vm2, %v4794_v47, 0.0 }
 0x42f   : > { %v1606_v47 = vsel %vm765_vm2, %v1552_v6, 0.0 }
 0x431   : > { %v4839_v2 = vpop.eup %3867 }
 0x432   : > { %5461 = vst [vmem:[#allocation50_spill] sm:$0xff] %v4839_v2  ;;  %v898_v1 = vsel %vm765_vm2, %v4839_v2, 0.0  ;;  %v1305_v5 = vpop.permute.xlu0 %1304  ;;  %v4845_v17 = vpop.xlane.xlu1 %884 }
 0x433   : > { %v1356_v6 = vsel %vm765_vm2, %v1305_v5, 0.0 }
 0x436   : > { %v1546_v38 = vpop.permute.xlu0 %1545  ;;  %v1066_v15 = vpop.permute.xlu1 %1065 }
 0x438   : > { %v4849_v31 = vpop.eup %3869 }
 0x439   : > { %5462 = vst [vmem:[#allocation51_spill] sm:$0xff] %v4849_v31 }
 0x43a   : > { %v4855_v29 = vpop.xlane.xlu0 %875  ;;  %v1307_v2 = vpop.permute.xlu1 %1306 }
 0x43e   : > { %v1076_v4 = vpop.permute.xlu0 %1075 }
 0x442   : > { %v1317_v21 = vpop.permute.xlu0 %1316 }
 0x444   : > { %899 = vadd.xlane.f32.xlu0 %v898_v1  ;;  %v901_v1 = vsel %vm765_vm2, %v4849_v31, 0.0  ;;  %v1585_v31 = vsel %vm765_vm2, %v1538_v8, 0.0  ;;  %v1124_v8 = vsel %vm765_vm2, %v1070_v32, 0.0  ;;  %v1603_v32 = vsel %vm765_vm2, %v4833_v23, 0.0 }
 0x448   : > { %1110 = vadd.xlane.f32.xlu0 %v1109_v7  ;;  %v1103_v7 = vsel %vm765_vm2, %v1056_v45, 0.0 }
 0x44c   : > { %1351 = vadd.xlane.f32.xlu0 %v1350_v59  ;;  %v1344_v59 = vsel %vm765_vm2, %v1297_v20, 0.0  ;;  %v1588_v20 = vsel %vm765_vm2, %v1540_v22, 0.0  ;;  %v1362_v22 = vsel %vm765_vm2, %v1309_v27, 0.0  ;;  %v1359_v27 = vsel %vm765_vm2, %v1307_v2, 0.0 }
 0x450   : > { %1592 = vadd.xlane.f32.xlu0 %v1591_v53  ;;  %v1548_v53 = vpop.permute.xlu1 %1547 }
 0x452   : > { %902 = vadd.xlane.f32.xlu1 %v901_v1  ;;  %v1347_v1 = vsel %vm765_vm2, %v1299_v26, 0.0  ;;  %v1121_v26 = vsel %vm765_vm2, %v1068_v57, 0.0  ;;  %v1118_v57 = vsel %vm765_vm2, %v1066_v15, 0.0  ;;  %v1597_v15 = vsel %vm765_vm2, %v1546_v38, 0.0 }
 0x454   : > { %1104 = vadd.xlane.f32.xlu0 %v1103_v7  ;;  %v4863_v45 = vpop.xlane.xlu1 %878  ;;  %v1558_v7 = vpop.permute.xlu0 %1557 }
 0x456   : > { %1595 = vadd.xlane.f32.xlu1 %v1594_v14 }
 0x458   : > { %1345 = vadd.xlane.f32.xlu0 %v1344_v59  ;;  %v1078_v14 = vpop.permute.xlu1 %1077 }
 0x45a   : > { %1107 = vadd.xlane.f32.xlu1 %v1106_v0 }
 0x45c   : > { %1586 = vadd.xlane.f32.xlu0 %v1585_v31  ;;  %v4872_v31 = vpop.xlane.xlu0 %893  ;;  %v1319_v59 = vpop.permute.xlu1 %1318 }
 0x45d   : > { %v1377_v5 = vsel %vm765_vm2, %v1319_v59, 0.0 }
 0x45e   : > { %1348 = vadd.xlane.f32.xlu1 %v1347_v1 }
 0x460   : > { %1113 = vadd.xlane.f32.xlu0 %v1112_v10  ;;  %v1072_v0 = vpop.permute.xlu0 %1071  ;;  %v1560_v1 = vpop.permute.xlu1 %1559  ;;  %v1115_v10 = vsel %vm765_vm2, %v1064_v40, 0.0  ;;  %v1136_v40 = vsel %vm765_vm2, %v1078_v14, 0.0  ;;  %v1615_v14 = vsel %vm765_vm2, %v1558_v7, 0.0 }
 0x461   : > { %v1127_v59 = vsel %vm765_vm2, %v1072_v0, 0.0 }
 0x462   : > { %1589 = vadd.xlane.f32.xlu1 %v1588_v20 }
 0x464   : > { %1354 = vadd.xlane.f32.xlu0 %v1353_v51  ;;  %v1313_v16 = vpop.permute.xlu0 %1312  ;;  %v4881_v20 = vpop.xlane.xlu1 %896  ;;  %v1600_v51 = vsel %vm765_vm2, %v1548_v53, 0.0  ;;  %v1374_v53 = vsel %vm765_vm2, %v1317_v21, 0.0 }
 0x466   : > { %1125 = vadd.xlane.f32.xlu1 %v1124_v8 }
 0x468   : > { %1122 = vadd.xlane.f32.xlu0 %v1121_v26  ;;  %v1554_v23 = vpop.permute.xlu0 %1553  ;;  %v1074_v8 = vpop.permute.xlu1 %1073 }
 0x46a   : > { %1366 = vadd.xlane.f32.xlu1 %v1365_v25  ;;  %v1133_v25 = vsel %vm765_vm2, %v1076_v4, 0.0 }
 0x46c   : > { %1363 = vadd.xlane.f32.xlu0 %v1362_v22  ;;  %v4888_v26 = vpop.xlane.xlu0 %887  ;;  %v1315_v2 = vpop.permute.xlu1 %1314 }
 0x46d   : > { %v1371_v21 = vsel %vm765_vm2, %v1315_v2, 0.0 }
 0x46e   : > { %1607 = vadd.xlane.f32.xlu1 %v1606_v47  ;;  %v1618_v47 = vsel %vm765_vm2, %v1560_v1, 0.0 }
 0x470   : > { %1604 = vadd.xlane.f32.xlu0 %v1603_v32  ;;  %v1084_v22 = vpop.permute.xlu0 %1083  ;;  %v1556_v38 = vpop.permute.xlu1 %1555  ;;  %v1130_v32 = vsel %vm765_vm2, %v1074_v8, 0.0 }
 0x471   : > { %v1612_v7 = vsel %vm765_vm2, %v1556_v38, 0.0 }
 0x472   : > { %1119 = vadd.xlane.f32.xlu1 %v1118_v57 }
 0x474   : > { %1116 = vadd.xlane.f32.xlu0 %v1115_v10  ;;  %v1325_v57 = vpop.permute.xlu0 %1324  ;;  %v4896_v4 = vpop.xlane.xlu1 %890  ;;  %v1368_v10 = vsel %vm765_vm2, %v1313_v16, 0.0 }
 0x476   : > { %1360 = vadd.xlane.f32.xlu1 %v1359_v27 }
 0x478   : > { %1357 = vadd.xlane.f32.xlu0 %v1356_v6  ;;  %v1566_v1 = vpop.permute.xlu0 %1565  ;;  %v1086_v27 = vpop.permute.xlu1 %1085  ;;  %v1609_v6 = vsel %vm765_vm2, %v1554_v23, 0.0 }
 0x479   : > { %v1148_v8 = vsel %vm765_vm2, %v1086_v27, 0.0 }
 0x47a   : > { %1601 = vadd.xlane.f32.xlu1 %v1600_v51 }
 0x47c   : > { %1598 = vadd.xlane.f32.xlu0 %v1597_v15  ;;  %v1327_v0 = vpop.permute.xlu1 %1326  ;;  %v1145_v15 = vsel %vm765_vm2, %v1084_v22, 0.0 }
 0x47d   : > { %v1389_v16 = vsel %vm765_vm2, %v1327_v0, 0.0 }
 0x47e   : > { %1137 = vadd.xlane.f32.xlu1 %v1136_v40 }
 0x480   : > { %1134 = vadd.xlane.f32.xlu0 %v1133_v25  ;;  %v1386_v25 = vsel %vm765_vm2, %v1325_v57, 0.0  ;;  %v1568_v2 = vpop.permute.xlu1 %1567 }
 0x482   : > { %1378 = vadd.xlane.f32.xlu1 %v1377_v5 }
 0x484   : > { %1375 = vadd.xlane.f32.xlu0 %v1374_v53 }
 0x486   : > { %1619 = vadd.xlane.f32.xlu1 %v1618_v47 }
 0x488   : > { %1616 = vadd.xlane.f32.xlu0 %v1615_v14 }
 0x48a   : > { %1131 = vadd.xlane.f32.xlu1 %v1130_v32 }
 0x48c   : > { %1128 = vadd.xlane.f32.xlu0 %v1127_v59  ;;  %v1627_v59 = vsel %vm765_vm2, %v1566_v1, 0.0 }
 0x48e   : > { %1372 = vadd.xlane.f32.xlu1 %v1371_v21 }
 0x490   : > { %1369 = vadd.xlane.f32.xlu0 %v1368_v10 }
 0x492   : > { %1613 = vadd.xlane.f32.xlu1 %v1612_v7  ;;  %v1630_v7 = vsel %vm765_vm2, %v1568_v2, 0.0 }
 0x494   : > { %1610 = vadd.xlane.f32.xlu0 %v1609_v6  ;;  %v4903_v51 = vpop.xlane.xlu0 %905 }
 0x496   : > { %1149 = vadd.xlane.f32.xlu1 %v1148_v8 }
 0x498   : > { %1146 = vadd.xlane.f32.xlu0 %v1145_v15  ;;  %v1080_v40 = vpop.permute.xlu0 %1079 }
 0x499   : > { %v1139_v23 = vsel %vm765_vm2, %v1080_v40, 0.0 }
 0x49a   : > { %1390 = vadd.xlane.f32.xlu1 %v1389_v16 }
 0x49c   : > { %1387 = vadd.xlane.f32.xlu0 %v1386_v25  ;;  %v1321_v5 = vpop.permute.xlu0 %1320 }
 0x49d   : > { %v1380_v47 = vsel %vm765_vm2, %v1321_v5, 0.0 }
 0x4a0   : > { %1140 = vadd.xlane.f32.xlu0 %v1139_v23  ;;  %v1562_v38 = vpop.permute.xlu0 %1561 }
 0x4a1   : > { %v1621_v14 = vsel %vm765_vm2, %v1562_v38, 0.0 }
 0x4a2   : > { %v4910_v53 = vpop.xlane.xlu1 %908 }
 0x4a4   : > { %1381 = vadd.xlane.f32.xlu0 %v1380_v47 }
 0x4a6   : > { %v1082_v22 = vpop.permute.xlu1 %1081 }
 0x4a7   : > { %v1142_v32 = vsel %vm765_vm2, %v1082_v22, 0.0 }
 0x4a8   : > { %1143 = vadd.xlane.f32.xlu1 %v1142_v32  ;;  %1622 = vadd.xlane.f32.xlu0 %v1621_v14 }
 0x4aa   : > { %v1323_v57 = vpop.permute.xlu1 %1322 }
 0x4ab   : > { %v1383_v21 = vsel %vm765_vm2, %v1323_v57, 0.0 }
 0x4ac   : > { %1384 = vadd.xlane.f32.xlu1 %v1383_v21  ;;  %1628 = vadd.xlane.f32.xlu0 %v1627_v59 }
 0x4ae   : > { %v1564_v10 = vpop.permute.xlu1 %1563 }
 0x4af   : > { %v1624_v27 = vsel %vm765_vm2, %v1564_v10, 0.0 }
 0x4b0   : > { %1625 = vadd.xlane.f32.xlu1 %v1624_v27 }
 0x4b4   : > { %1631 = vadd.xlane.f32.xlu1 %v1630_v7 }
 0x4d1   : > { %v4919_v6 = vpop.xlane.xlu0 %899 }
 0x4d5   : > { %v1111_v8 = vpop.xlane.xlu0 %1110 }
 0x4d6   : > { %3871 = vrcp.f32 %v1111_v8 }
 0x4d7   : > { %3873 = vrcp.f32 %v4789_v24 }
 0x4d9   : > { %v1352_v0 = vpop.xlane.xlu0 %1351 }
 0x4da   : > { %3875 = vrcp.f32 %v1352_v0 }
 0x4dd   : > { %v1593_v1 = vpop.xlane.xlu0 %1592 }
 0x4de   : > { %3877 = vrcp.f32 %v1593_v1 }
 0x4df   : > { %v4922_v15 = vpop.xlane.xlu1 %902 }
 0x4e0   : > { %v3872_v40 = vpop.eup %3871 }
 0x4e1   : > { %v3874_v16 = vpop.eup %3873  ;;  %v1105_v25 = vpop.xlane.xlu0 %1104  ;;  %v1169_v5 = vmul.f32 %v3872_v40, %v4504_v37 }
 0x4e2   : > { %3879 = vrcp.f32 %v1105_v25  ;;  %v928_v47 = vmul.f32 %v3874_v16, %v4531_v62 }
 0x4e3   : > { %3881 = vrcp.f32 %v4817_v19  ;;  %v1596_v2 = vpop.xlane.xlu1 %1595 }
 0x4e4   : > { %v3876_v23 = vpop.eup %3875  ;;  %3883 = vrcp.f32 %v4831_v61  ;;  %v1667_v22 = vsel %vm765_vm2, %v928_v47, %v1169_v5 }
 0x4e5   : > { %v1410_v24 = vmul.f32 %v3876_v23, %v4509_v44  ;;  %v1346_v38 = vpop.xlane.xlu0 %1345 }
 0x4e6   : > { %3885 = vrcp.f32 %v1346_v38 }
 0x4e7   : > { %v1684_v14 = vsel %vm1681_vm5, %v1667_v22, %v1410_v24  ;;  %v1108_v32 = vpop.xlane.xlu1 %1107 }
 0x4e8   : > { %v3878_v37 = vpop.eup %3877  ;;  %3887 = vrcp.f32 %v1108_v32 }
 0x4e9   : > { %v1651_v19 = vmul.f32 %v3878_v37, %v4513_v48  ;;  %v1587_v57 = vpop.xlane.xlu0 %1586 }
 0x4ea   : > { %3889 = vrcp.f32 %v1587_v57 }
 0x4eb   : > { %v4933_v62 = vsel %vm1698_vm6, %v1684_v14, %v1651_v19  ;;  %v1349_v61 = vpop.xlane.xlu1 %1348 }
 0x4ec   : > { %v3880_v59 = vpop.eup %3879  ;;  %3891 = vrcp.f32 %v1349_v61 }
 0x4ed   : > { %v3882_v44 = vpop.eup %3881  ;;  %3893 = vrcp.f32 %v4803_v13  ;;  %v1114_v21 = vpop.xlane.xlu0 %1113  ;;  %v1167_v10 = vmul.f32 %v3880_v59, %v4545_v30 }
 0x4ee   : > { %3895 = vrcp.f32 %v1114_v21  ;;  %v3884_v27 = vpop.eup %3883  ;;  %v926_v8 = vmul.f32 %v3882_v44, %v4571_v58 }
 0x4ef   : > { %3897 = vrcp.f32 %v4845_v17  ;;  %v1590_v7 = vpop.xlane.xlu1 %1589  ;;  %v927_v13 = vmul.f32 %v3884_v27, %v4577_v9 }
 0x4f0   : > { %v3886_v48 = vpop.eup %3885  ;;  %3899 = vrcp.f32 %v1590_v7  ;;  %v1665_v16 = vsel %vm765_vm2, %v926_v8, %v1167_v10 }
 0x4f1   : > { %3901 = vrcp.f32 %v1596_v2  ;;  %v1408_v0 = vmul.f32 %v3886_v48, %v4549_v33  ;;  %v1355_v1 = vpop.xlane.xlu0 %1354 }
 0x4f2   : > { %v3888_v40 = vpop.eup %3887  ;;  %3903 = vrcp.f32 %v1355_v1 }
 0x4f3   : > { %3905 = vrcp.f32 %v4837_v56  ;;  %v1682_v30 = vsel %vm1681_vm5, %v1665_v16, %v1408_v0  ;;  %v1168_v17 = vmul.f32 %v3888_v40, %v4555_v35  ;;  %v1126_v25 = vpop.xlane.xlu1 %1125 }
 0x4f4   : > { %v3890_v5 = vpop.eup %3889  ;;  %3907 = vrcp.f32 %v1126_v25 }
 0x4f5   : > { %v1666_v58 = vsel %vm765_vm2, %v927_v13, %v1168_v17  ;;  %v1649_v33 = vmul.f32 %v3890_v5, %v4553_v34  ;;  %v1123_v2 = vpop.xlane.xlu0 %1122 }
 0x4f6   : > { %v3892_v23 = vpop.eup %3891  ;;  %3909 = vrcp.f32 %v1123_v2 }
 0x4f7   : > { %v3894_v47 = vpop.eup %3893  ;;  %v1699_v24 = vsel %vm1698_vm6, %v1682_v30, %v1649_v33  ;;  %v1409_v9 = vmul.f32 %v3892_v23, %v4561_v36  ;;  %v1367_v56 = vpop.xlane.xlu1 %1366 }
 0x4f8   : > { %v3896_v38 = vpop.eup %3895  ;;  %3911 = vrcp.f32 %v1367_v56  ;;  %v929_v59 = vmul.f32 %v3894_v47, %v4537_v11 }
 0x4f9   : > { %v3898_v22 = vpop.eup %3897  ;;  %v1683_v35 = vsel %vm1681_vm5, %v1666_v58, %v1409_v9  ;;  %v1364_v14 = vpop.xlane.xlu0 %1363  ;;  %v1170_v37 = vmul.f32 %v3896_v38, %v4515_v49 }
 0x4fa   : > { %v3900_v32 = vpop.eup %3899  ;;  %3913 = vrcp.f32 %v1364_v14 }
 0x4fb   : > { %v3902_v34 = vpop.eup %3901  ;;  %v1650_v19 = vmul.f32 %v3900_v32, %v4565_v39  ;;  %v1608_v57 = vpop.xlane.xlu1 %1607  ;;  %v1668_v49 = vsel %vm765_vm2, %v929_v59, %v1170_v37  ;;  %v933_v39 = vmul.f32 %v3898_v22, %v4617_v18  ;;  %v5463_v59 = vld [vmem:[#allocation18_spill] sm:$0xff] }
 0x4fc   : > { %v3904_v61 = vpop.eup %3903  ;;  %3915 = vrcp.f32 %v1608_v57  ;;  %v1652_v7 = vmul.f32 %v3902_v34, %v4525_v52 }
 0x4fd   : > { %v3906_v36 = vpop.eup %3905  ;;  %v1700_v44 = vsel %vm1698_vm6, %v1683_v35, %v1650_v19  ;;  %v1411_v21 = vmul.f32 %v3904_v61, %v4521_v50  ;;  %v1605_v10 = vpop.xlane.xlu0 %1604 }
 0x4fe   : > { %v3908_v27 = vpop.eup %3907  ;;  %v4957_v48 = vpack.c.bf16 %v1700_v44, %v1699_v24  ;;  %3917 = vrcp.f32 %v1605_v10  ;;  %v932_v40 = vmul.f32 %v3906_v36, %v4611_v12 }
 0x4ff   : > { %v1685_v8 = vsel %vm1681_vm5, %v1668_v49, %v1411_v21  ;;  %v1174_v11 = vmul.f32 %v3908_v27, %v4595_v46  ;;  %v1120_v0 = vpop.xlane.xlu1 %1119  ;;  %3919 = vrcp.f32 %v4855_v29  ;;  %v5465_v21 = vld [vmem:[#allocation17_spill] sm:$0xff]  ;;  %v5466_v49 = vld [vmem:[#allocation16_spill] sm:$0xff] }
 0x500   : > { %v3910_v1 = vpop.eup %3909  ;;  %v1702_v50 = vsel %vm1698_vm6, %v1685_v8, %v1652_v7  ;;  %3921 = vrcp.f32 %v4863_v45 }
 0x501   : > { %v4966_v52 = vpack.c.bf16 %v1702_v50, %v4933_v62  ;;  %v1672_v16 = vsel %vm765_vm2, %v933_v39, %v1174_v11  ;;  %v1173_v13 = vmul.f32 %v3910_v1, %v4585_v28  ;;  %v1117_v18 = vpop.xlane.xlu0 %1116  ;;  %3923 = vrcp.f32 %v1120_v0 }
 0x502   : > { %v3912_v30 = vpop.eup %3911  ;;  %3925 = vrcp.f32 %v1117_v18 }
 0x503   : > { %v1671_v46 = vsel %vm765_vm2, %v932_v40, %v1173_v13  ;;  %v1361_v17 = vpop.xlane.xlu1 %1360  ;;  %v1415_v62 = vmul.f32 %v3912_v30, %v4601_v55 }
 0x504   : > { %v3914_v12 = vpop.eup %3913  ;;  %3927 = vrcp.f32 %v1361_v17 }
 0x505   : > { %v1358_v25 = vpop.xlane.xlu0 %1357  ;;  %v1414_v5 = vmul.f32 %v3914_v12, %v4589_v41  ;;  %v1689_v23 = vsel %vm1681_vm5, %v1672_v16, %v1415_v62  ;;  %v5468_v62 = vld [vmem:[#allocation20_spill] sm:$0xff] }
 0x506   : > { %v3916_v29 = vpop.eup %3915  ;;  %3929 = vrcp.f32 %v1358_v25  ;;  %v5467_v25 = vld [vmem:[#allocation23_spill] sm:$0xff] }
 0x507   : > { %v1656_v28 = vmul.f32 %v3916_v29, %v4605_v63  ;;  %v1602_v58 = vpop.xlane.xlu1 %1601  ;;  %v1688_v47 = vsel %vm1681_vm5, %v1671_v46, %v1414_v5 }
 0x508   : > { %v3918_v33 = vpop.eup %3917  ;;  %3931 = vrcp.f32 %v1602_v58 }
 0x509   : > { %v1655_v45 = vmul.f32 %v3918_v33, %v4593_v43  ;;  %v1599_v2 = vpop.xlane.xlu0 %1598  ;;  %v3920_v24 = vpop.eup %3919  ;;  %v1706_v9 = vsel %vm1698_vm6, %v1689_v23, %v1656_v28  ;;  %v5469_v33 = vld [vmem:[#allocation24_spill] sm:$0xff]  ;;  %v5471_v23 = vld [vmem:[#allocation26_spill] sm:$0xff] }
 0x50a   : > { %3933 = vrcp.f32 %v1599_v2  ;;  %v3922_v56 = vpop.eup %3921  ;;  %v930_v36 = vmul.f32 %v3920_v24, %v5463_v59  ;;  %v5470_v2 = vld [vmem:[#allocation21_spill] sm:$0xff] }
 0x50b   : > { %v1705_v55 = vsel %vm1698_vm6, %v1688_v47, %v1655_v45  ;;  %v1138_v41 = vpop.xlane.xlu1 %1137  ;;  %v3924_v63 = vpop.eup %3923  ;;  %3935 = vrcp.f32 %v4872_v31 }
 0x50c   : > { %v4980_v38 = vpack.c.bf16 %v1706_v9, %v1705_v55  ;;  %v3926_v43 = vpop.eup %3925  ;;  %3937 = vrcp.f32 %v4881_v20  ;;  %v1172_v37 = vmul.f32 %v3924_v63, %v4635_v60  ;;  %v5464_v20 = vld [vmem:[#allocation19_spill] sm:$0xff]  ;;  %v5473_v9 = vld [vmem:[#allocation25_spill] sm:$0xff] }
 0x50d   : > { %v1135_v22 = vpop.xlane.xlu0 %1134  ;;  %3939 = vrcp.f32 %v1138_v41  ;;  %v1171_v34 = vmul.f32 %v3926_v43, %v4625_v3  ;;  %v931_v44 = vmul.f32 %v3922_v56, %v5464_v20  ;;  %v5474_v43 = vld [vmem:[#allocation22_spill] sm:$0xff] }
 0x50e   : > { %v3928_v35 = vpop.eup %3927  ;;  %3941 = vrcp.f32 %v1135_v22 }
 0x50f   : > { %v1379_v14 = vpop.xlane.xlu1 %1378  ;;  %v1413_v61 = vmul.f32 %v3928_v35, %v4641_v54  ;;  %v1670_v60 = vsel %vm765_vm2, %v931_v44, %v1172_v37  ;;  %v1669_v3 = vsel %vm765_vm2, %v930_v36, %v1171_v34 }
 0x510   : > { %v3930_v32 = vpop.eup %3929  ;;  %3943 = vrcp.f32 %v1379_v14 }
 0x511   : > { %v1376_v19 = vpop.xlane.xlu0 %1375  ;;  %v1412_v31 = vmul.f32 %v3930_v32, %v4629_v42  ;;  %v1687_v54 = vsel %vm1681_vm5, %v1670_v60, %v1413_v61 }
 0x512   : > { %v3932_v57 = vpop.eup %3931  ;;  %3945 = vrcp.f32 %v1376_v19 }
 0x513   : > { %v1654_v10 = vmul.f32 %v3932_v57, %v5465_v21  ;;  %v1620_v27 = vpop.xlane.xlu1 %1619  ;;  %v1686_v42 = vsel %vm1681_vm5, %v1669_v3, %v1412_v31 }
 0x514   : > { %v3934_v7 = vpop.eup %3933  ;;  %3947 = vrcp.f32 %v1620_v27 }
 0x515   : > { %v1653_v39 = vmul.f32 %v3934_v7, %v5466_v49  ;;  %v1617_v8 = vpop.xlane.xlu0 %1616  ;;  %v3936_v11 = vpop.eup %3935  ;;  %v1704_v0 = vsel %vm1698_vm6, %v1687_v54, %v1654_v10  ;;  %v5475_v10 = vld [vmem:[#allocation31_spill] sm:$0xff]  ;;  %v5476_v7 = vld [vmem:[#allocation28_spill] sm:$0xff]  ;;  %v5478_v54 = vld [vmem:[#allocation29_spill] sm:$0xff] }
 0x516   : > { %3949 = vrcp.f32 %v1617_v8  ;;  %v3938_v50 = vpop.eup %3937  ;;  %v936_v47 = vmul.f32 %v3936_v11, %v5471_v23  ;;  %v5479_v11 = vld [vmem:[#allocation34_spill] sm:$0xff] }
 0x517   : > { %v1703_v1 = vsel %vm1698_vm6, %v1686_v42, %v1653_v39  ;;  %v1132_v40 = vpop.xlane.xlu1 %1131  ;;  %v3940_v13 = vpop.eup %3939  ;;  %3951 = vrcp.f32 %v4888_v26  ;;  %v5477_v39 = vld [vmem:[#allocation32_spill] sm:$0xff] }
 0x518   : > { %v4998_v16 = vpack.c.bf16 %v1704_v0, %v1703_v1  ;;  %v3942_v30 = vpop.eup %3941  ;;  %3953 = vrcp.f32 %v4896_v4  ;;  %v1178_v29 = vmul.f32 %v3940_v13, %v5467_v25  ;;  %v5472_v4 = vld [vmem:[#allocation27_spill] sm:$0xff] }
 0x519   : > { %v1129_v18 = vpop.xlane.xlu0 %1128  ;;  %3955 = vrcp.f32 %v1132_v40  ;;  %v1177_v5 = vmul.f32 %v3942_v30, %v5468_v62  ;;  %v937_v24 = vmul.f32 %v3938_v50, %v5472_v4  ;;  %v5480_v1 = vld [vmem:[#allocation35_spill] sm:$0xff]  ;;  %v5481_v50 = vld [vmem:[#allocation33_spill] sm:$0xff] }
 0x51a   : > { %v3944_v46 = vpop.eup %3943  ;;  %3957 = vrcp.f32 %v1129_v18 }
 0x51b   : > { %v1373_v17 = vpop.xlane.xlu1 %1372  ;;  %v1419_v45 = vmul.f32 %v3944_v46, %v5469_v33  ;;  %v1676_v63 = vsel %vm765_vm2, %v937_v24, %v1178_v29  ;;  %v1675_v22 = vsel %vm765_vm2, %v936_v47, %v1177_v5 }
 0x51c   : > { %v3946_v12 = vpop.eup %3945  ;;  %3959 = vrcp.f32 %v1373_v17 }
 0x51d   : > { %v1370_v28 = vpop.xlane.xlu0 %1369  ;;  %v1418_v26 = vmul.f32 %v3946_v12, %v5470_v2  ;;  %v1693_v32 = vsel %vm1681_vm5, %v1676_v63, %v1419_v45  ;;  %v5482_v12 = vld [vmem:[#allocation30_spill] sm:$0xff] }
 0x51e   : > { %v3948_v58 = vpop.eup %3947  ;;  %3961 = vrcp.f32 %v1370_v28 }
 0x51f   : > { %v1660_v55 = vmul.f32 %v3948_v58, %v5473_v9  ;;  %v1614_v41 = vpop.xlane.xlu1 %1613  ;;  %v1692_v37 = vsel %vm1681_vm5, %v1675_v22, %v1418_v26 }
 0x520   : > { %v3950_v56 = vpop.eup %3949  ;;  %3963 = vrcp.f32 %v1614_v41 }
 0x521   : > { %v1659_v35 = vmul.f32 %v3950_v56, %v5474_v43  ;;  %v1611_v14 = vpop.xlane.xlu0 %1610  ;;  %v3952_v34 = vpop.eup %3951  ;;  %v1710_v19 = vsel %vm1698_vm6, %v1693_v32, %v1660_v55  ;;  %v5483_v32 = vld [vmem:[#allocation44_spill] sm:$0xff] }
 0x522   : > { %3965 = vrcp.f32 %v1611_v14  ;;  %v3954_v61 = vpop.eup %3953  ;;  %v934_v0 = vmul.f32 %v3952_v34, %v5479_v11  ;;  %v5484_v34 = vld [vmem:[#allocation47_spill] sm:$0xff]  ;;  %v5492_v11 = vld [vmem:[#allocation36_spill] sm:$0xff] }
 0x523   : > { %v1709_v57 = vsel %vm1698_vm6, %v1692_v37, %v1659_v35  ;;  %v3956_v59 = vpop.eup %3955  ;;  %v935_v40 = vmul.f32 %v3954_v61, %v5480_v1  ;;  %v1150_v18 = vpop.xlane.xlu1 %1149  ;;  %3967 = vrcp.f32 %v4903_v51  ;;  %v5485_v61 = vld [vmem:[#allocation45_spill] sm:$0xff] }
 0x524   : > { %v5016_v31 = vpack.c.bf16 %v1710_v19, %v1709_v57  ;;  %v3958_v20 = vpop.eup %3957  ;;  %v1176_v27 = vmul.f32 %v3956_v59, %v5475_v10  ;;  %3969 = vrcp.f32 %v4910_v53 }
 0x525   : > { %v1147_v36 = vpop.xlane.xlu0 %1146  ;;  %v1175_v60 = vmul.f32 %v3958_v20, %v5476_v7  ;;  %3971 = vrcp.f32 %v4919_v6 }
 0x526   : > { %v3960_v44 = vpop.eup %3959  ;;  %v1674_v46 = vsel %vm765_vm2, %v935_v40, %v1176_v27  ;;  %3973 = vrcp.f32 %v4922_v15  ;;  %v5488_v27 = vld [vmem:[#allocation51_spill] sm:$0xff] }
 0x527   : > { %v1417_v8 = vmul.f32 %v3960_v44, %v5477_v39  ;;  %v1673_v17 = vsel %vm765_vm2, %v934_v0, %v1175_v60  ;;  %v1391_v45 = vpop.xlane.xlu1 %1390  ;;  %3975 = vrcp.f32 %v1150_v18  ;;  %v5489_v60 = vld [vmem:[#allocation46_spill] sm:$0xff]  ;;  %v5494_v18 = vld [vmem:[#allocation40_spill] sm:$0xff] }
 0x528   : > { %v3962_v21 = vpop.eup %3961  ;;  %3977 = vrcp.f32 %v1147_v36  ;;  %v5486_v36 = vld [vmem:[#allocation48_spill] sm:$0xff]  ;;  %v5490_v39 = vld [vmem:[#allocation42_spill] sm:$0xff] }
 0x529   : > { %v1388_v3 = vpop.xlane.xlu0 %1387  ;;  %v1416_v42 = vmul.f32 %v3962_v21, %v5478_v54  ;;  %v1691_v62 = vsel %vm1681_vm5, %v1674_v46, %v1417_v8  ;;  %v5487_v21 = vld [vmem:[#allocation50_spill] sm:$0xff]  ;;  %v5491_v54 = vld [vmem:[#allocation39_spill] sm:$0xff]  ;;  %v5495_v46 = vld [vmem:[#allocation37_spill] sm:$0xff] }
 0x52a   : > { %v3964_v49 = vpop.eup %3963 }
 0x52b   : > { %v1658_v13 = vmul.f32 %v3964_v49, %v5481_v50  ;;  %v1690_v5 = vsel %vm1681_vm5, %v1673_v17, %v1416_v42  ;;  %v5493_v50 = vld [vmem:[#allocation49_spill] sm:$0xff] }
 0x52c   : > { %v3966_v30 = vpop.eup %3965 }
 0x52d   : > { %v1657_v25 = vmul.f32 %v3966_v30, %v5482_v12  ;;  %v1141_v29 = vpop.xlane.xlu0 %1140  ;;  %v1708_v28 = vsel %vm1698_vm6, %v1691_v62, %v1658_v13  ;;  %v3968_v51 = vpop.eup %3967 }
 0x52e   : > { %3979 = vrcp.f32 %v1141_v29  ;;  %v3970_v24 = vpop.eup %3969  ;;  %v940_v8 = vmul.f32 %v3968_v51, %v5490_v39  ;;  %v5496_v29 = vld [vmem:[#allocation43_spill] sm:$0xff]  ;;  %v5498_v51 = vld [vmem:[#allocation41_spill] sm:$0xff] }
 0x52f   : > { %v1707_v58 = vsel %vm1698_vm6, %v1690_v5, %v1657_v25  ;;  %v3972_v53 = vpop.eup %3971  ;;  %v941_v62 = vmul.f32 %v3970_v24, %v5496_v29 }
 0x530   : > { %v5033_v33 = vpack.c.bf16 %v1708_v28, %v1707_v58  ;;  %v3974_v9 = vpop.eup %3973  ;;  %v938_v10 = vmul.f32 %v3972_v53, %v5487_v21  ;;  %v5497_v28 = vld [vmem:[#allocation38_spill] sm:$0xff] }
 0x531   : > { %v1382_v2 = vpop.xlane.xlu0 %1381  ;;  %v3976_v15 = vpop.eup %3975  ;;  %v939_v7 = vmul.f32 %v3974_v9, %v5488_v27 }
 0x532   : > { %3981 = vrcp.f32 %v1382_v2  ;;  %v3978_v55 = vpop.eup %3977  ;;  %v1182_v42 = vmul.f32 %v3976_v15, %v5491_v54 }
 0x533   : > { %v1181_v0 = vmul.f32 %v3978_v55, %v5492_v11 }
 0x535   : > { %v1144_v26 = vpop.xlane.xlu1 %1143  ;;  %v1623_v23 = vpop.xlane.xlu0 %1622 }
 0x536   : > { %3983 = vrcp.f32 %v1144_v26 }
 0x537   : > { %3985 = vrcp.f32 %v1623_v23  ;;  %v1680_v23 = vsel %vm765_vm2, %v941_v62, %v1182_v42 }
 0x538   : > { %v3980_v41 = vpop.eup %3979 }
 0x539   : > { %v1385_v47 = vpop.xlane.xlu1 %1384  ;;  %v1629_v4 = vpop.xlane.xlu0 %1628  ;;  %v1179_v37 = vmul.f32 %v3980_v41, %v5483_v32 }
 0x53a   : > { %3987 = vrcp.f32 %v1385_v47  ;;  %v1679_v47 = vsel %vm765_vm2, %v940_v8, %v1181_v0 }
 0x53b   : > { %3989 = vrcp.f32 %v1391_v45  ;;  %v1677_v1 = vsel %vm765_vm2, %v938_v10, %v1179_v37 }
 0x53c   : > { %3991 = vrcp.f32 %v1388_v3  ;;  %v3982_v56 = vpop.eup %3981 }
 0x53d   : > { %3993 = vrcp.f32 %v1629_v4  ;;  %v1626_v6 = vpop.xlane.xlu1 %1625  ;;  %v1420_v59 = vmul.f32 %v3982_v56, %v5485_v61 }
 0x53e   : > { %3995 = vrcp.f32 %v1626_v6 }
 0x53f   : > { %v1694_v12 = vsel %vm1681_vm5, %v1677_v1, %v1420_v59 }
 0x540   : > { %v3984_v22 = vpop.eup %3983 }
 0x541   : > { %v1632_v63 = vpop.xlane.xlu1 %1631  ;;  %v3986_v43 = vpop.eup %3985  ;;  %v1180_v19 = vmul.f32 %v3984_v22, %v5484_v34 }
 0x542   : > { %3997 = vrcp.f32 %v1632_v63  ;;  %v1661_v3 = vmul.f32 %v3986_v43, %v5489_v60 }
 0x543   : > { %v1678_v40 = vsel %vm765_vm2, %v939_v7, %v1180_v19 }
 0x544   : > { %v3988_v35 = vpop.eup %3987  ;;  %v1711_v5 = vsel %vm1698_vm6, %v1694_v12, %v1661_v3 }
 0x545   : > { %v3990_v14 = vpop.eup %3989  ;;  %v1421_v20 = vmul.f32 %v3988_v35, %v5486_v36 }
 0x546   : > { %v3992_v57 = vpop.eup %3991  ;;  %v1423_v30 = vmul.f32 %v3990_v14, %v5494_v18 }
 0x547   : > { %v3994_v44 = vpop.eup %3993  ;;  %v1422_v17 = vmul.f32 %v3992_v57, %v5495_v46  ;;  %v1695_v25 = vsel %vm1681_vm5, %v1678_v40, %v1421_v20 }
 0x548   : > { %v3996_v49 = vpop.eup %3995  ;;  %v1663_v58 = vmul.f32 %v3994_v44, %v5497_v28  ;;  %v1697_v53 = vsel %vm1681_vm5, %v1680_v23, %v1423_v30 }
 0x549   : > { %v1662_v13 = vmul.f32 %v3996_v49, %v5493_v50  ;;  %v1696_v9 = vsel %vm1681_vm5, %v1679_v47, %v1422_v17 }
 0x54a   : > { %v1713_v24 = vsel %vm1698_vm6, %v1696_v9, %v1663_v58  ;;  %1726 = sbr.rel (%p3289_p9) target bundleno = 4896 (0x1320), region = 64 }
 0x54b   : > { %v1712_v45 = vsel %vm1698_vm6, %v1695_v25, %v1662_v13 }
 0x54c   : > { %v3998_v2 = vpop.eup %3997  ;;  %v5059_v26 = vpack.c.bf16 %v1712_v45, %v1711_v5 }
 0x54d   : > { %v1664_v4 = vmul.f32 %v3998_v2, %v5498_v51 }
 0x54f   : > { %v1714_v6 = vsel %vm1698_vm6, %v1697_v53, %v1664_v4 }
 0x550   : > { %v5068_v15 = vpack.c.bf16 %v1714_v6, %v1713_v24 }
 0x551   : > { %1730 = sbr.rel (%p3290_p10) target bundleno = 1368 (0x558), region = 68  ;;  %vm1739_vm7 = vcmask (!%p3290_p10), 516096   ;;  %v4115_v55 = vmov (!%p3290_p10), 0.0  }
 0x552   : > { %1731 = vst.msk [vmem:[#allocation2] sm:$0xff] (!%p3290_p10), %vm475_vm0, %v4115_v55  ;;  %1732 = vst.msk [vmem:[#allocation2 + $0x8] sm:$0xff] (!%p3290_p10), %vm475_vm0, %v4115_v55 }
 0x553   : > { %1733 = vst.msk [vmem:[#allocation2 + $0x10] sm:$0xff] (!%p3290_p10), %vm475_vm0, %v4115_v55  ;;  %1734 = vst.msk [vmem:[#allocation2 + $0x18] sm:$0xff] (!%p3290_p10), %vm475_vm0, %v4115_v55 }
 0x554   : > { %1735 = vst.msk [vmem:[#allocation2 + $0x20] sm:$0xff] (!%p3290_p10), %vm475_vm0, %v4115_v55  ;;  %1736 = vst.msk [vmem:[#allocation2 + $0x28] sm:$0xff] (!%p3290_p10), %vm475_vm0, %v4115_v55 }
 0x555   : > { %1737 = vst.msk [vmem:[#allocation2 + $0x30] sm:$0xff] (!%p3290_p10), %vm475_vm0, %v4115_v55  ;;  %1738 = vst.msk [vmem:[#allocation2 + $0x38] sm:$0xff] (!%p3290_p10), %vm475_vm0, %v4115_v55 }
 0x556   : > { %1740 = vst.msk [vmem:[#allocation3] sm:$0x1] (!%p3290_p10), %vm1739_vm7, %v4115_v55 }
 0x558 PF: > { %v3999_v41 = vld [vmem:[%s5364_s3] sm:$0xff]   ;;  %1893 = vxpose.xlu0.c.b16.start [1/8] (narrow) %v4957_v48, 64  ;;  %v4000_v63 = vld [vmem:[%s5364_s3 + $0x8] sm:$0xff]   ;;  %v4001_v22 = vld [vmem:[%s5364_s3 + $0x10] sm:$0xff]   ;;  %vm2045_vm8 = vcmask 516096   ;;  %p3304_p11 = scmp.ne.s32.totalorder %s4086_s13, 1 }
 0x559   : > { %v5499_v56 = vld [vmem:[#allocation8_spill] sm:$0xff]  ;;  %3508 = vmatprep.subr.bf16.mxu0 %v3999_v41  ;;  %v4002_v43 = vld [vmem:[%s5364_s3 + $0x18] sm:$0xff]   ;;  %v5500_v35 = vld [vmem:[#allocation9_spill] sm:$0xff]  ;;  %s4116_s13 = smov (!%p3304_p11), 112   ;;  %vm4118_vm9 = vmmov (!%p3304_p11), 0   ;;  %s4119_s21 = smov (!%p3304_p11), 96  }
 0x55a   : > { %3516 = vmatprep.mubr.msk.bf16.mxu0 %vm475_vm0, %v5499_v56  ;;  %3509 = vmatpush3.bf16.msra.mxu0 %v3999_v41  ;;  %v5501_v14 = vld [vmem:[#allocation10_spill] sm:$0xff]  ;;  %v5502_v32 = vld [vmem:[#allocation11_spill] sm:$0xff]  ;;  %v5503_v37 = vld [vmem:[#allocation12_spill] sm:$0xff]  ;;  %v1991_v56 = vunpack.c.l.bf16 %v4957_v48  ;;  %s4120_s22 = smov (!%p3304_p11), 80  }
 0x55b   : > { %3510 = vmatprep.subr.bf16.mxu0 %v4000_v63  ;;  %v5504_v34 = vld [vmem:[#allocation13_spill] sm:$0xff]  ;;  %v5505_v19 = vld [vmem:[#allocation14_spill] sm:$0xff]  ;;  %v5506_v57 = vld [vmem:[#allocation15_spill] sm:$0xff] }
 0x55c   : > { %1894 = vxpose.xlu0.c.b16.cont [2/8] (narrow) %v4966_v52, 64  ;;  %v3291_v36 = vld [vmem:[%s5365_s4] ss:$0 sm:$0xff] }
 0x55e   : > { %3511 = vmatpush3.bf16.msra.mxu0 %v4000_v63  ;;  %v1992_v63 = vunpack.c.h.bf16 %v4957_v48 }
 0x55f   : > { %3512 = vmatprep.subr.bf16.mxu0 %v4001_v22 }
 0x560   : > { %1895 = vxpose.xlu0.c.b16.cont [3/8] (narrow) %v4998_v16, 64 }
 0x562   : > { %3513 = vmatpush3.bf16.msra.mxu0 %v4001_v22  ;;  %v1993_v22 = vunpack.c.l.bf16 %v4966_v52 }
 0x563   : > { %3514 = vmatprep.subr.bf16.mxu0 %v4002_v43 }
 0x564   : > { %1896 = vxpose.xlu0.c.b16.cont [4/8] (narrow) %v4980_v38, 64 }
 0x566   : > { %3515 = vmatpush3.bf16.msra.mxu0 %v4002_v43  ;;  %v2007_v43 = vsel %vm475_vm0, %v1991_v56, 0.0  ;;  %v1885_v56 = vld [vmem:[#allocation2] sm:$0xff] }
 0x568   : > { %1897 = vxpose.xlu0.c.b16.cont [5/8] (narrow) %v5033_v33, 64 }
 0x569   : > { %3517 = vmatmul.mubr.msk.bf16.vlgmr.msra.gmra.mrb[0].mxu0 %vm475_vm0, %v5500_v35  ;;  %v2008_v35 = vsel %vm475_vm0, %v1992_v63, 0.0 }
 0x56a   : > { %3520 = vmatprep.mubr.msk.bf16.mxu0 %vm475_vm0, %v5501_v14  ;;  %v2009_v14 = vadd.f32 %v2008_v35, %v2007_v43 }
 0x56c   : > { %1898 = vxpose.xlu0.c.b16.cont [6/8] (narrow) %v5016_v31, 64 }
 0x570   : > { %1899 = vxpose.xlu0.c.b16.cont [7/8] (narrow) %v5059_v26, 64 }
 0x571   : > { %3521 = vmatmul.mubr.msk.bf16.gmra.mrb[4].mxu0 %vm475_vm0, %v5502_v32  ;;  %v1994_v32 = vunpack.c.h.bf16 %v4966_v52 }
 0x572   : > { %3524 = vmatprep.mubr.msk.bf16.mxu0 %vm475_vm0, %v5503_v37  ;;  %v2010_v37 = vsel %vm475_vm0, %v1993_v22, 0.0  ;;  %v1888_v22 = vld [vmem:[#allocation2 + $0x18] sm:$0xff] }
 0x574   : > { %1900 = vxpose.xlu0.c.b16.end [8/8] (narrow) %v5068_v15, 64 }
 0x579   : > { %3525 = vmatmul.mubr.msk.bf16.gmra.mrb[8].mxu0 %vm475_vm0, %v5504_v34  ;;  %v2011_v34 = vadd.f32 %v2010_v37, %v2009_v14  ;;  %v1886_v14 = vld [vmem:[#allocation2 + $0x8] sm:$0xff] }
 0x57a   : > { %3528 = vmatprep.mubr.msk.bf16.mxu0 %vm475_vm0, %v5505_v19  ;;  %v1995_v19 = vunpack.c.l.bf16 %v4998_v16 }
 0x581   : > { %3529 = vmatmul.mubr.msk.bf16.gmra.mrb[12].mxu0 %vm475_vm0, %v5506_v57  ;;  %v2012_v57 = vsel %vm475_vm0, %v1994_v32, 0.0 }
 0x5be   : > { %v1901_v61 = vpop.trf.xlu0 }
 0x5bf   : > { %3548 = vmatprep.mubr.bf16.mxu1 %v1901_v61  ;;  %v2013_v61 = vadd.f32 %v2012_v57, %v2011_v34 }
 0x5c2   : > { %v1902_v6 = vpop.trf.xlu0 }
 0x5c6   : > { %v1903_v55 = vpop.trf.xlu0 }
 0x5ca   : > { %v1904_v41 = vpop.trf.xlu0 }
 0x63c   : > { %v3518_v59 = vpop.f32.mrb[0].mxu0 }
 0x63d   : > { %v1814_v20 = vpop.f32.mrb[1].mxu0  ;;  %v1823_v21 = vadd.f32 %v3518_v59, %v3291_v36  ;;  %v1996_v59 = vunpack.c.h.bf16 %v4998_v16 }
 0x63e   : > { %v3519_v44 = vpop.f32.mrb[2].mxu0  ;;  %v1815_v7 = vadd.f32 %v3291_v36, %v1814_v20 }
 0x63f   : > { %v1826_v10 = vadd.f32 %v3519_v44, %v3291_v36  ;;  %v1817_v27 = vpop.f32.mrb[3].mxu0  ;;  %v1997_v44 = vunpack.c.l.bf16 %v4980_v38 }
 0x640   : > { %v1818_v60 = vadd.f32 %v3291_v36, %v1817_v27  ;;  %v1998_v27 = vunpack.c.h.bf16 %v4980_v38 }
 0x641   : > { %v1878_v3 = vpack.c.bf16 %v1826_v10, %v1823_v21  ;;  %v2016_v21 = vsel %vm475_vm0, %v1996_v59, 0.0  ;;  %v1889_v59 = vld [vmem:[#allocation2 + $0x20] sm:$0xff] }
 0x642   : > { %v1877_v49 = vpack.c.bf16 %v1818_v60, %v1815_v7  ;;  %v2018_v7 = vsel %vm475_vm0, %v1997_v44, 0.0 }
 0x644   : > { %v3522_v39 = vpop.f32.mrb[4].mxu0  ;;  %3532 = vmatprep.subr.bf16.mxu1 %v1877_v49 }
 0x645   : > { %v1830_v8 = vpop.f32.mrb[5].mxu0  ;;  %3533 = vmatpush3.bf16.msra.mxu1 %v1877_v49  ;;  %v1839_v42 = vadd.f32 %v3522_v39, %v3291_v36  ;;  %v2020_v49 = vsel %vm475_vm0, %v1998_v27, 0.0 }
 0x646   : > { %v3523_v54 = vpop.f32.mrb[6].mxu0  ;;  %3534 = vmatprep.subr.bf16.mxu1 %v1878_v3  ;;  %v1831_v1 = vadd.f32 %v3291_v36, %v1830_v8  ;;  %v2000_v8 = vunpack.c.h.bf16 %v5033_v33 }
 0x647   : > { %v1842_v11 = vadd.f32 %v3523_v54, %v3291_v36  ;;  %v1833_v0 = vpop.f32.mrb[7].mxu0 }
 0x648   : > { %v1834_v40 = vadd.f32 %v3291_v36, %v1833_v0  ;;  %v2024_v0 = vsel %vm475_vm0, %v2000_v8, 0.0  ;;  %v4003_v8 = vld [vmem:[%s5368_s7] sm:$0xff] (!%p3304_p11)  }
 0x649   : > { %v1880_v50 = vpack.c.bf16 %v1842_v11, %v1839_v42  ;;  %3535 = vmatpush3.bf16.msra.mxu1 %v1878_v3  ;;  %v1999_v3 = vunpack.c.l.bf16 %v5033_v33  ;;  %v2001_v11 = vunpack.c.l.bf16 %v5016_v31  ;;  %3556 = vmatprep.subr.bf16.mxu0 (!%p3304_p11), %v4003_v8 }
 0x64a   : > { %v1879_v13 = vpack.c.bf16 %v1834_v40, %v1831_v1  ;;  %v2002_v40 = vunpack.c.h.bf16 %v5016_v31  ;;  %3557 = vmatpush3.bf16.msra.mxu0 (!%p3304_p11), %v4003_v8 }
 0x64b   : > { %v2022_v54 = vsel %vm475_vm0, %v1999_v3, 0.0 }
 0x64c   : > { %v3526_v18 = vpop.f32.mrb[8].mxu0  ;;  %3536 = vmatprep.subr.bf16.mxu1 %v1879_v13 }
 0x64d   : > { %v1846_v30 = vpop.f32.mrb[9].mxu0  ;;  %3537 = vmatpush3.bf16.msra.mxu1 %v1879_v13  ;;  %v1855_v17 = vadd.f32 %v3526_v18, %v3291_v36  ;;  %v2003_v18 = vunpack.c.l.bf16 %v5059_v26 }
 0x64e   : > { %v3527_v46 = vpop.f32.mrb[10].mxu0  ;;  %3538 = vmatprep.subr.bf16.mxu1 %v1880_v50  ;;  %v1847_v29 = vadd.f32 %v3291_v36, %v1846_v30  ;;  %v2028_v30 = vsel %vm475_vm0, %v2002_v40, 0.0 }
 0x64f   : > { %v1858_v12 = vadd.f32 %v3527_v46, %v3291_v36  ;;  %v1849_v25 = vpop.f32.mrb[11].mxu0 }
 0x650   : > { %v1850_v62 = vadd.f32 %v3291_v36, %v1849_v25 }
 0x651   : > { %v1882_v5 = vpack.c.bf16 %v1858_v12, %v1855_v17  ;;  %3539 = vmatpush3.bf16.msra.mxu1 %v1880_v50  ;;  %v2026_v50 = vsel %vm475_vm0, %v2001_v11, 0.0  ;;  %v2004_v17 = vunpack.c.h.bf16 %v5059_v26  ;;  %v2030_v12 = vsel %vm475_vm0, %v2003_v18, 0.0 }
 0x652   : > { %v1881_v28 = vpack.c.bf16 %v1850_v62, %v1847_v29  ;;  %v2005_v29 = vunpack.c.l.bf16 %v5068_v15 }
 0x653   : > { %v2032_v62 = vsel %vm475_vm0, %v2004_v17, 0.0 }
 0x654   : > { %v3530_v58 = vpop.f32.mrb[12].mxu0  ;;  %3540 = vmatprep.subr.bf16.mxu1 %v1881_v28 }
 0x655   : > { %v1862_v45 = vpop.f32.mrb[13].mxu0  ;;  %3541 = vmatpush3.bf16.msra.mxu1 %v1881_v28  ;;  %v1871_v23 = vadd.f32 %v3530_v58, %v3291_v36  ;;  %v2006_v28 = vunpack.c.h.bf16 %v5068_v15  ;;  %v2034_v58 = vsel %vm475_vm0, %v2005_v29, 0.0 }
 0x656   : > { %v3531_v2 = vpop.f32.mrb[14].mxu0  ;;  %3542 = vmatprep.subr.bf16.mxu1 %v1882_v5  ;;  %v1863_v4 = vadd.f32 %v3291_v36, %v1862_v45 }
 0x657   : > { %v1874_v47 = vadd.f32 %v3531_v2, %v3291_v36  ;;  %v1865_v51 = vpop.f32.mrb[15].mxu0  ;;  %v2036_v2 = vsel %vm475_vm0, %v2006_v28, 0.0 }
 0x658   : > { %v1866_v53 = vadd.f32 %v3291_v36, %v1865_v51  ;;  %v2014_v36 = vsel %vm475_vm0, %v1995_v19, 0.0 }
 0x659   : > { %v1884_v9 = vpack.c.bf16 %v1874_v47, %v1871_v23  ;;  %3543 = vmatpush3.bf16.msra.mxu1 %v1882_v5  ;;  %v2015_v20 = vadd.f32 %v2014_v36, %v2013_v61  ;;  %v1891_v61 = vld [vmem:[#allocation2 + $0x30] sm:$0xff] }
 0x65a   : > { %v1883_v24 = vpack.c.bf16 %v1866_v53, %v1863_v4 }
 0x65b   : > { %v2017_v10 = vadd.f32 %v2016_v21, %v2015_v20  ;;  %v1892_v20 = vld [vmem:[#allocation2 + $0x38] sm:$0xff] }
 0x65c   : > { %3544 = vmatprep.subr.bf16.mxu1 %v1883_v24 }
 0x65d   : > { %3545 = vmatpush3.bf16.msra.mxu1 %v1883_v24  ;;  %v2019_v60 = vadd.f32 %v2018_v7, %v2017_v10  ;;  %v1890_v10 = vld [vmem:[#allocation2 + $0x28] sm:$0xff] }
 0x65e   : > { %3546 = vmatprep.subr.bf16.mxu1 %v1884_v9 }
 0x65f   : > { %v2021_v39 = vadd.f32 %v2020_v49, %v2019_v60 }
 0x661   : > { %3547 = vmatpush3.bf16.msra.mxu1 %v1884_v9  ;;  %v2023_v42 = vadd.f32 %v2022_v54, %v2021_v39 }
 0x663   : > { %v2025_v1 = vadd.f32 %v2024_v0, %v2023_v42 }
 0x664   : > { %3549 = vmatmul.mubr.bf16.vlgmr.msra.gmra.mrb[0].mxu1 %v1902_v6  ;;  %v1990_v6 = vld [vmem:[#allocation3] sm:$0x1] }
 0x665   : > { %3552 = vmatprep.mubr.bf16.mxu1 %v1903_v55  ;;  %v2027_v13 = vadd.f32 %v2026_v50, %v2025_v1 }
 0x667   : > { %v2029_v46 = vadd.f32 %v2028_v30, %v2027_v13 }
 0x669   : > { %v2031_v25 = vadd.f32 %v2030_v12, %v2029_v46 }
 0x66b   : > { %v2033_v5 = vadd.f32 %v2032_v62, %v2031_v25 }
 0x66c   : > { %3553 = vmatmul.mubr.bf16.gmra.mrb[4].mxu1 %v1904_v41  ;;  %v1887_v41 = vld [vmem:[#allocation2 + $0x10] sm:$0xff] }
 0x66d   : > { %v2035_v45 = vadd.f32 %v2034_v58, %v2033_v5 }
 0x66f   : > { %v2037_v23 = vadd.f32 %v2036_v2, %v2035_v45 }
 0x671   : > { %v2038_v47 = vrot.slane %v2037_v23, 4 }
 0x673   : > { %v2039_v51 = vadd.f32 %v2038_v47, %v2037_v23 }
 0x675   : > { %v2040_v4 = vrot.slane %v2039_v51, 2 }
 0x677   : > { %v2041_v53 = vadd.f32 %v2040_v4, %v2039_v51  ;;  %v4117_v4 = vmov (!%p3304_p11), 0.0  }
 0x678   : > { %3566 = vmatprep.subr.bf16.mxu1 (!%p3304_p11), %v4117_v4  ;;  %3578 = vmatprep.subr.bf16.mxu0 (!%p3304_p11), %v4117_v4 }
 0x679   : > { %v2042_v9 = vrot.slane %v2041_v53, 1  ;;  %3568 = vmatprep.mubr.msk.bf16.mxu1 (!%p3304_p11), %vm4118_vm9, %v4117_v4 }
 0x67b   : > { %v2043_v24 = vadd.f32 %v2042_v9, %v2041_v53 }
 0x67d   : > { %v2044_v55 = vadd.f32 %v2043_v24, %v1990_v6 }
 0x67f   : > { %2046 = vst.msk [vmem:[#allocation3] sm:$0x1] %vm2045_vm8, %v2044_v55 }
 0x686   : > { %v5160_v39 = vld [vmem:[#allocation3] ss:$0 sm:$0xff] (!%p3304_p11) }
 0x687   : > { %2097 = vbcast.lane.b32.xlu1 (!%p3304_p11), %v5160_v39, 272  ;;  %2089 = vbcast.lane.b32.xlu0 (!%p3304_p11), %v5160_v39, 256 }
 0x68b   : > { %2101 = vbcast.lane.b32.xlu1 (!%p3304_p11), %v5160_v39, 280  ;;  %2093 = vbcast.lane.b32.xlu0 (!%p3304_p11), %v5160_v39, 264 }
 0x6f9   : > { %v2098_v11 = vpop.permute.xlu1 (!%p3304_p11), %2097  ;;  %v2090_v0 = vpop.permute.xlu0 (!%p3304_p11), %2089 }
 0x6fa   : > { %v2121_v1 = vadd.f32 (!%p3304_p11), 1e-05, %v2098_v11  ;;  %v2119_v40 = vadd.f32 (!%p3304_p11), 1e-05, %v2090_v0 }
 0x6fc   : > { %4008 = vrcp.f32 (!%p3304_p11), %v2121_v1 }
 0x6fd   : > { %v2102_v50 = vpop.permute.xlu1 (!%p3304_p11), %2101  ;;  %v2094_v13 = vpop.permute.xlu0 (!%p3304_p11), %2093  ;;  %4010 = vrcp.f32 (!%p3304_p11), %v2119_v40 }
 0x6fe   : > { %v2122_v18 = vadd.f32 (!%p3304_p11), 1e-05, %v2102_v50  ;;  %v2120_v30 = vadd.f32 (!%p3304_p11), 1e-05, %v2094_v13 }
 0x700   : > { %4012 = vrcp.f32 (!%p3304_p11), %v2122_v18 }
 0x701   : > { %4014 = vrcp.f32 (!%p3304_p11), %v2120_v30 }
 0x706   : > { %v4009_v46 = vpop.eup (!%p3304_p11), %4008 }
 0x707   : > { %v4011_v25 = vpop.eup (!%p3304_p11), %4010 }
 0x70a   : > { %v4013_v5 = vpop.eup (!%p3304_p11), %4012 }
 0x70b   : > { %v4015_v28 = vpop.eup (!%p3304_p11), %4014 }
 0x737   : > { %v3550_v63 = vpop.f32.mrb[0].mxu1 }
 0x738   : > { %v1976_v43 = vadd.f32 %v3550_v63, %v1887_v41  ;;  %v1943_v35 = vpop.f32.mrb[1].mxu1 }
 0x739   : > { %v1974_v32 = vadd.f32 %v1943_v35, %v1885_v56  ;;  %v3551_v37 = vpop.f32.mrb[2].mxu1 }
 0x73a   : > { %1984 = vst.msk [vmem:[#allocation2 + $0x10] sm:$0xff] %vm475_vm0, %v1976_v43  ;;  %v1977_v34 = vadd.f32 %v3551_v37, %v1888_v22  ;;  %v1946_v19 = vpop.f32.mrb[3].mxu1 }
 0x73b   : > { %1982 = vst.msk [vmem:[#allocation2] sm:$0xff] %vm475_vm0, %v1974_v32  ;;  %v1975_v57 = vadd.f32 %v1946_v19, %v1886_v14 }
 0x73c   : > { %1985 = vst.msk [vmem:[#allocation2 + $0x18] sm:$0xff] %vm475_vm0, %v1977_v34 }
 0x73d   : > { %1983 = vst.msk [vmem:[#allocation2 + $0x8] sm:$0xff] %vm475_vm0, %v1975_v57 }
 0x73f   : > { %v3554_v36 = vpop.f32.mrb[4].mxu1  ;;  %2050 = sbr.rel (%p3304_p11) target bundleno = 4896 (0x1320), region = 72 }
 0x740   : > { %v1980_v44 = vadd.f32 %v3554_v36, %v1891_v61  ;;  %v1959_v21 = vpop.f32.mrb[5].mxu1 }
 0x741   : > { %v1978_v27 = vadd.f32 %v1959_v21, %v1889_v59  ;;  %v3555_v7 = vpop.f32.mrb[6].mxu1  ;;  %v2053_v54 = vld [vmem:[#allocation2 + $0x10] sm:$0xff] (!%p3304_p11) }
 0x742   : > { %1988 = vst.msk [vmem:[#allocation2 + $0x30] sm:$0xff] %vm475_vm0, %v1980_v44  ;;  %v1981_v60 = vadd.f32 %v3555_v7, %v1892_v20  ;;  %v1962_v3 = vpop.f32.mrb[7].mxu1  ;;  %2061 = vrot.lane.b32.xlu0 (!%p3304_p11), %v2053_v54, %s4116_s13  ;;  %v2051_v29 = vld [vmem:[#allocation2] sm:$0xff] (!%p3304_p11) }
 0x743   : > { %1986 = vst.msk [vmem:[#allocation2 + $0x20] sm:$0xff] %vm475_vm0, %v1978_v27  ;;  %v1979_v49 = vadd.f32 %v1962_v3, %v1890_v10  ;;  %v2054_v42 = vld [vmem:[#allocation2 + $0x18] sm:$0xff] (!%p3304_p11)  ;;  %v2128_v2 = vmul.f32 (!%p3304_p11), %v4011_v25, %v2051_v29 }
 0x744   : > { %1989 = vst.msk [vmem:[#allocation2 + $0x38] sm:$0xff] %vm475_vm0, %v1981_v60  ;;  %2063 = vrot.lane.b32.xlu1 (!%p3304_p11), %v2054_v42, %s4116_s13  ;;  %v2052_v62 = vld [vmem:[#allocation2 + $0x8] sm:$0xff] (!%p3304_p11) }
 0x745   : > { %1987 = vst.msk [vmem:[#allocation2 + $0x28] sm:$0xff] %vm475_vm0, %v1979_v49  ;;  %v2130_v23 = vmul.f32 (!%p3304_p11), %v4015_v28, %v2052_v62 }
 0x747   : > { %v2143_v51 = vpack.c.bf16 %v2130_v23, %v2128_v2 }
 0x749   : > { %3558 = vmatprep.mubr.msk.bf16.mxu0 %vm765_vm2, %v2143_v51  ;;  %v2057_v3 = vld [vmem:[#allocation2 + $0x30] sm:$0xff] }
 0x74a   : > { %v2055_v7 = vld [vmem:[#allocation2 + $0x20] sm:$0xff] }
 0x74b   : > { %v2058_v60 = vld [vmem:[#allocation2 + $0x38] sm:$0xff] }
 0x74c   : > { %v2056_v27 = vld [vmem:[#allocation2 + $0x28] sm:$0xff] }
 0x7b4   : > { %v2062_v17 = vpop.permute.xlu0 %2061 }
 0x7b5   : > { %v2132_v58 = vmul.f32 %v4009_v46, %v2062_v17 }
 0x7b6   : > { %v2064_v12 = vpop.permute.xlu1 %2063 }
 0x7b7   : > { %v2134_v45 = vmul.f32 %v4013_v5, %v2064_v12 }
 0x7b9   : > { %v2144_v47 = vpack.c.bf16 %v2134_v45, %v2132_v58 }
 0x7bb   : > { %3559 = vmatmul.mubr.msk.bf16.vlgmr.msra.gmra.mrb[0].mxu0 %vm765_vm2, %v2144_v47 }
 0x88e   : > { %v3560_v53 = vpop.f32.mrb[0].mxu0 }
 0x88f   : > { %v2201_v9 = vpop.f32.mrb[1].mxu0 }
 0x890   : > { %v3561_v24 = vpop.f32.mrb[2].mxu0 }
 0x891   : > { %v5177_v6 = vpack.c.bf16 %v3561_v24, %v3560_v53  ;;  %v2204_v55 = vpop.f32.mrb[3].mxu0 }
 0x892   : > { %v2232_v41 = vpack.c.bf16 %v2204_v55, %v2201_v9 }
 0x894   : > { %2234 = vrot.lane.b32.xlu0 %v2232_v41, %s4116_s13 }
 0x906   : > { %v2235_v56 = vpop.permute.xlu0 %2234 }
 0x907   : > { %v2240_v63 = vsel %vm765_vm2, %v2235_v56, 0  ;;  %v4004_v56 = vld [vmem:[%s5369_s8] sm:$0xff]  }
 0x908   : > { %3567 = vmatpush3.bf16.xpose.msra.mxu1 %v2240_v63  ;;  %3579 = vmatpush3.bf16.msra.mxu0 %v4004_v56 }
 0x909   : > { %3572 = vmatprep.subr.bf16.mxu1 %v4117_v4  ;;  %3590 = vmatprep.subr.bf16.mxu0 %v4117_v4 }
 0x90f   : > { %3569 = vmatmul.mubr.msk.bf16.vlgmr.msra.gmra.mrb[0].mxu1 %vm765_vm2, %v2232_v41 }
 0x910   : > { %3574 = vmatprep.mubr.msk.bf16.mxu1 %vm4118_vm9, %v4117_v4 }
 0x9e2   : > { %v2276_v22 = vpop.f32.mrb[0].mxu1 }
 0x9e3   : > { %v3570_v43 = vpop.f32.mrb[1].mxu1  ;;  %v2283_v35 = vsel %vm765_vm2, %v2276_v22, -inf }
 0x9e4   : > { %2284 = vmax.xlane.f32.xlu1 %v2283_v35  ;;  %v2279_v14 = vpop.f32.mrb[2].mxu1 }
 0x9e5   : > { %v3571_v32 = vpop.f32.mrb[3].mxu1  ;;  %v2286_v37 = vsel %vm765_vm2, %v2279_v14, -inf }
 0x9e6   : > { %2287 = vmax.xlane.f32.xlu0 %v2286_v37 }
 0xa71   : > { %v2285_v34 = vpop.xlane.xlu1 %2284 }
 0xa72   : > { %v2289_v19 = vsub.f32 %v2276_v22, %v2285_v34 }
 0xa73   : > { %v2288_v57 = vpop.xlane.xlu0 %2287 }
 0xa74   : > { %v2291_v61 = vmul.f32 1.442695, %v2289_v19  ;;  %v2290_v59 = vsub.f32 %v2279_v14, %v2288_v57 }
 0xa76   : > { %4016 = vpow2.f32 %v2291_v61  ;;  %v2293_v36 = vmul.f32 1.442695, %v2290_v59 }
 0xa78   : > { %4018 = vpow2.f32 %v2293_v36 }
 0xa80   : > { %v4017_v20 = vpop.eup %4016 }
 0xa81   : > { %v2295_v44 = vsel %vm765_vm2, %v4017_v20, 0.0 }
 0xa82   : > { %v4019_v21 = vpop.eup %4018  ;;  %2296 = vadd.xlane.f32.xlu0 %v2295_v44 }
 0xa83   : > { %v2298_v10 = vsel %vm765_vm2, %v4019_v21, 0.0 }
 0xa84   : > { %2299 = vadd.xlane.f32.xlu1 %v2298_v10 }
 0xa95   : > { %2410 = vrot.lane.b32.xlu1 %v5177_v6, %s4116_s13 }
 0xa98   : > { %2306 = vrot.lane.b32.xlu0 %v2232_v41, %s4119_s21 }
 0xa99   : > { %2105 = vbcast.lane.b32.xlu1 %v5160_v39, 288 }
 0xa9c   : > { %2109 = vbcast.lane.b32.xlu0 %v5160_v39, 296 }
 0xa9d   : > { %2113 = vbcast.lane.b32.xlu1 %v5160_v39, 304 }
 0xaa0   : > { %2117 = vbcast.lane.b32.xlu0 %v5160_v39, 312 }
 0xaa1   : > { %2069 = vrot.lane.b32.xlu1 %v2055_v7, %s4119_s21 }
 0xaa4   : > { %2071 = vrot.lane.b32.xlu0 %v2056_v27, %s4119_s21 }
 0xaa5   : > { %2077 = vrot.lane.b32.xlu1 %v2057_v3, %s4120_s22 }
 0xaa8   : > { %2079 = vrot.lane.b32.xlu0 %v2058_v60, %s4120_s22 }
 0xb0f   : > { %v2297_v49 = vpop.xlane.xlu0 %2296 }
 0xb10   : > { %4020 = vrcp.f32 %v2297_v49 }
 0xb11   : > { %v2300_v8 = vpop.xlane.xlu1 %2299 }
 0xb12   : > { %4022 = vrcp.f32 %v2300_v8 }
 0xb13   : > { %v2307_v54 = vpop.permute.xlu0 %2306 }
 0xb14   : > { %3573 = vmatpush3.bf16.msra.mxu1 %v2307_v54 }
 0xb15   : > { %v2411_v42 = vpop.permute.xlu1 %2410  ;;  %3584 = vmatprep.subr.bf16.mxu1 %v4117_v4 }
 0xb16   : > { %v2416_v62 = vsel %vm765_vm2, %v2411_v42, 0 }
 0xb17   : > { %v2110_v39 = vpop.permute.xlu0 %2109 }
 0xb18   : > { %v2124_v11 = vadd.f32 1e-05, %v2110_v39 }
 0xb19   : > { %v2106_v0 = vpop.permute.xlu1 %2105 }
 0xb1a   : > { %v4021_v1 = vpop.eup %4020  ;;  %v2123_v40 = vadd.f32 1e-05, %v2106_v0  ;;  %4024 = vrcp.f32 %v2124_v11 }
 0xb1b   : > { %v2118_v50 = vpop.permute.xlu0 %2117  ;;  %v2303_v30 = vmul.f32 %v4021_v1, %v4017_v20 }
 0xb1c   : > { %v4023_v13 = vpop.eup %4022  ;;  %4026 = vrcp.f32 %v2123_v40  ;;  %v2126_v18 = vadd.f32 1e-05, %v2118_v50 }
 0xb1d   : > { %v2304_v46 = vmul.f32 %v4023_v13, %v4019_v21  ;;  %v2114_v17 = vpop.permute.xlu1 %2113 }
 0xb1e   : > { %v2125_v12 = vadd.f32 1e-05, %v2114_v17  ;;  %4028 = vrcp.f32 %v2126_v18 }
 0xb1f   : > { %v2305_v25 = vpack.c.bf16 %v2304_v46, %v2303_v30  ;;  %v2072_v29 = vpop.permute.xlu0 %2071 }
 0xb20   : > { %4030 = vrcp.f32 %v2125_v12 }
 0xb21   : > { %3575 = vmatmul.mubr.msk.bf16.vlgmr.msra.gmra.mrb[4].mxu1 %vm765_vm2, %v2305_v25  ;;  %v2070_v5 = vpop.permute.xlu1 %2069 }
 0xb22   : > { %3585 = vmatpush3.bf16.xpose.msra.mxu1 %v2416_v62  ;;  %3586 = vmatprep.mubr.msk.bf16.mxu1 %vm4118_vm9, %v4117_v4 }
 0xb23   : > { %3596 = vmatprep.subr.bf16.mxu1 %v4117_v4  ;;  %v2080_v2 = vpop.permute.xlu0 %2079 }
 0xb24   : > { %v4025_v28 = vpop.eup %4024 }
 0xb25   : > { %v2138_v58 = vmul.f32 %v4025_v28, %v2072_v29  ;;  %v2078_v51 = vpop.permute.xlu1 %2077  ;;  %v4005_v28 = vld [vmem:[%s5369_s8 + $0x8] sm:$0xff]  }
 0xb26   : > { %v4027_v45 = vpop.eup %4026 }
 0xb27   : > { %v2136_v23 = vmul.f32 %v4027_v45, %v2070_v5 }
 0xb28   : > { %v4029_v47 = vpop.eup %4028 }
 0xb29   : > { %3587 = vmatmul.mubr.msk.bf16.vlgmr.msra.gmra.mrb[8].mxu1 %vm765_vm2, %v5177_v6  ;;  %v2145_v53 = vpack.c.bf16 %v2138_v58, %v2136_v23  ;;  %v2142_v9 = vmul.f32 %v4029_v47, %v2080_v2 }
 0xb2a   : > { %v4031_v24 = vpop.eup %4030  ;;  %3598 = vmatprep.mubr.msk.bf16.mxu1 %vm4118_vm9, %v4117_v4  ;;  %3597 = vmatpush3.bf16.msra.mxu1 %v4005_v28 }
 0xb2b   : > { %v2140_v55 = vmul.f32 %v4031_v24, %v2078_v51  ;;  %3562 = vmatprep.mubr.msk.bf16.mxu0 %vm765_vm2, %v2145_v53  ;;  %3608 = vmatprep.subr.bf16.mxu1 %v4117_v4 }
 0xb2d   : > { %v2146_v41 = vpack.c.bf16 %v2142_v9, %v2140_v55 }
 0xb2f   : > { %3563 = vmatmul.mubr.msk.bf16.gmra.mrb[4].mxu0 %vm765_vm2, %v2146_v41 }
 0xb30   : > { %3580 = vmatprep.mubr.msk.bf16.mxu0 %vm4118_vm9, %v4117_v4 }
 0xbf4   : > { %v2346_v63 = vpop.f32.mrb[4].mxu1 }
 0xbf5   : > { %v3576_v22 = vpop.f32.mrb[5].mxu1 }
 0xbf6   : > { %v2349_v43 = vpop.f32.mrb[6].mxu1 }
 0xbf7   : > { %v2353_v35 = vpack.c.bf16 %v2349_v43, %v2346_v63  ;;  %v3577_v14 = vpop.f32.mrb[7].mxu1 }
 0xbf9   : > { %3581 = vmatmul.mubr.msk.bf16.vlgmr.msra.gmra.mrb[8].mxu0 %vm765_vm2, %v2353_v35 }
 0xbfa   : > { %3592 = vmatprep.mubr.msk.bf16.mxu0 %vm4118_vm9, %v4117_v4 }
 0xbfc   : > { %v2452_v32 = vpop.f32.mrb[8].mxu1 }
 0xbfd   : > { %v3588_v37 = vpop.f32.mrb[9].mxu1  ;;  %v2459_v34 = vsel %vm765_vm2, %v2452_v32, -inf }
 0xbfe   : > { %2460 = vmax.xlane.f32.xlu1 %v2459_v34  ;;  %v2455_v19 = vpop.f32.mrb[10].mxu1 }
 0xbff   : > { %v3589_v57 = vpop.f32.mrb[11].mxu1  ;;  %v2462_v61 = vsel %vm765_vm2, %v2455_v19, -inf }
 0xc00   : > { %2463 = vmax.xlane.f32.xlu0 %v2462_v61 }
 0xc02   : > { %v3564_v59 = vpop.f32.mrb[4].mxu0 }
 0xc03   : > { %v2217_v36 = vpop.f32.mrb[5].mxu0 }
 0xc04   : > { %v3565_v20 = vpop.f32.mrb[6].mxu0 }
 0xc05   : > { %v5221_v44 = vpack.c.bf16 %v3565_v20, %v3564_v59  ;;  %v2220_v21 = vpop.f32.mrb[7].mxu0 }
 0xc06   : > { %v5223_v10 = vpack.c.bf16 %v2220_v21, %v2217_v36 }
 0xc8b   : > { %v2461_v27 = vpop.xlane.xlu1 %2460 }
 0xc8c   : > { %v2465_v7 = vsub.f32 %v2452_v32, %v2461_v27 }
 0xc8d   : > { %v2464_v60 = vpop.xlane.xlu0 %2463 }
 0xc8e   : > { %v2467_v3 = vmul.f32 1.442695, %v2465_v7  ;;  %v2466_v49 = vsub.f32 %v2455_v19, %v2464_v60 }
 0xc90   : > { %4032 = vpow2.f32 %v2467_v3  ;;  %v2469_v8 = vmul.f32 1.442695, %v2466_v49 }
 0xc92   : > { %4034 = vpow2.f32 %v2469_v8 }
 0xc9a   : > { %v4033_v54 = vpop.eup %4032 }
 0xc9b   : > { %v2471_v42 = vsel %vm765_vm2, %v4033_v54, 0.0 }
 0xc9c   : > { %v4035_v39 = vpop.eup %4034  ;;  %2472 = vadd.xlane.f32.xlu0 %v2471_v42 }
 0xc9d   : > { %v2474_v11 = vsel %vm765_vm2, %v4035_v39, 0.0 }
 0xc9e   : > { %2475 = vadd.xlane.f32.xlu1 %v2474_v11 }
 0xcaf   : > { %2586 = vrot.lane.b32.xlu1 %v5223_v10, %s4116_s13 }
 0xcb2   : > { %2482 = vrot.lane.b32.xlu0 %v5177_v6, %s4119_s21 }
 0xccc   : > { %v2399_v0 = vpop.f32.mrb[8].mxu0 }
 0xccd   : > { %v3582_v1 = vpop.f32.mrb[9].mxu0 }
 0xcce   : > { %v2402_v40 = vpop.f32.mrb[10].mxu0 }
 0xccf   : > { %v2406_v50 = vpack.c.bf16 %v2402_v40, %v2399_v0  ;;  %v3583_v13 = vpop.f32.mrb[11].mxu0 }
 0xcd1   : > { %2407 = vst.msk [vmem:[#allocation4] sm:$0xff] %vm475_vm0, %v2406_v50 }
 0xd29   : > { %v2473_v18 = vpop.xlane.xlu0 %2472 }
 0xd2a   : > { %4036 = vrcp.f32 %v2473_v18 }
 0xd2b   : > { %v2476_v30 = vpop.xlane.xlu1 %2475 }
 0xd2c   : > { %4038 = vrcp.f32 %v2476_v30 }
 0xd2d   : > { %v2483_v46 = vpop.permute.xlu0 %2482 }
 0xd2e   : > { %3591 = vmatpush3.bf16.msra.mxu0 %v2483_v46 }
 0xd2f   : > { %3602 = vmatprep.subr.bf16.mxu0 %v4117_v4  ;;  %v2587_v6 = vpop.permute.xlu1 %2586 }
 0xd30   : > { %v2592_v5 = vsel %vm765_vm2, %v2587_v6, 0 }
 0xd34   : > { %v4037_v17 = vpop.eup %4036 }
 0xd35   : > { %v2479_v25 = vmul.f32 %v4037_v17, %v4033_v54 }
 0xd36   : > { %v4039_v12 = vpop.eup %4038 }
 0xd37   : > { %v2480_v29 = vmul.f32 %v4039_v12, %v4035_v39  ;;  %v4006_v39 = vld [vmem:[%s5369_s8 + $0x10] sm:$0xff]  }
 0xd39   : > { %v2481_v62 = vpack.c.bf16 %v2480_v29, %v2479_v25 }
 0xd3b   : > { %3593 = vmatmul.mubr.msk.bf16.vlgmr.msra.gmra.mrb[12].mxu0 %vm765_vm2, %v2481_v62 }
 0xd3c   : > { %3603 = vmatpush3.bf16.xpose.msra.mxu0 %v2592_v5  ;;  %3604 = vmatprep.mubr.msk.bf16.mxu0 %vm4118_vm9, %v4117_v4 }
 0xd3d   : > { %3614 = vmatprep.subr.bf16.mxu0 %v4117_v4 }
 0xd43   : > { %3605 = vmatmul.mubr.msk.bf16.vlgmr.msra.gmra.mrb[16].mxu0 %vm765_vm2, %v5223_v10 }
 0xd44   : > { %3616 = vmatprep.mubr.msk.bf16.mxu0 %vm4118_vm9, %v4117_v4  ;;  %3615 = vmatpush3.bf16.msra.mxu0 %v4006_v39 }
 0xd45   : > { %3626 = vmatprep.subr.bf16.mxu0 %v4117_v4 }
 0xe0e   : > { %v2522_v58 = vpop.f32.mrb[12].mxu0 }
 0xe0f   : > { %v3594_v45 = vpop.f32.mrb[13].mxu0 }
 0xe10   : > { %v2525_v2 = vpop.f32.mrb[14].mxu0 }
 0xe11   : > { %v2529_v23 = vpack.c.bf16 %v2525_v2, %v2522_v58  ;;  %v3595_v47 = vpop.f32.mrb[15].mxu0 }
 0xe13   : > { %3599 = vmatmul.mubr.msk.bf16.vlgmr.msra.gmra.mrb[12].mxu1 %vm765_vm2, %v2529_v23  ;;  %v4007_v23 = vld [vmem:[%s5369_s8 + $0x18] sm:$0xff]  }
 0xe14   : > { %3610 = vmatprep.mubr.msk.bf16.mxu1 %vm4118_vm9, %v4117_v4 }
 0xe16   : > { %v2628_v51 = vpop.f32.mrb[16].mxu0 }
 0xe17   : > { %v3606_v53 = vpop.f32.mrb[17].mxu0  ;;  %v2635_v9 = vsel %vm765_vm2, %v2628_v51, -inf }
 0xe18   : > { %2636 = vmax.xlane.f32.xlu1 %v2635_v9  ;;  %v2631_v24 = vpop.f32.mrb[18].mxu0 }
 0xe19   : > { %v3607_v55 = vpop.f32.mrb[19].mxu0  ;;  %v2638_v41 = vsel %vm765_vm2, %v2631_v24, -inf }
 0xe1a   : > { %2639 = vmax.xlane.f32.xlu0 %v2638_v41 }
 0xea5   : > { %v2637_v56 = vpop.xlane.xlu1 %2636 }
 0xea6   : > { %v2641_v63 = vsub.f32 %v2628_v51, %v2637_v56 }
 0xea7   : > { %v2640_v22 = vpop.xlane.xlu0 %2639 }
 0xea8   : > { %v2643_v43 = vmul.f32 1.442695, %v2641_v63  ;;  %v2642_v35 = vsub.f32 %v2631_v24, %v2640_v22 }
 0xeaa   : > { %4040 = vpow2.f32 %v2643_v43  ;;  %v2645_v14 = vmul.f32 1.442695, %v2642_v35 }
 0xeac   : > { %4042 = vpow2.f32 %v2645_v14 }
 0xeb4   : > { %v4041_v32 = vpop.eup %4040 }
 0xeb5   : > { %v2647_v37 = vsel %vm765_vm2, %v4041_v32, 0.0 }
 0xeb6   : > { %v4043_v34 = vpop.eup %4042  ;;  %2648 = vadd.xlane.f32.xlu0 %v2647_v37 }
 0xeb7   : > { %v2650_v19 = vsel %vm765_vm2, %v4043_v34, 0.0 }
 0xeb8   : > { %2651 = vadd.xlane.f32.xlu1 %v2650_v19 }
 0xec9   : > { %2762 = vrot.lane.b32.xlu1 %v5221_v44, %s4116_s13 }
 0xecc   : > { %2658 = vrot.lane.b32.xlu0 %v5223_v10, %s4119_s21 }
 0xee6   : > { %v2575_v57 = vpop.f32.mrb[12].mxu1 }
 0xee7   : > { %v3600_v61 = vpop.f32.mrb[13].mxu1 }
 0xee8   : > { %v2578_v59 = vpop.f32.mrb[14].mxu1 }
 0xee9   : > { %v2582_v36 = vpack.c.bf16 %v2578_v59, %v2575_v57  ;;  %v3601_v20 = vpop.f32.mrb[15].mxu1 }
 0xeeb   : > { %2583 = vst.msk [vmem:[#allocation4 + $0x8] sm:$0xff] %vm475_vm0, %v2582_v36 }
 0xf43   : > { %v2649_v21 = vpop.xlane.xlu0 %2648 }
 0xf44   : > { %4044 = vrcp.f32 %v2649_v21 }
 0xf45   : > { %v2652_v27 = vpop.xlane.xlu1 %2651 }
 0xf46   : > { %4046 = vrcp.f32 %v2652_v27 }
 0xf47   : > { %v2659_v7 = vpop.permute.xlu0 %2658 }
 0xf48   : > { %3609 = vmatpush3.bf16.msra.mxu1 %v2659_v7 }
 0xf49   : > { %3620 = vmatprep.subr.bf16.mxu1 %v4117_v4  ;;  %v2763_v10 = vpop.permute.xlu1 %2762 }
 0xf4a   : > { %v2768_v42 = vsel %vm765_vm2, %v2763_v10, 0 }
 0xf4e   : > { %v4045_v60 = vpop.eup %4044 }
 0xf4f   : > { %v2655_v49 = vmul.f32 %v4045_v60, %v4041_v32 }
 0xf50   : > { %v4047_v3 = vpop.eup %4046 }
 0xf51   : > { %v2656_v8 = vmul.f32 %v4047_v3, %v4043_v34 }
 0xf53   : > { %v2657_v54 = vpack.c.bf16 %v2656_v8, %v2655_v49 }
 0xf55   : > { %3611 = vmatmul.mubr.msk.bf16.vlgmr.msra.gmra.mrb[16].mxu1 %vm765_vm2, %v2657_v54 }
 0xf56   : > { %3621 = vmatpush3.bf16.xpose.msra.mxu1 %v2768_v42  ;;  %3622 = vmatprep.mubr.msk.bf16.mxu1 %vm4118_vm9, %v4117_v4 }
 0xf57   : > { %3632 = vmatprep.subr.bf16.mxu1 %v4117_v4 }
 0xf5d   : > { %3623 = vmatmul.mubr.msk.bf16.vlgmr.msra.gmra.mrb[20].mxu1 %vm765_vm2, %v5221_v44 }
 0xf5e   : > { %3634 = vmatprep.mubr.msk.bf16.mxu1 %vm4118_vm9, %v4117_v4  ;;  %3633 = vmatpush3.bf16.msra.mxu1 %v4007_v23 }
0x1028   : > { %v2698_v11 = vpop.f32.mrb[16].mxu1 }
0x1029   : > { %v3612_v0 = vpop.f32.mrb[17].mxu1 }
0x102a   : > { %v2701_v1 = vpop.f32.mrb[18].mxu1 }
0x102b   : > { %v2705_v40 = vpack.c.bf16 %v2701_v1, %v2698_v11  ;;  %v3613_v50 = vpop.f32.mrb[19].mxu1 }
0x102d   : > { %3617 = vmatmul.mubr.msk.bf16.vlgmr.msra.gmra.mrb[20].mxu0 %vm765_vm2, %v2705_v40 }
0x102e   : > { %3628 = vmatprep.mubr.msk.bf16.mxu0 %vm4118_vm9, %v4117_v4 }
0x1030   : > { %v2804_v13 = vpop.f32.mrb[20].mxu1 }
0x1031   : > { %v3624_v18 = vpop.f32.mrb[21].mxu1  ;;  %v2811_v30 = vsel %vm765_vm2, %v2804_v13, -inf }
0x1032   : > { %2812 = vmax.xlane.f32.xlu1 %v2811_v30  ;;  %v2807_v46 = vpop.f32.mrb[22].mxu1 }
0x1033   : > { %v3625_v17 = vpop.f32.mrb[23].mxu1  ;;  %v2814_v12 = vsel %vm765_vm2, %v2807_v46, -inf }
0x1034   : > { %2815 = vmax.xlane.f32.xlu0 %v2814_v12 }
0x10bf   : > { %v2813_v25 = vpop.xlane.xlu1 %2812 }
0x10c0   : > { %v2817_v29 = vsub.f32 %v2804_v13, %v2813_v25 }
0x10c1   : > { %v2816_v6 = vpop.xlane.xlu0 %2815 }
0x10c2   : > { %v2819_v62 = vmul.f32 1.442695, %v2817_v29  ;;  %v2818_v5 = vsub.f32 %v2807_v46, %v2816_v6 }
0x10c4   : > { %4048 = vpow2.f32 %v2819_v62  ;;  %v2821_v28 = vmul.f32 1.442695, %v2818_v5 }
0x10c6   : > { %4050 = vpow2.f32 %v2821_v28 }
0x10ce   : > { %v4049_v58 = vpop.eup %4048 }
0x10cf   : > { %v2823_v4 = vsel %vm765_vm2, %v4049_v58, 0.0 }
0x10d0   : > { %v4051_v45 = vpop.eup %4050  ;;  %2824 = vadd.xlane.f32.xlu0 %v2823_v4 }
0x10d1   : > { %v2826_v2 = vsel %vm765_vm2, %v4051_v45, 0.0 }
0x10d2   : > { %2827 = vadd.xlane.f32.xlu1 %v2826_v2 }
0x10e6   : > { %2834 = vrot.lane.b32.xlu0 %v5221_v44, %s4119_s21 }
0x1100   : > { %v2751_v47 = vpop.f32.mrb[20].mxu0 }
0x1101   : > { %v3618_v51 = vpop.f32.mrb[21].mxu0 }
0x1102   : > { %v2754_v53 = vpop.f32.mrb[22].mxu0 }
0x1103   : > { %v2758_v9 = vpack.c.bf16 %v2754_v53, %v2751_v47  ;;  %v3619_v24 = vpop.f32.mrb[23].mxu0 }
0x1105   : > { %2759 = vst.msk [vmem:[#allocation4 + $0x10] sm:$0xff] %vm475_vm0, %v2758_v9 }
0x115d   : > { %v2825_v55 = vpop.xlane.xlu0 %2824 }
0x115e   : > { %4052 = vrcp.f32 %v2825_v55 }
0x115f   : > { %v2828_v41 = vpop.xlane.xlu1 %2827 }
0x1160   : > { %4054 = vrcp.f32 %v2828_v41 }
0x1161   : > { %v2835_v56 = vpop.permute.xlu0 %2834 }
0x1162   : > { %3627 = vmatpush3.bf16.msra.mxu0 %v2835_v56 }
0x1168   : > { %v4053_v63 = vpop.eup %4052 }
0x1169   : > { %v2831_v22 = vmul.f32 %v4053_v63, %v4049_v58 }
0x116a   : > { %v4055_v44 = vpop.eup %4054 }
0x116b   : > { %v2832_v43 = vmul.f32 %v4055_v44, %v4051_v45 }
0x116d   : > { %v2833_v35 = vpack.c.bf16 %v2832_v43, %v2831_v22 }
0x116f   : > { %3629 = vmatmul.mubr.msk.bf16.vlgmr.msra.gmra.mrb[24].mxu0 %vm765_vm2, %v2833_v35 }
0x1242   : > { %v2874_v14 = vpop.f32.mrb[24].mxu0 }
0x1243   : > { %v3630_v32 = vpop.f32.mrb[25].mxu0 }
0x1244   : > { %v2877_v37 = vpop.f32.mrb[26].mxu0 }
0x1245   : > { %v2881_v34 = vpack.c.bf16 %v2877_v37, %v2874_v14  ;;  %v3631_v19 = vpop.f32.mrb[27].mxu0 }
0x1247   : > { %3635 = vmatmul.mubr.msk.bf16.vlgmr.msra.gmra.mrb[24].mxu1 %vm765_vm2, %v2881_v34 }
0x131a   : > { %v2927_v57 = vpop.f32.mrb[24].mxu1 }
0x131b   : > { %v3636_v61 = vpop.f32.mrb[25].mxu1 }
0x131c   : > { %v2930_v59 = vpop.f32.mrb[26].mxu1 }
0x131d   : > { %v2934_v36 = vpack.c.bf16 %v2930_v59, %v2927_v57  ;;  %v3637_v20 = vpop.f32.mrb[27].mxu1 }
0x131f   : > { %2935 = vst.msk [vmem:[#allocation4 + $0x18] sm:$0xff] %vm475_vm0, %v2934_v36 }
0x1320 PF: > { %p3327_p12 = scmp.ne.s32.totalorder %s4090_s14, 1 }
0x1321   : > { %v2940_v21 = vld [vmem:[#allocation4] sm:$0xff] (!%p3327_p12)  ;;  %v2941_v27 = vld [vmem:[#allocation4 + $0x8] sm:$0xff] (!%p3327_p12)  ;;  %3646 = vmatprep.mubr.msk.bf16.mxu0 (!%p3327_p12), %vm475_vm0, %v4957_v48  ;;  %3654 = vmatprep.mubr.msk.bf16.mxu1 (!%p3327_p12), %vm475_vm0, %v5033_v33  ;;  %v2942_v7 = vld [vmem:[#allocation4 + $0x10] sm:$0xff] (!%p3327_p12)  ;;  %vm3136_vm10 = vcmask (!%p3327_p12), 519168  }
0x1322   : > { %2939 = sbr.rel (%p3327_p12) target bundleno = 5142 (0x1416), region = 76  ;;  %3638 = vmatprep.subr.bf16.mxu0 (!%p3327_p12), %v2940_v21  ;;  %3662 = vmatprep.subr.bf16.mxu1 (!%p3327_p12), %v2940_v21  ;;  %v3328_v48 = vld [vmem:[%s5370_s9] ss:$0 sm:$0xff] (!%p3327_p12) }
0x1323   : > { %3639 = vmatpush3.bf16.msra.mxu0 (!%p3327_p12), %v2940_v21  ;;  %3666 = vmatpush3.bf16.msra.mxu1 (!%p3327_p12), %v2940_v21 }
0x1324   : > { %3640 = vmatprep.subr.bf16.mxu0 (!%p3327_p12), %v2941_v27  ;;  %3663 = vmatprep.subr.bf16.mxu1 (!%p3327_p12), %v2941_v27 }
0x1326   : > { %v2943_v60 = vld [vmem:[#allocation4 + $0x18] sm:$0xff] (!%p3327_p12) }
0x1327   : > { %3641 = vmatpush3.bf16.msra.mxu0 (!%p3327_p12), %v2941_v27  ;;  %3667 = vmatpush3.bf16.msra.mxu1 (!%p3327_p12), %v2941_v27 }
0x1328   : > { %3642 = vmatprep.subr.bf16.mxu0 (!%p3327_p12), %v2942_v7  ;;  %3664 = vmatprep.subr.bf16.mxu1 (!%p3327_p12), %v2942_v7 }
0x132b   : > { %3643 = vmatpush3.bf16.msra.mxu0 %v2942_v7  ;;  %3668 = vmatpush3.bf16.msra.mxu1 %v2942_v7 }
0x132c   : > { %3644 = vmatprep.subr.bf16.mxu0 %v2943_v60  ;;  %3665 = vmatprep.subr.bf16.mxu1 %v2943_v60 }
0x132f   : > { %3645 = vmatpush3.bf16.msra.mxu0 %v2943_v60  ;;  %3669 = vmatpush3.bf16.msra.mxu1 %v2943_v60 }
0x1332   : > { %3647 = vmatmul.mubr.msk.bf16.vlgmr.msra.gmra.mrb[0].mxu0 %vm475_vm0, %v4966_v52  ;;  %3655 = vmatmul.mubr.msk.bf16.vlgmr.msra.gmra.mrb[0].mxu1 %vm475_vm0, %v5016_v31 }
0x1333   : > { %3650 = vmatprep.mubr.msk.bf16.mxu0 %vm475_vm0, %v4998_v16  ;;  %3658 = vmatprep.mubr.msk.bf16.mxu1 %vm475_vm0, %v5059_v26 }
0x133a   : > { %3651 = vmatmul.mubr.msk.bf16.gmra.mrb[4].mxu0 %vm475_vm0, %v4980_v38  ;;  %3659 = vmatmul.mubr.msk.bf16.gmra.mrb[4].mxu1 %vm475_vm0, %v5068_v15 }
0x1405   : > { %v3648_v52 = vpop.f32.mrb[0].mxu0  ;;  %v3656_v33 = vpop.f32.mrb[0].mxu1 }
0x1406   : > { %v3018_v3 = vadd.f32 %v3648_v52, %v3328_v48  ;;  %v3050_v31 = vadd.f32 %v3656_v33, %v3328_v48  ;;  %v3009_v49 = vpop.f32.mrb[1].mxu0  ;;  %v3041_v8 = vpop.f32.mrb[1].mxu1 }
0x1407   : > { %v3010_v16 = vadd.f32 %v3328_v48, %v3009_v49  ;;  %v3042_v26 = vadd.f32 %v3328_v48, %v3041_v8  ;;  %v3649_v10 = vpop.f32.mrb[2].mxu0  ;;  %v3657_v38 = vpop.f32.mrb[2].mxu1 }
0x1408   : > { %v3357_v15 = vpack.c.bf16 %v3018_v3, %v3018_v3  ;;  %v3365_v54 = vpack.c.bf16 %v3050_v31, %v3050_v31  ;;  %v3021_v42 = vadd.f32 %v3649_v10, %v3328_v48  ;;  %v3053_v39 = vadd.f32 %v3657_v38, %v3328_v48  ;;  %v3012_v11 = vpop.f32.mrb[3].mxu0  ;;  %v3044_v0 = vpop.f32.mrb[3].mxu1 }
0x1409   : > { %v3355_v1 = vpack.c.bf16 %v3010_v16, %v3010_v16  ;;  %v3363_v40 = vpack.c.bf16 %v3042_v26, %v3042_v26  ;;  %v3013_v50 = vadd.f32 %v3328_v48, %v3012_v11  ;;  %v3045_v13 = vadd.f32 %v3328_v48, %v3044_v0 }
0x140a   : > { %3139 = vst.msk [vmem:[%s4261_s23 + $0x8] sm:$0xf] %vm3136_vm10, %v3357_v15  ;;  %3147 = vst.msk [vmem:[%s4261_s23 + $0x28] sm:$0xf] %vm3136_vm10, %v3365_v54  ;;  %v3358_v18 = vpack.c.bf16 %v3021_v42, %v3021_v42  ;;  %v3366_v30 = vpack.c.bf16 %v3053_v39, %v3053_v39 }
0x140b   : > { %3137 = vst.msk [vmem:[%s4261_s23] sm:$0xf] %vm3136_vm10, %v3355_v1  ;;  %3145 = vst.msk [vmem:[%s4261_s23 + $0x20] sm:$0xf] %vm3136_vm10, %v3363_v40  ;;  %v3356_v46 = vpack.c.bf16 %v3013_v50, %v3013_v50  ;;  %v3364_v17 = vpack.c.bf16 %v3045_v13, %v3045_v13 }
0x140c   : > { %3140 = vst.msk [vmem:[%s4261_s23 + $0xc] sm:$0xf] %vm3136_vm10, %v3358_v18  ;;  %3148 = vst.msk [vmem:[%s4261_s23 + $0x2c] sm:$0xf] %vm3136_vm10, %v3366_v30 }
0x140d   : > { %3138 = vst.msk [vmem:[%s4261_s23 + $0x4] sm:$0xf] %vm3136_vm10, %v3356_v46  ;;  %3146 = vst.msk [vmem:[%s4261_s23 + $0x24] sm:$0xf] %vm3136_vm10, %v3364_v17  ;;  %v3652_v12 = vpop.f32.mrb[4].mxu0  ;;  %v3660_v25 = vpop.f32.mrb[4].mxu1 }
0x140e   : > { %v3034_v29 = vadd.f32 %v3652_v12, %v3328_v48  ;;  %v3066_v6 = vadd.f32 %v3660_v25, %v3328_v48  ;;  %v3025_v62 = vpop.f32.mrb[5].mxu0  ;;  %v3057_v5 = vpop.f32.mrb[5].mxu1 }
0x140f   : > { %v3026_v28 = vadd.f32 %v3328_v48, %v3025_v62  ;;  %v3058_v58 = vadd.f32 %v3328_v48, %v3057_v5  ;;  %v3653_v4 = vpop.f32.mrb[6].mxu0  ;;  %v3661_v45 = vpop.f32.mrb[6].mxu1 }
0x1410   : > { %v3361_v2 = vpack.c.bf16 %v3034_v29, %v3034_v29  ;;  %v3369_v23 = vpack.c.bf16 %v3066_v6, %v3066_v6  ;;  %v3037_v47 = vadd.f32 %v3653_v4, %v3328_v48  ;;  %v3069_v51 = vadd.f32 %v3661_v45, %v3328_v48  ;;  %v3028_v53 = vpop.f32.mrb[7].mxu0  ;;  %v3060_v9 = vpop.f32.mrb[7].mxu1 }
0x1411   : > { %v3359_v24 = vpack.c.bf16 %v3026_v28, %v3026_v28  ;;  %v3367_v55 = vpack.c.bf16 %v3058_v58, %v3058_v58  ;;  %v3029_v41 = vadd.f32 %v3328_v48, %v3028_v53  ;;  %v3061_v56 = vadd.f32 %v3328_v48, %v3060_v9 }
0x1412   : > { %3143 = vst.msk [vmem:[%s4261_s23 + $0x18] sm:$0xf] %vm3136_vm10, %v3361_v2  ;;  %3151 = vst.msk [vmem:[%s4261_s23 + $0x38] sm:$0xf] %vm3136_vm10, %v3369_v23  ;;  %v3362_v63 = vpack.c.bf16 %v3037_v47, %v3037_v47  ;;  %v3370_v44 = vpack.c.bf16 %v3069_v51, %v3069_v51 }
0x1413   : > { %3141 = vst.msk [vmem:[%s4261_s23 + $0x10] sm:$0xf] %vm3136_vm10, %v3359_v24  ;;  %3149 = vst.msk [vmem:[%s4261_s23 + $0x30] sm:$0xf] %vm3136_vm10, %v3367_v55  ;;  %v3360_v22 = vpack.c.bf16 %v3029_v41, %v3029_v41  ;;  %v3368_v43 = vpack.c.bf16 %v3061_v56, %v3061_v56 }
0x1414   : > { %3144 = vst.msk [vmem:[%s4261_s23 + $0x1c] sm:$0xf] %vm3136_vm10, %v3362_v63  ;;  %3152 = vst.msk [vmem:[%s4261_s23 + $0x3c] sm:$0xf] %vm3136_vm10, %v3370_v44 }
0x1415   : > { %3142 = vst.msk [vmem:[%s4261_s23 + $0x14] sm:$0xf] %vm3136_vm10, %v3360_v22  ;;  %3150 = vst.msk [vmem:[%s4261_s23 + $0x34] sm:$0xf] %vm3136_vm10, %v3368_v43 }
0x1416 PF: > { %s20_s19 = sadd.s32 1, %s4110_s19   ;;  %s5507_s30 = sld [smem:[#allocation5_spill]] }
0x1417   : > { %p17_p13 = scmp.ge.s32.totalorder %s20_s19, 10   ;;  %s5508_s20 = sld [smem:[#allocation6_spill]] }
0x1418   : > { %s5509_s21 = sld [smem:[#allocation7_spill]]  ;;  %s5510_s13 = smov %s4098_s16 }
0x1419   : > { %s5511_s14 = smov %s4102_s17  ;;  %s5512_s15 = smov %s4106_s18 }
0x141a   :  { %19 = sbr.rel (!%p17_p13) target bundleno = 4 (0x4), region = 106 }
0x141c   : > { %s5513_s16 = smov %s5507_s30 }
0x141d   : > { %s5514_s17 = smov %s5508_s20 }
0x141e   : > { %s5515_s18 = smov %s5509_s21 }

</bundles_post_ra>
